<compile_context>
chip_gen: v6e
topology: v6e:2x2x1
jax: 0.10.0
libtpu: 0.0.40
codegen_flags: <defaults>
</compile_context>

<pallas_src>
import functools

import jax
import jax.numpy as jnp
from jax.experimental import pallas as pl
from jax.experimental.pallas import tpu as pltpu

LANE = 128  # TPU vreg lane width


def _round_up(v, m):
    return ((v + m - 1) // m) * m


# -----------------------------------------------------------------------------
# Fused conv kernel core:
#   (optional BN+ReLU prologue) -> in-VMEM zero halo -> im2col -> one MXU matmul
#   -> conv output + per-channel sum / sum-of-squares partials.
# -----------------------------------------------------------------------------
def _conv_core(x, w_ref, y_ref, sum_ref, ssq_ref, xp_ref, H, W):
    # x      : (H, W, Cin_p) f32 activation tile (already BN+ReLU'd if fused)
    # w_ref  : (9*Cin_p, Cout_p) bf16
    # y_ref  : (1, H, W, Cout_p) f32
    # sum_ref/ssq_ref: (1, 1, Cout_p) f32 per-image BN stat partials
    # xp_ref : VMEM scratch (H+2, W+2, Cin_p) f32 (zero halo, no HBM pad pass)
    cin = x.shape[-1]
    cout = w_ref.shape[-1]

    xp_ref[...] = jnp.zeros_like(xp_ref)            # zero incl. 1-pixel halo
    xp_ref[pl.ds(1, H), pl.ds(1, W), :] = x         # interior

    # im2col: 9 shifted views concatenated along lanes -> (H*W, 9*Cin_p)
    pieces = [
        xp_ref[pl.ds(dy, H), pl.ds(dx, W), :].reshape(H * W, cin)
        for dy in range(3) for dx in range(3)
    ]
    patches = jnp.concatenate(pieces, axis=-1).astype(jnp.bfloat16)

    # single MXU matmul, K = 9*Cin_p, f32 accumulation
    y = jnp.dot(patches, w_ref[...], preferred_element_type=jnp.float32)

    y_ref[0] = y.reshape(H, W, cout)                # lane-dense (Cout_p = 128k) store
    # BN stat partials over this image's H*W rows (cheap VPU/XLU work under the MXU)
    sum_ref[0] = jnp.sum(y, axis=0, keepdims=True)
    ssq_ref[0] = jnp.sum(y * y, axis=0, keepdims=True)


def _conv_kernel(x_ref, w_ref, y_ref, sum_ref, ssq_ref, xp_ref, *, H, W):
    _conv_core(x_ref[0], w_ref, y_ref, sum_ref, ssq_ref, xp_ref, H, W)


def _bnrelu_conv_kernel(x_ref, w_ref, scale_ref, shift_ref,
                        y_ref, sum_ref, ssq_ref, xp_ref, *, H, W):
    # Fused BN+ReLU prologue (folded affine of the previous BatchNorm), then conv.
    x = jnp.maximum(x_ref[0] * scale_ref[0] + shift_ref[0], 0.0)
    _conv_core(x, w_ref, y_ref, sum_ref, ssq_ref, xp_ref, H, W)


def _conv3x3_call(x, w2d, scale=None, shift=None):
    """3x3 'same' conv (stride 1) with optional fused BN+ReLU prologue.

    x   : (N, H, W, Cin_p) f32, Cin_p a multiple of 128
    w2d : (9*Cin_p, Cout_p) bf16
    Returns (y, sum_partials, sumsq_partials).
    """
    N, H, W, Cin = x.shape
    K9, Cout = w2d.shape
    fuse = scale is not None

    if fuse:
        kernel = functools.partial(_bnrelu_conv_kernel, H=H, W=W)
        extra_specs = [pl.BlockSpec((1, Cin), lambda n: (0, 0)),
                       pl.BlockSpec((1, Cin), lambda n: (0, 0))]
        extra_args = (scale.reshape(1, Cin).astype(jnp.float32),
                      shift.reshape(1, Cin).astype(jnp.float32))
    else:
        kernel = functools.partial(_conv_kernel, H=H, W=W)
        extra_specs, extra_args = [], ()

    flops = 2 * N * H * W * K9 * Cout
    bytes_accessed = (N * H * W * Cin * 4      # activation in
                      + K9 * Cout * 2          # bf16 weights
                      + N * H * W * Cout * 4   # activation out
                      + 2 * N * Cout * 4)      # stat partials

    return pl.pallas_call(
        kernel,
        grid=(N,),
        in_specs=[pl.BlockSpec((1, H, W, Cin), lambda n: (n, 0, 0, 0)),
                  pl.BlockSpec((K9, Cout), lambda n: (0, 0))] + extra_specs,
        out_specs=(pl.BlockSpec((1, H, W, Cout), lambda n: (n, 0, 0, 0)),
                   pl.BlockSpec((1, 1, Cout), lambda n: (n, 0, 0)),
                   pl.BlockSpec((1, 1, Cout), lambda n: (n, 0, 0))),
        out_shape=(jax.ShapeDtypeStruct((N, H, W, Cout), jnp.float32),
                   jax.ShapeDtypeStruct((N, 1, Cout), jnp.float32),
                   jax.ShapeDtypeStruct((N, 1, Cout), jnp.float32)),
        scratch_shapes=[pltpu.VMEM((H + 2, W + 2, Cin), jnp.float32)],
        compiler_params=pltpu.CompilerParams(
            dimension_semantics=("parallel",)),
        cost_estimate=pl.CostEstimate(flops=flops, transcendentals=0,
                                      bytes_accessed=bytes_accessed),
    )(x, w2d, *extra_args)


# -----------------------------------------------------------------------------
# Final BN + ReLU (lane-dense elementwise pass; cannot be fused forward because
# BN2 needs global batch statistics of conv2's output).
# -----------------------------------------------------------------------------
def _bn_relu_kernel(y_ref, scale_ref, shift_ref, o_ref):
    o_ref[...] = jnp.maximum(y_ref[...] * scale_ref[0] + shift_ref[0], 0.0)


def _bn_relu_call(y, scale, shift):
    N, H, W, C = y.shape
    return pl.pallas_call(
        _bn_relu_kernel,
        grid=(N,),
        in_specs=[pl.BlockSpec((1, H, W, C), lambda n: (n, 0, 0, 0)),
                  pl.BlockSpec((1, C), lambda n: (0, 0)),
                  pl.BlockSpec((1, C), lambda n: (0, 0))],
        out_specs=pl.BlockSpec((1, H, W, C), lambda n: (n, 0, 0, 0)),
        out_shape=jax.ShapeDtypeStruct((N, H, W, C), jnp.float32),
        compiler_params=pltpu.CompilerParams(
            dimension_semantics=("parallel",)),
    )(y, scale.reshape(1, C).astype(jnp.float32),
      shift.reshape(1, C).astype(jnp.float32))


# -----------------------------------------------------------------------------
# Wrapper-level helpers (layout plumbing + folding BN stats into scale/shift)
# -----------------------------------------------------------------------------
def _prep_weight(w_hwio, cin_p, cout_p):
    kh, kw, cin, cout = w_hwio.shape
    w = jnp.pad(w_hwio, ((0, 0), (0, 0), (0, cin_p - cin), (0, cout_p - cout)))
    # (3, 3, Cin_p, Cout_p) -> (9*Cin_p, Cout_p), matching the im2col tap order.
    return w.reshape(kh * kw * cin_p, cout_p).astype(jnp.bfloat16)


def _pad_vec(v, c_p):
    return jnp.pad(v, (0, c_p - v.shape[0]))


def _fold_bn_stats(ssum, ssq, gamma, beta, count, eps):
    s = jnp.sum(ssum[:, 0, :], axis=0)
    q = jnp.sum(ssq[:, 0, :], axis=0)
    mean = s / count
    var = jnp.maximum(q / count - mean * mean, 0.0)   # biased batch variance
    scale = gamma * jax.lax.rsqrt(var + eps)
    shift = beta - mean * scale
    return scale, shift


# -----------------------------------------------------------------------------
# conv_block forward (PyTorch-style NCHW in / NCHW out)
# -----------------------------------------------------------------------------
def init_conv_block_params(key, ch_in, ch_out):
    k1, k2, k3, k4 = jax.random.split(key, 4)
    return {
        # HWIO layout (PyTorch OIHW transposed (2,3,1,0))
        "w1": 0.1 * jax.random.normal(k1, (3, 3, ch_in, ch_out), jnp.float32),
        "b1": 0.1 * jax.random.normal(k2, (ch_out,), jnp.float32),
        "gamma1": jnp.ones((ch_out,), jnp.float32),
        "beta1": jnp.zeros((ch_out,), jnp.float32),
        "w2": 0.1 * jax.random.normal(k3, (3, 3, ch_out, ch_out), jnp.float32),
        "b2": 0.1 * jax.random.normal(k4, (ch_out,), jnp.float32),
        "gamma2": jnp.ones((ch_out,), jnp.float32),
        "beta2": jnp.zeros((ch_out,), jnp.float32),
    }


def conv_block_forward(x_nchw, params, eps=1e-5):
    N, Cin, H, W = x_nchw.shape
    Cout = params["gamma1"].shape[0]
    Cin_p = _round_up(Cin, LANE)
    Cout_p = _round_up(Cout, LANE)

    # NCHW -> NHWC, channel-pad to a lane multiple (lane-dense loads/stores).
    x = jnp.transpose(x_nchw, (0, 2, 3, 1)).astype(jnp.float32)
    x = jnp.pad(x, ((0, 0), (0, 0), (0, 0), (0, Cin_p - Cin)))

    w1 = _prep_weight(params["w1"], Cin_p, Cout_p)
    w2 = _prep_weight(params["w2"], Cout_p, Cout_p)
    g1, b1 = _pad_vec(params["gamma1"], Cout_p), _pad_vec(params["beta1"], Cout_p)
    g2, b2 = _pad_vec(params["gamma2"], Cout_p), _pad_vec(params["beta2"], Cout_p)
    # params["b1"]/["b2"] intentionally unused: cancelled exactly by training-mode BN.

    count = N * H * W

    # conv1 + BN1 stat partials
    y1, s1, q1 = _conv3x3_call(x, w1)
    scale1, shift1 = _fold_bn_stats(s1, q1, g1, b1, count, eps)

    # fused BN1-affine + ReLU prologue -> conv2 + BN2 stat partials
    y2, s2, q2 = _conv3x3_call(y1, w2, scale1, shift1)
    scale2, shift2 = _fold_bn_stats(s2, q2, g2, b2, count, eps)

    # BN2 + ReLU (lane-dense elementwise)
    out = _bn_relu_call(y2, scale2, shift2)

    out = out[..., :Cout]                      # crop channel padding
    return jnp.transpose(out, (0, 3, 1, 2))    # NHWC -> NCHW


# -----------------------------------------------------------------------------
# Pure-JAX reference (PyTorch training-mode semantics incl. bias) for self-check.
# -----------------------------------------------------------------------------
def _reference_forward(x_nchw, params, eps=1e-5):
    x = jnp.transpose(x_nchw, (0, 2, 3, 1))

    def stage(x, w, b, g, beta):
        y = jax.lax.conv_general_dilated(
            x, w, window_strides=(1, 1), padding="SAME",
            dimension_numbers=("NHWC", "HWIO", "NHWC"),
            precision=jax.lax.Precision.HIGHEST) + b
        m = jnp.mean(y, axis=(0, 1, 2))
        v = jnp.mean(jnp.square(y - m), axis=(0, 1, 2))
        return jnp.maximum((y - m) * (g / jnp.sqrt(v + eps)) + beta, 0.0)

    y = stage(x, params["w1"], params["b1"], params["gamma1"], params["beta1"])
    y = stage(y, params["w2"], params["b2"], params["gamma2"], params["beta2"])
    return jnp.transpose(y, (0, 3, 1, 2))


if __name__ == "__main__":
    key = jax.random.PRNGKey(0)
    k_x, k_p = jax.random.split(key)

    ch_in, ch_out = 4, 8
    x = jax.random.normal(k_x, (2, ch_in, 16, 16), jnp.float32)  # NCHW
    params = init_conv_block_params(k_p, ch_in, ch_out)

    fwd = jax.jit(conv_block_forward)
    out = jax.block_until_ready(fwd(x, params))
    assert out.shape == (2, ch_out, 16, 16)

    ref = jax.block_until_ready(_reference_forward(x, params))
    max_err = float(jnp.max(jnp.abs(out - ref)))
    assert max_err < 1e-1, f"max abs err vs reference: {max_err}"

    print("KERNEL_OK")
</pallas_src>

<mosaic_0001>
module attributes {stable_mosaic.version = 11 : i64} {
  func.func @_conv_kernel(%arg0: i32, %arg1: memref<1x16x16x128xf32, #tpu.memory_space<vmem>>, %arg2: memref<1152x128xbf16, #tpu.memory_space<vmem>>, %arg3: memref<1x16x16x128xf32, #tpu.memory_space<vmem>>, %arg4: memref<1x1x128xf32, #tpu.memory_space<vmem>>, %arg5: memref<1x1x128xf32, #tpu.memory_space<vmem>>, %arg6: memref<18x18x128xf32, #tpu.memory_space<vmem>>) attributes {dimension_semantics = [#tpu.dimension_semantics<parallel>], iteration_bounds = array<i64: 2>, scalar_prefetch = 0 : i64, scratch_operands = 1 : i64, tpu.core_type = #tpu.core_type<tc>, window_params = [{transform_indices = @transform_0, window_bounds = array<i64: 1, 16, 16, 128>}, {pipeline_mode = #tpu.pipeline_mode<synchronous>, transform_indices = @transform_1, window_bounds = array<i64: 1152, 128>}, {transform_indices = @transform_2, window_bounds = array<i64: 1, 16, 16, 128>}, {transform_indices = @transform_3, window_bounds = array<i64: 1, 1, 128>}, {transform_indices = @transform_4, window_bounds = array<i64: 1, 1, 128>}]} {
    %c0 = arith.constant 0 : index
    %c0_0 = arith.constant 0 : index
    %c0_1 = arith.constant 0 : index
    %c0_2 = arith.constant 0 : index
    %0 = vector.load %arg1[%c0, %c0_0, %c0_1, %c0_2] : memref<1x16x16x128xf32, #tpu.memory_space<vmem>>, vector<1x16x16x128xf32>
    %1 = vector.shape_cast %0 : vector<1x16x16x128xf32> to vector<16x16x128xf32>
    %cst = arith.constant 0.000000e+00 : f32
    %2 = vector.broadcast %cst : f32 to vector<18x18x128xf32>
    %c0_3 = arith.constant 0 : index
    %c0_4 = arith.constant 0 : index
    %c0_5 = arith.constant 0 : index
    %3 = vector.load %arg6[%c0_3, %c0_4, %c0_5] : memref<18x18x128xf32, #tpu.memory_space<vmem>>, vector<18x18x128xf32>
    tpu.vector_store %arg6[%c0_3, %c0_4, %c0_5], %2 {strides = array<i32>} : memref<18x18x128xf32, #tpu.memory_space<vmem>>, vector<18x18x128xf32>,
    %c1 = arith.constant 1 : index
    %c1_6 = arith.constant 1 : index
    %c0_7 = arith.constant 0 : index
    %4 = vector.load %arg6[%c1, %c1_6, %c0_7] : memref<18x18x128xf32, #tpu.memory_space<vmem>>, vector<16x16x128xf32>
    tpu.vector_store %arg6[%c1, %c1_6, %c0_7], %1 {strides = array<i32>} : memref<18x18x128xf32, #tpu.memory_space<vmem>>, vector<16x16x128xf32>,
    %c0_8 = arith.constant 0 : index
    %c0_9 = arith.constant 0 : index
    %c0_10 = arith.constant 0 : index
    %5 = vector.load %arg6[%c0_8, %c0_9, %c0_10] : memref<18x18x128xf32, #tpu.memory_space<vmem>>, vector<16x16x128xf32>
    %6 = vector.shape_cast %5 : vector<16x16x128xf32> to vector<256x128xf32>
    %c0_11 = arith.constant 0 : index
    %c1_12 = arith.constant 1 : index
    %c0_13 = arith.constant 0 : index
    %7 = vector.load %arg6[%c0_11, %c1_12, %c0_13] : memref<18x18x128xf32, #tpu.memory_space<vmem>>, vector<16x16x128xf32>
    %8 = vector.shape_cast %7 : vector<16x16x128xf32> to vector<256x128xf32>
    %c0_14 = arith.constant 0 : index
    %c2 = arith.constant 2 : index
    %c0_15 = arith.constant 0 : index
    %9 = vector.load %arg6[%c0_14, %c2, %c0_15] : memref<18x18x128xf32, #tpu.memory_space<vmem>>, vector<16x16x128xf32>
    %10 = vector.shape_cast %9 : vector<16x16x128xf32> to vector<256x128xf32>
    %c1_16 = arith.constant 1 : index
    %c0_17 = arith.constant 0 : index
    %c0_18 = arith.constant 0 : index
    %11 = vector.load %arg6[%c1_16, %c0_17, %c0_18] : memref<18x18x128xf32, #tpu.memory_space<vmem>>, vector<16x16x128xf32>
    %12 = vector.shape_cast %11 : vector<16x16x128xf32> to vector<256x128xf32>
    %c1_19 = arith.constant 1 : index
    %c1_20 = arith.constant 1 : index
    %c0_21 = arith.constant 0 : index
    %13 = vector.load %arg6[%c1_19, %c1_20, %c0_21] : memref<18x18x128xf32, #tpu.memory_space<vmem>>, vector<16x16x128xf32>
    %14 = vector.shape_cast %13 : vector<16x16x128xf32> to vector<256x128xf32>
    %c1_22 = arith.constant 1 : index
    %c2_23 = arith.constant 2 : index
    %c0_24 = arith.constant 0 : index
    %15 = vector.load %arg6[%c1_22, %c2_23, %c0_24] : memref<18x18x128xf32, #tpu.memory_space<vmem>>, vector<16x16x128xf32>
    %16 = vector.shape_cast %15 : vector<16x16x128xf32> to vector<256x128xf32>
    %c2_25 = arith.constant 2 : index
    %c0_26 = arith.constant 0 : index
    %c0_27 = arith.constant 0 : index
    %17 = vector.load %arg6[%c2_25, %c0_26, %c0_27] : memref<18x18x128xf32, #tpu.memory_space<vmem>>, vector<16x16x128xf32>
    %18 = vector.shape_cast %17 : vector<16x16x128xf32> to vector<256x128xf32>
    %c2_28 = arith.constant 2 : index
    %c1_29 = arith.constant 1 : index
    %c0_30 = arith.constant 0 : index
    %19 = vector.load %arg6[%c2_28, %c1_29, %c0_30] : memref<18x18x128xf32, #tpu.memory_space<vmem>>, vector<16x16x128xf32>
    %20 = vector.shape_cast %19 : vector<16x16x128xf32> to vector<256x128xf32>
    %c2_31 = arith.constant 2 : index
    %c2_32 = arith.constant 2 : index
    %c0_33 = arith.constant 0 : index
    %21 = vector.load %arg6[%c2_31, %c2_32, %c0_33] : memref<18x18x128xf32, #tpu.memory_space<vmem>>, vector<16x16x128xf32>
    %22 = vector.shape_cast %21 : vector<16x16x128xf32> to vector<256x128xf32>
    %23 = tpu.concatenate %6, %8, %10, %12, %14, %16, %18, %20, %22 in 1 : vector<256x128xf32>, vector<256x128xf32>, vector<256x128xf32>, vector<256x128xf32>, vector<256x128xf32>, vector<256x128xf32>, vector<256x128xf32>, vector<256x128xf32>, vector<256x128xf32> -> vector<256x1152xf32>
    %24 = arith.truncf %23 : vector<256x1152xf32> to vector<256x1152xbf16>
    %c0_34 = arith.constant 0 : index
    %c0_35 = arith.constant 0 : index
    %25 = vector.load %arg2[%c0_34, %c0_35] : memref<1152x128xbf16, #tpu.memory_space<vmem>>, vector<1152x128xbf16>
    %cst_36 = arith.constant dense<0.000000e+00> : vector<256x128xf32>
    %26 = tpu.matmul %24, %25, %cst_36 {dimension_numbers = #tpu.dot_dimension_numbers<[1], [0], [0], [1], [0, 0, 1, 1], [], []>} : vector<256x1152xbf16>, vector<1152x128xbf16>, vector<256x128xf32> -> vector<256x128xf32>
    %27 = vector.shape_cast %26 : vector<256x128xf32> to vector<16x16x128xf32>
    %c0_37 = arith.constant 0 : index
    %c0_38 = arith.constant 0 : index
    %c0_39 = arith.constant 0 : index
    %c0_40 = arith.constant 0 : index
    %28 = vector.load %arg3[%c0_37, %c0_38, %c0_39, %c0_40] : memref<1x16x16x128xf32, #tpu.memory_space<vmem>>, vector<1x16x16x128xf32>
    %29 = vector.shape_cast %28 : vector<1x16x16x128xf32> to vector<16x16x128xf32>
    %30 = vector.shape_cast %27 : vector<16x16x128xf32> to vector<1x16x16x128xf32>
    tpu.vector_store %arg3[%c0_37, %c0_38, %c0_39, %c0_40], %30 {strides = array<i32>} : memref<1x16x16x128xf32, #tpu.memory_space<vmem>>, vector<1x16x16x128xf32>,
    %cst_41 = arith.constant dense<0.000000e+00> : vector<128xf32>
    %31 = vector.multi_reduction <add>, %26, %cst_41 [0] : vector<256x128xf32> to vector<128xf32>
    %32 = vector.shape_cast %31 : vector<128xf32> to vector<1x128xf32>
    %c0_42 = arith.constant 0 : index
    %c0_43 = arith.constant 0 : index
    %c0_44 = arith.constant 0 : index
    %33 = vector.load %arg4[%c0_42, %c0_43, %c0_44] : memref<1x1x128xf32, #tpu.memory_space<vmem>>, vector<1x1x128xf32>
    %34 = vector.shape_cast %33 : vector<1x1x128xf32> to vector<1x128xf32>
    %35 = vector.shape_cast %32 : vector<1x128xf32> to vector<1x1x128xf32>
    tpu.vector_store %arg4[%c0_42, %c0_43, %c0_44], %35 {strides = array<i32>} : memref<1x1x128xf32, #tpu.memory_space<vmem>>, vector<1x1x128xf32>,
    %36 = arith.mulf %26, %26 : vector<256x128xf32>
    %cst_45 = arith.constant dense<0.000000e+00> : vector<128xf32>
    %37 = vector.multi_reduction <add>, %36, %cst_45 [0] : vector<256x128xf32> to vector<128xf32>
    %38 = vector.shape_cast %37 : vector<128xf32> to vector<1x128xf32>
    %c0_46 = arith.constant 0 : index
    %c0_47 = arith.constant 0 : index
    %c0_48 = arith.constant 0 : index
    %39 = vector.load %arg5[%c0_46, %c0_47, %c0_48] : memref<1x1x128xf32, #tpu.memory_space<vmem>>, vector<1x1x128xf32>
    %40 = vector.shape_cast %39 : vector<1x1x128xf32> to vector<1x128xf32>
    %41 = vector.shape_cast %38 : vector<1x128xf32> to vector<1x1x128xf32>
    tpu.vector_store %arg5[%c0_46, %c0_47, %c0_48], %41 {strides = array<i32>} : memref<1x1x128xf32, #tpu.memory_space<vmem>>, vector<1x1x128xf32>,
    return
  }
  func.func @transform_0(%arg0: i32) -> (i32, i32, i32, i32) {
    %c0_i32 = arith.constant 0 : i32
    %c0_i32_0 = arith.constant 0 : i32
    %c0_i32_1 = arith.constant 0 : i32
    %c0_i32_2 = arith.constant 0 : i32
    return %arg0, %c0_i32, %c0_i32_0, %c0_i32_1 : i32, i32, i32, i32
  }
  func.func @transform_1(%arg0: i32) -> (i32, i32) {
    %c0_i32 = arith.constant 0 : i32
    %c0_i32_0 = arith.constant 0 : i32
    %c0_i32_1 = arith.constant 0 : i32
    return %c0_i32, %c0_i32_0 : i32, i32
  }
  func.func @transform_2(%arg0: i32) -> (i32, i32, i32, i32) {
    %c0_i32 = arith.constant 0 : i32
    %c0_i32_0 = arith.constant 0 : i32
    %c0_i32_1 = arith.constant 0 : i32
    %c0_i32_2 = arith.constant 0 : i32
    return %arg0, %c0_i32, %c0_i32_0, %c0_i32_1 : i32, i32, i32, i32
  }
  func.func @transform_3(%arg0: i32) -> (i32, i32, i32) {
    %c0_i32 = arith.constant 0 : i32
    %c0_i32_0 = arith.constant 0 : i32
    %c0_i32_1 = arith.constant 0 : i32
    return %arg0, %c0_i32, %c0_i32_0 : i32, i32, i32
  }
  func.func @transform_4(%arg0: i32) -> (i32, i32, i32) {
    %c0_i32 = arith.constant 0 : i32
    %c0_i32_0 = arith.constant 0 : i32
    %c0_i32_1 = arith.constant 0 : i32
    return %arg0, %c0_i32, %c0_i32_0 : i32, i32, i32
  }
}

module attributes {stable_mosaic.version = 11 : i64} {
  func.func @_bn_relu_kernel(%arg0: i32, %arg1: memref<1x16x16x128xf32, #tpu.memory_space<vmem>>, %arg2: memref<1x128xf32, #tpu.memory_space<vmem>>, %arg3: memref<1x128xf32, #tpu.memory_space<vmem>>, %arg4: memref<1x16x16x128xf32, #tpu.memory_space<vmem>>) attributes {dimension_semantics = [#tpu.dimension_semantics<parallel>], iteration_bounds = array<i64: 2>, scalar_prefetch = 0 : i64, scratch_operands = 0 : i64, tpu.core_type = #tpu.core_type<tc>, window_params = [{transform_indices = @transform_0, window_bounds = array<i64: 1, 16, 16, 128>}, {pipeline_mode = #tpu.pipeline_mode<synchronous>, transform_indices = @transform_1, window_bounds = array<i64: 1, 128>}, {pipeline_mode = #tpu.pipeline_mode<synchronous>, transform_indices = @transform_2, window_bounds = array<i64: 1, 128>}, {transform_indices = @transform_3, window_bounds = array<i64: 1, 16, 16, 128>}]} {
    %c0 = arith.constant 0 : index
    %c0_0 = arith.constant 0 : index
    %c0_1 = arith.constant 0 : index
    %c0_2 = arith.constant 0 : index
    %0 = vector.load %arg1[%c0, %c0_0, %c0_1, %c0_2] : memref<1x16x16x128xf32, #tpu.memory_space<vmem>>, vector<1x16x16x128xf32>
    %c0_3 = arith.constant 0 : index
    %c0_4 = arith.constant 0 : index
    %1 = vector.load %arg2[%c0_3, %c0_4] : memref<1x128xf32, #tpu.memory_space<vmem>>, vector<1x128xf32>
    %2 = vector.shape_cast %1 : vector<1x128xf32> to vector<128xf32>
    %3 = vector.shape_cast %2 : vector<128xf32> to vector<1x1x1x128xf32>
    %4 = vector.broadcast %3 : vector<1x1x1x128xf32> to vector<1x16x16x128xf32>
    %5 = arith.mulf %0, %4 : vector<1x16x16x128xf32>
    %c0_5 = arith.constant 0 : index
    %c0_6 = arith.constant 0 : index
    %6 = vector.load %arg3[%c0_5, %c0_6] : memref<1x128xf32, #tpu.memory_space<vmem>>, vector<1x128xf32>
    %7 = vector.shape_cast %6 : vector<1x128xf32> to vector<128xf32>
    %8 = vector.shape_cast %7 : vector<128xf32> to vector<1x1x1x128xf32>
    %9 = vector.broadcast %8 : vector<1x1x1x128xf32> to vector<1x16x16x128xf32>
    %10 = arith.addf %5, %9 : vector<1x16x16x128xf32>
    %cst = arith.constant 0.000000e+00 : f32
    %11 = vector.broadcast %cst : f32 to vector<1x16x16x128xf32>
    %12 = arith.maximumf %10, %11 : vector<1x16x16x128xf32>
    %c0_7 = arith.constant 0 : index
    %c0_8 = arith.constant 0 : index
    %c0_9 = arith.constant 0 : index
    %c0_10 = arith.constant 0 : index
    %13 = vector.load %arg4[%c0_7, %c0_8, %c0_9, %c0_10] : memref<1x16x16x128xf32, #tpu.memory_space<vmem>>, vector<1x16x16x128xf32>
    tpu.vector_store %arg4[%c0_7, %c0_8, %c0_9, %c0_10], %12 {strides = array<i32>} : memref<1x16x16x128xf32, #tpu.memory_space<vmem>>, vector<1x16x16x128xf32>,
    return
  }
  func.func @transform_0(%arg0: i32) -> (i32, i32, i32, i32) {
    %c0_i32 = arith.constant 0 : i32
    %c0_i32_0 = arith.constant 0 : i32
    %c0_i32_1 = arith.constant 0 : i32
    %c0_i32_2 = arith.constant 0 : i32
    return %arg0, %c0_i32, %c0_i32_0, %c0_i32_1 : i32, i32, i32, i32
  }
  func.func @transform_1(%arg0: i32) -> (i32, i32) {
    %c0_i32 = arith.constant 0 : i32
    %c0_i32_0 = arith.constant 0 : i32
    %c0_i32_1 = arith.constant 0 : i32
    return %c0_i32, %c0_i32_0 : i32, i32
  }
  func.func @transform_2(%arg0: i32) -> (i32, i32) {
    %c0_i32 = arith.constant 0 : i32
    %c0_i32_0 = arith.constant 0 : i32
    %c0_i32_1 = arith.constant 0 : i32
    return %c0_i32, %c0_i32_0 : i32, i32
  }
  func.func @transform_3(%arg0: i32) -> (i32, i32, i32, i32) {
    %c0_i32 = arith.constant 0 : i32
    %c0_i32_0 = arith.constant 0 : i32
    %c0_i32_1 = arith.constant 0 : i32
    %c0_i32_2 = arith.constant 0 : i32
    return %arg0, %c0_i32, %c0_i32_0, %c0_i32_1 : i32, i32, i32, i32
  }
}

module attributes {stable_mosaic.version = 11 : i64} {
  func.func @_bnrelu_conv_kernel(%arg0: i32, %arg1: memref<1x16x16x128xf32, #tpu.memory_space<vmem>>, %arg2: memref<1152x128xbf16, #tpu.memory_space<vmem>>, %arg3: memref<1x128xf32, #tpu.memory_space<vmem>>, %arg4: memref<1x128xf32, #tpu.memory_space<vmem>>, %arg5: memref<1x16x16x128xf32, #tpu.memory_space<vmem>>, %arg6: memref<1x1x128xf32, #tpu.memory_space<vmem>>, %arg7: memref<1x1x128xf32, #tpu.memory_space<vmem>>, %arg8: memref<18x18x128xf32, #tpu.memory_space<vmem>>) attributes {dimension_semantics = [#tpu.dimension_semantics<parallel>], iteration_bounds = array<i64: 2>, scalar_prefetch = 0 : i64, scratch_operands = 1 : i64, tpu.core_type = #tpu.core_type<tc>, window_params = [{transform_indices = @transform_0, window_bounds = array<i64: 1, 16, 16, 128>}, {pipeline_mode = #tpu.pipeline_mode<synchronous>, transform_indices = @transform_1, window_bounds = array<i64: 1152, 128>}, {pipeline_mode = #tpu.pipeline_mode<synchronous>, transform_indices = @transform_2, window_bounds = array<i64: 1, 128>}, {pipeline_mode = #tpu.pipeline_mode<synchronous>, transform_indices = @transform_3, window_bounds = array<i64: 1, 128>}, {transform_indices = @transform_4, window_bounds = array<i64: 1, 16, 16, 128>}, {transform_indices = @transform_5, window_bounds = array<i64: 1, 1, 128>}, {transform_indices = @transform_6, window_bounds = array<i64: 1, 1, 128>}]} {
    %c0 = arith.constant 0 : index
    %c0_0 = arith.constant 0 : index
    %c0_1 = arith.constant 0 : index
    %c0_2 = arith.constant 0 : index
    %0 = vector.load %arg1[%c0, %c0_0, %c0_1, %c0_2] : memref<1x16x16x128xf32, #tpu.memory_space<vmem>>, vector<1x16x16x128xf32>
    %1 = vector.shape_cast %0 : vector<1x16x16x128xf32> to vector<16x16x128xf32>
    %c0_3 = arith.constant 0 : index
    %c0_4 = arith.constant 0 : index
    %2 = vector.load %arg3[%c0_3, %c0_4] : memref<1x128xf32, #tpu.memory_space<vmem>>, vector<1x128xf32>
    %3 = vector.shape_cast %2 : vector<1x128xf32> to vector<128xf32>
    %4 = vector.shape_cast %3 : vector<128xf32> to vector<1x1x128xf32>
    %5 = vector.broadcast %4 : vector<1x1x128xf32> to vector<16x16x128xf32>
    %6 = arith.mulf %1, %5 : vector<16x16x128xf32>
    %c0_5 = arith.constant 0 : index
    %c0_6 = arith.constant 0 : index
    %7 = vector.load %arg4[%c0_5, %c0_6] : memref<1x128xf32, #tpu.memory_space<vmem>>, vector<1x128xf32>
    %8 = vector.shape_cast %7 : vector<1x128xf32> to vector<128xf32>
    %9 = vector.shape_cast %8 : vector<128xf32> to vector<1x1x128xf32>
    %10 = vector.broadcast %9 : vector<1x1x128xf32> to vector<16x16x128xf32>
    %11 = arith.addf %6, %10 : vector<16x16x128xf32>
    %cst = arith.constant 0.000000e+00 : f32
    %12 = vector.broadcast %cst : f32 to vector<16x16x128xf32>
    %13 = arith.maximumf %11, %12 : vector<16x16x128xf32>
    %cst_7 = arith.constant 0.000000e+00 : f32
    %14 = vector.broadcast %cst_7 : f32 to vector<18x18x128xf32>
    %c0_8 = arith.constant 0 : index
    %c0_9 = arith.constant 0 : index
    %c0_10 = arith.constant 0 : index
    %15 = vector.load %arg8[%c0_8, %c0_9, %c0_10] : memref<18x18x128xf32, #tpu.memory_space<vmem>>, vector<18x18x128xf32>
    tpu.vector_store %arg8[%c0_8, %c0_9, %c0_10], %14 {strides = array<i32>} : memref<18x18x128xf32, #tpu.memory_space<vmem>>, vector<18x18x128xf32>,
    %c1 = arith.constant 1 : index
    %c1_11 = arith.constant 1 : index
    %c0_12 = arith.constant 0 : index
    %16 = vector.load %arg8[%c1, %c1_11, %c0_12] : memref<18x18x128xf32, #tpu.memory_space<vmem>>, vector<16x16x128xf32>
    tpu.vector_store %arg8[%c1, %c1_11, %c0_12], %13 {strides = array<i32>} : memref<18x18x128xf32, #tpu.memory_space<vmem>>, vector<16x16x128xf32>,
    %c0_13 = arith.constant 0 : index
    %c0_14 = arith.constant 0 : index
    %c0_15 = arith.constant 0 : index
    %17 = vector.load %arg8[%c0_13, %c0_14, %c0_15] : memref<18x18x128xf32, #tpu.memory_space<vmem>>, vector<16x16x128xf32>
    %18 = vector.shape_cast %17 : vector<16x16x128xf32> to vector<256x128xf32>
    %c0_16 = arith.constant 0 : index
    %c1_17 = arith.constant 1 : index
    %c0_18 = arith.constant 0 : index
    %19 = vector.load %arg8[%c0_16, %c1_17, %c0_18] : memref<18x18x128xf32, #tpu.memory_space<vmem>>, vector<16x16x128xf32>
    %20 = vector.shape_cast %19 : vector<16x16x128xf32> to vector<256x128xf32>
    %c0_19 = arith.constant 0 : index
    %c2 = arith.constant 2 : index
    %c0_20 = arith.constant 0 : index
    %21 = vector.load %arg8[%c0_19, %c2, %c0_20] : memref<18x18x128xf32, #tpu.memory_space<vmem>>, vector<16x16x128xf32>
    %22 = vector.shape_cast %21 : vector<16x16x128xf32> to vector<256x128xf32>
    %c1_21 = arith.constant 1 : index
    %c0_22 = arith.constant 0 : index
    %c0_23 = arith.constant 0 : index
    %23 = vector.load %arg8[%c1_21, %c0_22, %c0_23] : memref<18x18x128xf32, #tpu.memory_space<vmem>>, vector<16x16x128xf32>
    %24 = vector.shape_cast %23 : vector<16x16x128xf32> to vector<256x128xf32>
    %c1_24 = arith.constant 1 : index
    %c1_25 = arith.constant 1 : index
    %c0_26 = arith.constant 0 : index
    %25 = vector.load %arg8[%c1_24, %c1_25, %c0_26] : memref<18x18x128xf32, #tpu.memory_space<vmem>>, vector<16x16x128xf32>
    %26 = vector.shape_cast %25 : vector<16x16x128xf32> to vector<256x128xf32>
    %c1_27 = arith.constant 1 : index
    %c2_28 = arith.constant 2 : index
    %c0_29 = arith.constant 0 : index
    %27 = vector.load %arg8[%c1_27, %c2_28, %c0_29] : memref<18x18x128xf32, #tpu.memory_space<vmem>>, vector<16x16x128xf32>
    %28 = vector.shape_cast %27 : vector<16x16x128xf32> to vector<256x128xf32>
    %c2_30 = arith.constant 2 : index
    %c0_31 = arith.constant 0 : index
    %c0_32 = arith.constant 0 : index
    %29 = vector.load %arg8[%c2_30, %c0_31, %c0_32] : memref<18x18x128xf32, #tpu.memory_space<vmem>>, vector<16x16x128xf32>
    %30 = vector.shape_cast %29 : vector<16x16x128xf32> to vector<256x128xf32>
    %c2_33 = arith.constant 2 : index
    %c1_34 = arith.constant 1 : index
    %c0_35 = arith.constant 0 : index
    %31 = vector.load %arg8[%c2_33, %c1_34, %c0_35] : memref<18x18x128xf32, #tpu.memory_space<vmem>>, vector<16x16x128xf32>
    %32 = vector.shape_cast %31 : vector<16x16x128xf32> to vector<256x128xf32>
    %c2_36 = arith.constant 2 : index
    %c2_37 = arith.constant 2 : index
    %c0_38 = arith.constant 0 : index
    %33 = vector.load %arg8[%c2_36, %c2_37, %c0_38] : memref<18x18x128xf32, #tpu.memory_space<vmem>>, vector<16x16x128xf32>
    %34 = vector.shape_cast %33 : vector<16x16x128xf32> to vector<256x128xf32>
    %35 = tpu.concatenate %18, %20, %22, %24, %26, %28, %30, %32, %34 in 1 : vector<256x128xf32>, vector<256x128xf32>, vector<256x128xf32>, vector<256x128xf32>, vector<256x128xf32>, vector<256x128xf32>, vector<256x128xf32>, vector<256x128xf32>, vector<256x128xf32> -> vector<256x1152xf32>
    %36 = arith.truncf %35 : vector<256x1152xf32> to vector<256x1152xbf16>
    %c0_39 = arith.constant 0 : index
    %c0_40 = arith.constant 0 : index
    %37 = vector.load %arg2[%c0_39, %c0_40] : memref<1152x128xbf16, #tpu.memory_space<vmem>>, vector<1152x128xbf16>
    %cst_41 = arith.constant dense<0.000000e+00> : vector<256x128xf32>
    %38 = tpu.matmul %36, %37, %cst_41 {dimension_numbers = #tpu.dot_dimension_numbers<[1], [0], [0], [1], [0, 0, 1, 1], [], []>} : vector<256x1152xbf16>, vector<1152x128xbf16>, vector<256x128xf32> -> vector<256x128xf32>
    %39 = vector.shape_cast %38 : vector<256x128xf32> to vector<16x16x128xf32>
    %c0_42 = arith.constant 0 : index
    %c0_43 = arith.constant 0 : index
    %c0_44 = arith.constant 0 : index
    %c0_45 = arith.constant 0 : index
    %40 = vector.load %arg5[%c0_42, %c0_43, %c0_44, %c0_45] : memref<1x16x16x128xf32, #tpu.memory_space<vmem>>, vector<1x16x16x128xf32>
    %41 = vector.shape_cast %40 : vector<1x16x16x128xf32> to vector<16x16x128xf32>
    %42 = vector.shape_cast %39 : vector<16x16x128xf32> to vector<1x16x16x128xf32>
    tpu.vector_store %arg5[%c0_42, %c0_43, %c0_44, %c0_45], %42 {strides = array<i32>} : memref<1x16x16x128xf32, #tpu.memory_space<vmem>>, vector<1x16x16x128xf32>,
    %cst_46 = arith.constant dense<0.000000e+00> : vector<128xf32>
    %43 = vector.multi_reduction <add>, %38, %cst_46 [0] : vector<256x128xf32> to vector<128xf32>
    %44 = vector.shape_cast %43 : vector<128xf32> to vector<1x128xf32>
    %c0_47 = arith.constant 0 : index
    %c0_48 = arith.constant 0 : index
    %c0_49 = arith.constant 0 : index
    %45 = vector.load %arg6[%c0_47, %c0_48, %c0_49] : memref<1x1x128xf32, #tpu.memory_space<vmem>>, vector<1x1x128xf32>
    %46 = vector.shape_cast %45 : vector<1x1x128xf32> to vector<1x128xf32>
    %47 = vector.shape_cast %44 : vector<1x128xf32> to vector<1x1x128xf32>
    tpu.vector_store %arg6[%c0_47, %c0_48, %c0_49], %47 {strides = array<i32>} : memref<1x1x128xf32, #tpu.memory_space<vmem>>, vector<1x1x128xf32>,
    %48 = arith.mulf %38, %38 : vector<256x128xf32>
    %cst_50 = arith.constant dense<0.000000e+00> : vector<128xf32>
    %49 = vector.multi_reduction <add>, %48, %cst_50 [0] : vector<256x128xf32> to vector<128xf32>
    %50 = vector.shape_cast %49 : vector<128xf32> to vector<1x128xf32>
    %c0_51 = arith.constant 0 : index
    %c0_52 = arith.constant 0 : index
    %c0_53 = arith.constant 0 : index
    %51 = vector.load %arg7[%c0_51, %c0_52, %c0_53] : memref<1x1x128xf32, #tpu.memory_space<vmem>>, vector<1x1x128xf32>
    %52 = vector.shape_cast %51 : vector<1x1x128xf32> to vector<1x128xf32>
    %53 = vector.shape_cast %50 : vector<1x128xf32> to vector<1x1x128xf32>
    tpu.vector_store %arg7[%c0_51, %c0_52, %c0_53], %53 {strides = array<i32>} : memref<1x1x128xf32, #tpu.memory_space<vmem>>, vector<1x1x128xf32>,
    return
  }
  func.func @transform_0(%arg0: i32) -> (i32, i32, i32, i32) {
    %c0_i32 = arith.constant 0 : i32
    %c0_i32_0 = arith.constant 0 : i32
    %c0_i32_1 = arith.constant 0 : i32
    %c0_i32_2 = arith.constant 0 : i32
    return %arg0, %c0_i32, %c0_i32_0, %c0_i32_1 : i32, i32, i32, i32
  }
  func.func @transform_1(%arg0: i32) -> (i32, i32) {
    %c0_i32 = arith.constant 0 : i32
    %c0_i32_0 = arith.constant 0 : i32
    %c0_i32_1 = arith.constant 0 : i32
    return %c0_i32, %c0_i32_0 : i32, i32
  }
  func.func @transform_2(%arg0: i32) -> (i32, i32) {
    %c0_i32 = arith.constant 0 : i32
    %c0_i32_0 = arith.constant 0 : i32
    %c0_i32_1 = arith.constant 0 : i32
    return %c0_i32, %c0_i32_0 : i32, i32
  }
  func.func @transform_3(%arg0: i32) -> (i32, i32) {
    %c0_i32 = arith.constant 0 : i32
    %c0_i32_0 = arith.constant 0 : i32
    %c0_i32_1 = arith.constant 0 : i32
    return %c0_i32, %c0_i32_0 : i32, i32
  }
  func.func @transform_4(%arg0: i32) -> (i32, i32, i32, i32) {
    %c0_i32 = arith.constant 0 : i32
    %c0_i32_0 = arith.constant 0 : i32
    %c0_i32_1 = arith.constant 0 : i32
    %c0_i32_2 = arith.constant 0 : i32
    return %arg0, %c0_i32, %c0_i32_0, %c0_i32_1 : i32, i32, i32, i32
  }
  func.func @transform_5(%arg0: i32) -> (i32, i32, i32) {
    %c0_i32 = arith.constant 0 : i32
    %c0_i32_0 = arith.constant 0 : i32
    %c0_i32_1 = arith.constant 0 : i32
    return %arg0, %c0_i32, %c0_i32_0 : i32, i32, i32
  }
  func.func @transform_6(%arg0: i32) -> (i32, i32, i32) {
    %c0_i32 = arith.constant 0 : i32
    %c0_i32_0 = arith.constant 0 : i32
    %c0_i32_1 = arith.constant 0 : i32
    return %arg0, %c0_i32, %c0_i32_0 : i32, i32, i32
  }
}

</mosaic_0001>

<bundles_post_ra>
// kernel: conv_block_forward.5
= control target key start
LH: loop header
LB: loop body
LE: loop exit
PB: predicated region body
PF: predicated region fallthrough
CT: control target
= control target key end

     0   :  { %s451_s12 = smov 0   ;;  %s610_s0 = inlined_call_operand.vmem [shape: f32[2,16,16,128], index: 0, kind: input, shape index: {}]   ;;  %s611_s1 = inlined_call_operand.vmem [shape: f32[1,128], index: 1, kind: input, shape index: {}]   ;;  %s612_s2 = inlined_call_operand.vmem [shape: f32[1,128], index: 2, kind: input, shape index: {}]   ;;  %s613_s3 = inlined_call_operand.vmem [shape: f32[2,16,16,128], index: 3, kind: output, shape index: {}]  }
   0x1 LB: > { %s400_s13 = sadd.s32 4294967295, %s429_s12   ;;  %p404_p0 = scmp.ge.s32.totalorder %s429_s12, 1  ;;  %s429_s12 = sphi %s451_s12, %s13_s12  }
   0x2   : > { %p137_p1 = scmp.lt.s32.totalorder %s429_s12, 3 }
   0x4   : > { %p138_p2 = pnand %p404_p0, %p137_p1 }
   0x5   : > { %p161_p3 = scmp.lt.s32.totalorder (!%p138_p2), %s400_s13, 1 }
   0x6   : > { %141 = sbr.rel (%p138_p2) target bundleno = 44 (0x2c), region = 32 }
   0xb   : > { %s615_s13 = smov (!%p161_p3, %s400_s13), 1  ;;  %v462_v0 = vld [vmem:[%s611_s1] ss:$0 sm:$0xff] }
   0xc   : > { %s413_s14 = sshll.u32 %s615_s13, 8  ;;  %v472_v1 = vld [vmem:[%s612_s2] ss:$0 sm:$0xff] }
   0xd   : > { %s467_s19 = scalar_lea.vmem %s610_s0, %s413_s14  ;;  %s495_s24 = scalar_lea.vmem %s613_s3, %s413_s14 }
   0xe   : > { %v171_v2 = vld [vmem:[%s467_s19] sm:$0xff]  ;;  %v172_v3 = vld [vmem:[%s467_s19 + $0x8] sm:$0xff]  ;;  %v173_v4 = vld [vmem:[%s467_s19 + $0x10] sm:$0xff] }
   0xf   : > { %v210_v5 = vmul.f32 %v462_v0, %v171_v2  ;;  %v211_v6 = vmul.f32 %v462_v0, %v172_v3  ;;  %v212_v7 = vmul.f32 %v462_v0, %v173_v4  ;;  %v174_v8 = vld [vmem:[%s467_s19 + $0x18] sm:$0xff]  ;;  %v175_v9 = vld [vmem:[%s467_s19 + $0x20] sm:$0xff]  ;;  %v176_v10 = vld [vmem:[%s467_s19 + $0x28] sm:$0xff] }
  0x10   : > { %v213_v11 = vmul.f32 %v462_v0, %v174_v8  ;;  %v214_v12 = vmul.f32 %v462_v0, %v175_v9  ;;  %v215_v13 = vmul.f32 %v462_v0, %v176_v10  ;;  %v177_v14 = vld [vmem:[%s467_s19 + $0x30] sm:$0xff]  ;;  %v178_v15 = vld [vmem:[%s467_s19 + $0x38] sm:$0xff]  ;;  %v179_v24 = vld [vmem:[%s467_s19 + $0x40] sm:$0xff] }
  0x11   : > { %v249_v16 = vadd.f32 %v472_v1, %v210_v5  ;;  %v250_v17 = vadd.f32 %v472_v1, %v211_v6  ;;  %v251_v18 = vadd.f32 %v472_v1, %v212_v7  ;;  %v216_v19 = vmul.f32 %v462_v0, %v177_v14  ;;  %v180_v25 = vld [vmem:[%s467_s19 + $0x48] sm:$0xff]  ;;  %v181_v26 = vld [vmem:[%s467_s19 + $0x50] sm:$0xff]  ;;  %v182_v31 = vld [vmem:[%s467_s19 + $0x58] sm:$0xff] }
  0x12   : > { %v252_v20 = vadd.f32 %v472_v1, %v213_v11  ;;  %v253_v21 = vadd.f32 %v472_v1, %v214_v12  ;;  %v254_v22 = vadd.f32 %v472_v1, %v215_v13  ;;  %v217_v23 = vmul.f32 %v462_v0, %v178_v15  ;;  %v183_v32 = vld [vmem:[%s467_s19 + $0x60] sm:$0xff]  ;;  %v184_v33 = vld [vmem:[%s467_s19 + $0x68] sm:$0xff]  ;;  %v185_v38 = vld [vmem:[%s467_s19 + $0x70] sm:$0xff] }
  0x13   : > { %v281_v27 = vmax.f32 %v249_v16, 0.0  ;;  %v282_v28 = vmax.f32 %v250_v17, 0.0  ;;  %v283_v29 = vmax.f32 %v251_v18, 0.0  ;;  %v255_v30 = vadd.f32 %v472_v1, %v216_v19  ;;  %v186_v43 = vld [vmem:[%s467_s19 + $0x78] sm:$0xff]  ;;  %v187_v56 = vld [vmem:[%s467_s19 + $0x80] sm:$0xff]  ;;  %v188_v57 = vld [vmem:[%s467_s19 + $0x88] sm:$0xff] }
  0x14   : > { %v284_v34 = vmax.f32 %v252_v20, 0.0  ;;  %v285_v35 = vmax.f32 %v253_v21, 0.0  ;;  %v286_v36 = vmax.f32 %v254_v22, 0.0  ;;  %v256_v37 = vadd.f32 %v472_v1, %v217_v23  ;;  %v189_v58 = vld [vmem:[%s467_s19 + $0x90] sm:$0xff]  ;;  %v190_v63 = vld [vmem:[%s467_s19 + $0x98] sm:$0xff]  ;;  %v191_v2 = vld [vmem:[%s467_s19 + $0xa0] sm:$0xff] }
  0x15   : > { %313 = vst [vmem:[%s495_s24] sm:$0xff] %v281_v27  ;;  %314 = vst [vmem:[%s495_s24 + $0x8] sm:$0xff] %v282_v28  ;;  %v287_v39 = vmax.f32 %v255_v30, 0.0  ;;  %v218_v40 = vmul.f32 %v462_v0, %v179_v24  ;;  %v219_v41 = vmul.f32 %v462_v0, %v180_v25  ;;  %v220_v42 = vmul.f32 %v462_v0, %v181_v26  ;;  %v192_v3 = vld [vmem:[%s467_s19 + $0xa8] sm:$0xff]  ;;  %v193_v8 = vld [vmem:[%s467_s19 + $0xb0] sm:$0xff] }
  0x16   : > { %315 = vst [vmem:[%s495_s24 + $0x10] sm:$0xff] %v283_v29  ;;  %316 = vst [vmem:[%s495_s24 + $0x18] sm:$0xff] %v284_v34  ;;  %v288_v44 = vmax.f32 %v256_v37, 0.0  ;;  %v221_v45 = vmul.f32 %v462_v0, %v182_v31  ;;  %v222_v46 = vmul.f32 %v462_v0, %v183_v32  ;;  %v223_v47 = vmul.f32 %v462_v0, %v184_v33  ;;  %v194_v13 = vld [vmem:[%s467_s19 + $0xb8] sm:$0xff]  ;;  %v195_v26 = vld [vmem:[%s467_s19 + $0xc0] sm:$0xff] }
  0x17   : > { %317 = vst [vmem:[%s495_s24 + $0x20] sm:$0xff] %v285_v35  ;;  %318 = vst [vmem:[%s495_s24 + $0x28] sm:$0xff] %v286_v36  ;;  %v257_v48 = vadd.f32 %v472_v1, %v218_v40  ;;  %v258_v49 = vadd.f32 %v472_v1, %v219_v41  ;;  %v259_v50 = vadd.f32 %v472_v1, %v220_v42  ;;  %v196_v27 = vld [vmem:[%s467_s19 + $0xc8] sm:$0xff]  ;;  %v197_v28 = vld [vmem:[%s467_s19 + $0xd0] sm:$0xff] }
  0x18   : > { %319 = vst [vmem:[%s495_s24 + $0x30] sm:$0xff] %v287_v39  ;;  %v224_v51 = vmul.f32 %v462_v0, %v185_v38  ;;  %320 = vst [vmem:[%s495_s24 + $0x38] sm:$0xff] %v288_v44  ;;  %v260_v52 = vadd.f32 %v472_v1, %v221_v45  ;;  %v261_v53 = vadd.f32 %v472_v1, %v222_v46  ;;  %v198_v33 = vld [vmem:[%s467_s19 + $0xd8] sm:$0xff]  ;;  %v199_v34 = vld [vmem:[%s467_s19 + $0xe0] sm:$0xff] }
  0x19   : > { %v262_v54 = vadd.f32 %v472_v1, %v223_v47  ;;  %v225_v55 = vmul.f32 %v462_v0, %v186_v43  ;;  %v289_v59 = vmax.f32 %v257_v48, 0.0  ;;  %v290_v60 = vmax.f32 %v258_v49, 0.0  ;;  %v200_v35 = vld [vmem:[%s467_s19 + $0xe8] sm:$0xff]  ;;  %v201_v40 = vld [vmem:[%s467_s19 + $0xf0] sm:$0xff]  ;;  %v202_v45 = vld [vmem:[%s467_s19 + $0xf8] sm:$0xff] }
  0x1a   : > { %v291_v61 = vmax.f32 %v259_v50, 0.0  ;;  %v263_v62 = vadd.f32 %v472_v1, %v224_v51  ;;  %v292_v4 = vmax.f32 %v260_v52, 0.0  ;;  %v293_v5 = vmax.f32 %v261_v53, 0.0 }
  0x1b   : > { %v294_v6 = vmax.f32 %v262_v54, 0.0  ;;  %v264_v7 = vadd.f32 %v472_v1, %v225_v55  ;;  %321 = vst [vmem:[%s495_s24 + $0x40] sm:$0xff] %v289_v59  ;;  %322 = vst [vmem:[%s495_s24 + $0x48] sm:$0xff] %v290_v60  ;;  %v226_v10 = vmul.f32 %v462_v0, %v187_v56  ;;  %v227_v11 = vmul.f32 %v462_v0, %v188_v57 }
  0x1c   : > { %323 = vst [vmem:[%s495_s24 + $0x50] sm:$0xff] %v291_v61  ;;  %v295_v9 = vmax.f32 %v263_v62, 0.0  ;;  %v228_v12 = vmul.f32 %v462_v0, %v189_v58  ;;  %324 = vst [vmem:[%s495_s24 + $0x58] sm:$0xff] %v292_v4  ;;  %v229_v15 = vmul.f32 %v462_v0, %v190_v63  ;;  %v230_v16 = vmul.f32 %v462_v0, %v191_v2 }
  0x1d   : > { %325 = vst [vmem:[%s495_s24 + $0x60] sm:$0xff] %v293_v5  ;;  %326 = vst [vmem:[%s495_s24 + $0x68] sm:$0xff] %v294_v6  ;;  %v296_v14 = vmax.f32 %v264_v7, 0.0  ;;  %v231_v17 = vmul.f32 %v462_v0, %v192_v3  ;;  %v265_v18 = vadd.f32 %v472_v1, %v226_v10  ;;  %v266_v19 = vadd.f32 %v472_v1, %v227_v11 }
  0x1e   : > { %327 = vst [vmem:[%s495_s24 + $0x70] sm:$0xff] %v295_v9  ;;  %v267_v20 = vadd.f32 %v472_v1, %v228_v12  ;;  %v232_v21 = vmul.f32 %v462_v0, %v193_v8  ;;  %v268_v22 = vadd.f32 %v472_v1, %v229_v15  ;;  %v269_v23 = vadd.f32 %v472_v1, %v230_v16 }
  0x1f   : > { %328 = vst [vmem:[%s495_s24 + $0x78] sm:$0xff] %v296_v14  ;;  %v270_v24 = vadd.f32 %v472_v1, %v231_v17  ;;  %v233_v25 = vmul.f32 %v462_v0, %v194_v13  ;;  %v297_v29 = vmax.f32 %v265_v18, 0.0  ;;  %v298_v30 = vmax.f32 %v266_v19, 0.0 }
  0x20   : > { %v299_v31 = vmax.f32 %v267_v20, 0.0  ;;  %v271_v32 = vadd.f32 %v472_v1, %v232_v21  ;;  %v300_v36 = vmax.f32 %v268_v22, 0.0  ;;  %v301_v37 = vmax.f32 %v269_v23, 0.0 }
  0x21   : > { %v302_v38 = vmax.f32 %v270_v24, 0.0  ;;  %v272_v39 = vadd.f32 %v472_v1, %v233_v25  ;;  %329 = vst [vmem:[%s495_s24 + $0x80] sm:$0xff] %v297_v29  ;;  %330 = vst [vmem:[%s495_s24 + $0x88] sm:$0xff] %v298_v30  ;;  %v234_v42 = vmul.f32 %v462_v0, %v195_v26  ;;  %v235_v43 = vmul.f32 %v462_v0, %v196_v27 }
  0x22   : > { %331 = vst [vmem:[%s495_s24 + $0x90] sm:$0xff] %v299_v31  ;;  %v303_v41 = vmax.f32 %v271_v32, 0.0  ;;  %v236_v44 = vmul.f32 %v462_v0, %v197_v28  ;;  %332 = vst [vmem:[%s495_s24 + $0x98] sm:$0xff] %v300_v36  ;;  %v237_v47 = vmul.f32 %v462_v0, %v198_v33  ;;  %v238_v48 = vmul.f32 %v462_v0, %v199_v34 }
  0x23   : > { %333 = vst [vmem:[%s495_s24 + $0xa0] sm:$0xff] %v301_v37  ;;  %334 = vst [vmem:[%s495_s24 + $0xa8] sm:$0xff] %v302_v38  ;;  %v304_v46 = vmax.f32 %v272_v39, 0.0  ;;  %v239_v49 = vmul.f32 %v462_v0, %v200_v35  ;;  %v273_v50 = vadd.f32 %v472_v1, %v234_v42  ;;  %v274_v51 = vadd.f32 %v472_v1, %v235_v43 }
  0x24   : > { %335 = vst [vmem:[%s495_s24 + $0xb0] sm:$0xff] %v303_v41  ;;  %v275_v52 = vadd.f32 %v472_v1, %v236_v44  ;;  %v240_v53 = vmul.f32 %v462_v0, %v201_v40  ;;  %v276_v54 = vadd.f32 %v472_v1, %v237_v47  ;;  %v277_v55 = vadd.f32 %v472_v1, %v238_v48 }
  0x25   : > { %336 = vst [vmem:[%s495_s24 + $0xb8] sm:$0xff] %v304_v46  ;;  %v278_v56 = vadd.f32 %v472_v1, %v239_v49  ;;  %v241_v57 = vmul.f32 %v462_v0, %v202_v45  ;;  %v305_v58 = vmax.f32 %v273_v50, 0.0  ;;  %v306_v59 = vmax.f32 %v274_v51, 0.0 }
  0x26   : > { %v307_v60 = vmax.f32 %v275_v52, 0.0  ;;  %v279_v61 = vadd.f32 %v472_v1, %v240_v53  ;;  %v308_v62 = vmax.f32 %v276_v54, 0.0  ;;  %v309_v63 = vmax.f32 %v277_v55, 0.0 }
  0x27   : > { %v310_v2 = vmax.f32 %v278_v56, 0.0  ;;  %v280_v3 = vadd.f32 %v472_v1, %v241_v57  ;;  %337 = vst [vmem:[%s495_s24 + $0xc0] sm:$0xff] %v305_v58  ;;  %338 = vst [vmem:[%s495_s24 + $0xc8] sm:$0xff] %v306_v59 }
  0x28   : > { %339 = vst [vmem:[%s495_s24 + $0xd0] sm:$0xff] %v307_v60  ;;  %v311_v4 = vmax.f32 %v279_v61, 0.0  ;;  %340 = vst [vmem:[%s495_s24 + $0xd8] sm:$0xff] %v308_v62 }
  0x29   : > { %341 = vst [vmem:[%s495_s24 + $0xe0] sm:$0xff] %v309_v63  ;;  %342 = vst [vmem:[%s495_s24 + $0xe8] sm:$0xff] %v310_v2  ;;  %v312_v0 = vmax.f32 %v280_v3, 0.0 }
  0x2a   : > { %343 = vst [vmem:[%s495_s24 + $0xf0] sm:$0xff] %v311_v4 }
  0x2b   : > { %344 = vst [vmem:[%s495_s24 + $0xf8] sm:$0xff] %v312_v0 }
  0x2c PF: > { %s13_s12 = sadd.s32 1, %s429_s12  }
  0x2d   : > { %p10_p4 = scmp.ge.s32.totalorder %s13_s12, 4  }
  0x2f   :  { %12 = sbr.rel (!%p10_p4) target bundleno = 1 (0x1), region = 62 }

// kernel: conv_block_forward.3
= control target key start
LH: loop header
LB: loop body
LE: loop exit
PB: predicated region body
PF: predicated region fallthrough
CT: control target
= control target key end

     0   :  { %s3132_s15 = smov 0   ;;  %s4144_s0 = inlined_call_operand.vmem [shape: f32[2,16,16,128], index: 0, kind: input, shape index: {}]   ;;  %s4145_s1 = inlined_call_operand.vmem [shape: bf16[1152,128], index: 1, kind: input, shape index: {}]   ;;  %s4146_s2 = inlined_call_operand.vmem [shape: f32[2,16,16,128], index: 2, kind: output, shape index: {0}]   ;;  %s4147_s3 = inlined_call_operand.vmem [shape: f32[2,1,128], index: 3, kind: output, shape index: {1}]   ;;  %s4148_s4 = inlined_call_operand.vmem [shape: f32[2,1,128], index: 4, kind: output, shape index: {2}]  }
   0x1 LB: > { %s2394_s16 = sadd.s32 4294967295, %s3103_s15   ;;  %p2398_p0 = scmp.ge.s32.totalorder %s3103_s15, 1  ;;  %s3103_s15 = sphi %s3132_s15, %s15_s15  }
   0x2   : > { %p167_p1 = scmp.lt.s32.totalorder %s3103_s15, 3 }
   0x4   : > { %p168_p2 = pnand %p2398_p0, %p167_p1 }
   0x6   : > { %171 = sbr.rel (%p168_p2) target bundleno = 551 (0x227), region = 28 }
   0xb   : > { %v3024_v0 = vld [vmem:[%s4145_s1 + $0x78] sm:$0xff]   ;;  %v3105_v2 = vmov 0.0   ;;  %v3026_v3 = vld [vmem:[%s4145_s1 + $0x70] sm:$0xff]   ;;  %p199_p3 = scmp.lt.s32.totalorder %s2394_s16, 1  ;;  %v3028_v5 = vld [vmem:[%s4145_s1 + $0x68] sm:$0xff]   ;;  %v3106_v46 = vmov 0.0|0.0  }
   0xc   : > { %v3025_v1 = vld [vmem:[%s4145_s1 + $0x38] sm:$0xff]   ;;  %248 = vst [vmem:[#allocation2] sm:$0xff] %v3105_v2  ;;  %249 = vst [vmem:[#allocation2 + $0x8] sm:$0xff] %v3105_v2  ;;  %2479 = vmatprep.subr.bf16.mxu0 %v3024_v0  ;;  %2999 = vmatprep.subr.bf16.mxu1 %v3024_v0  ;;  %v3027_v4 = vld [vmem:[%s4145_s1 + $0x30] sm:$0xff]  }
   0xd   : > { %250 = vst [vmem:[#allocation2 + $0x10] sm:$0x3] %v3105_v2  ;;  %251 = vst [vmem:[#allocation2 + $0x18] sm:$0xff] %v3105_v2  ;;  %2480 = vmatpush3.bf16.msra.mxu0 %v3025_v1  ;;  %3007 = vmatpush3.bf16.msra.mxu1 %v3025_v1  ;;  %s4172_s16 = smov (!%p199_p3, %s2394_s16), 1  ;;  %v3029_v6 = vld [vmem:[%s4145_s1 + $0x28] sm:$0xff]   ;;  %v3030_v7 = vld [vmem:[%s4145_s1 + $0x60] sm:$0xff]  }
   0xe   : > { %252 = vst [vmem:[#allocation2 + $0x20] sm:$0xff] %v3105_v2  ;;  %253 = vst [vmem:[#allocation2 + $0x28] sm:$0x3] %v3105_v2  ;;  %2481 = vmatprep.subr.bf16.mxu0 %v3026_v3  ;;  %3000 = vmatprep.subr.bf16.mxu1 %v3026_v3  ;;  %s2477_s5 = sshll.u32 %s4172_s16, 8  ;;  %v3031_v8 = vld [vmem:[%s4145_s1 + $0x20] sm:$0xff]   ;;  %v3032_v9 = vld [vmem:[%s4145_s1 + $0x58] sm:$0xff]   ;;  %s211_s9 = scalar_lea.vmem %s4147_s3, %s4172_s16 }
   0xf   : > { %254 = vst [vmem:[#allocation2 + $0x30] sm:$0xff] %v3105_v2  ;;  %255 = vst [vmem:[#allocation2 + $0x38] sm:$0xff] %v3105_v2  ;;  %s3179_s12 = scalar_lea.vmem %s4144_s0, %s2477_s5  ;;  %v3033_v10 = vld [vmem:[%s4145_s1 + $0x18] sm:$0xff]   ;;  %v3034_v11 = vld [vmem:[%s4145_s1 + $0x50] sm:$0xff]   ;;  %s4005_s7 = scalar_lea.vmem %s4146_s2, %s2477_s5 }
  0x10   : > { %256 = vst [vmem:[#allocation2 + $0x40] sm:$0x3] %v3105_v2  ;;  %257 = vst [vmem:[#allocation2 + $0x48] sm:$0xff] %v3105_v2  ;;  %v238_v14 = vld [vmem:[%s3179_s12 + $0xb0] sm:$0xff]  ;;  %v239_v16 = vld [vmem:[%s3179_s12 + $0xb8] sm:$0xff]  ;;  %s214_s13 = scalar_lea.vmem %s4148_s4, %s4172_s16 }
  0x11   : > { %258 = vst [vmem:[#allocation2 + $0x50] sm:$0xff] %v3105_v2  ;;  %259 = vst [vmem:[#allocation2 + $0x58] sm:$0x3] %v3105_v2  ;;  %2482 = vmatpush3.bf16.msra.mxu0 %v3027_v4  ;;  %3008 = vmatpush3.bf16.msra.mxu1 %v3027_v4  ;;  %v733_v17 = vpack.c.bf16 %v239_v16, %v238_v14  ;;  %v3035_v18 = vld [vmem:[%s4145_s1 + $0x10] sm:$0xff]   ;;  %v3036_v19 = vld [vmem:[%s4145_s1 + $0x48] sm:$0xff]  }
  0x12   : > { %260 = vst [vmem:[#allocation2 + $0x60] sm:$0xff] %v3105_v2  ;;  %261 = vst [vmem:[#allocation2 + $0x68] sm:$0xff] %v3105_v2  ;;  %2483 = vmatprep.subr.bf16.mxu0 %v3028_v5  ;;  %3001 = vmatprep.subr.bf16.mxu1 %v3028_v5  ;;  %v3037_v20 = vld [vmem:[%s4145_s1 + $0x8] sm:$0xff]   ;;  %v216_v21 = vld [vmem:[%s3179_s12] sm:$0xff] }
  0x13   : > { %262 = vst [vmem:[#allocation2 + $0x70] sm:$0x3] %v3105_v2  ;;  %263 = vst [vmem:[#allocation2 + $0x78] sm:$0xff] %v3105_v2  ;;  %v367_v12 = vld [vmem:[#allocation2 + $0x1] sm:$0xff]  ;;  %1472 = vmatprep.mubr.bf16.mxu1 %v733_v17  ;;  %v3040_v28 = vld [vmem:[%s4145_s1 + $0xf8] sm:$0xff]  }
  0x14   : > { %264 = vst [vmem:[#allocation2 + $0x80] sm:$0xff] %v3105_v2  ;;  %265 = vst [vmem:[#allocation2 + $0x88] sm:$0x3] %v3105_v2  ;;  %v368_v13 = vld [vmem:[#allocation2 + $0x9] sm:$0xff]  ;;  %v3038_v23 = vld [vmem:[%s4145_s1 + $0x40] sm:$0xff]  }
  0x15   : > { %266 = vst [vmem:[#allocation2 + $0x90] sm:$0xff] %v3105_v2  ;;  %267 = vst [vmem:[#allocation2 + $0x98] sm:$0xff] %v3105_v2  ;;  %2484 = vmatpush3.bf16.msra.mxu0 %v3029_v6  ;;  %3009 = vmatpush3.bf16.msra.mxu1 %v3029_v6  ;;  %v625_v15 = vpack.c.bf16 %v368_v13, %v367_v12  ;;  %v217_v22 = vld [vmem:[%s3179_s12 + $0x8] sm:$0xff]  ;;  %v240_v24 = vld [vmem:[%s3179_s12 + $0xc0] sm:$0xff] }
  0x16   : > { %268 = vst [vmem:[#allocation2 + $0xa0] sm:$0x3] %v3105_v2  ;;  %269 = vst [vmem:[#allocation2 + $0xa8] sm:$0xff] %v3105_v2  ;;  %2485 = vmatprep.subr.bf16.mxu0 %v3030_v7  ;;  %3002 = vmatprep.subr.bf16.mxu1 %v3030_v7  ;;  %v241_v25 = vld [vmem:[%s3179_s12 + $0xc8] sm:$0xff]  ;;  %v3039_v26 = vld [vmem:[%s4145_s1] sm:$0xff]   ;;  %v3225_v35 = vpack.c.bf16 %v217_v22, %v216_v21 }
  0x17   : > { %270 = vst [vmem:[#allocation2 + $0xb0] sm:$0xff] %v3105_v2  ;;  %271 = vst [vmem:[#allocation2 + $0xb8] sm:$0x3] %v3105_v2  ;;  %1376 = vmatprep.mubr.bf16.mxu0 %v625_v15  ;;  %v3041_v30 = vld [vmem:[%s4145_s1 + $0x178] sm:$0xff]   ;;  %v3044_v34 = vld [vmem:[%s4145_s1 + $0xf0] sm:$0xff]   ;;  %v742_v39 = vpack.c.bf16 %v241_v25, %v240_v24 }
  0x18   : > { %272 = vst [vmem:[#allocation2 + $0xc0] sm:$0xff] %v3105_v2  ;;  %273 = vst [vmem:[#allocation2 + $0xc8] sm:$0xff] %v3105_v2  ;;  %v3042_v32 = vld [vmem:[%s4145_s1 + $0xb8] sm:$0xff]   ;;  %v3049_v36 = vld [vmem:[%s4145_s1 + $0x170] sm:$0xff]  }
  0x19   : > { %274 = vst [vmem:[#allocation2 + $0xd0] sm:$0x3] %v3105_v2  ;;  %275 = vst [vmem:[#allocation2 + $0xd8] sm:$0xff] %v3105_v2  ;;  %2486 = vmatpush3.bf16.msra.mxu0 %v3031_v8  ;;  %3010 = vmatpush3.bf16.msra.mxu1 %v3031_v8  ;;  %v3043_v33 = vld [vmem:[%s4145_s1 + $0x138] sm:$0xff]   ;;  %v218_v37 = vld [vmem:[%s3179_s12 + $0x10] sm:$0xff] }
  0x1a   : > { %276 = vst [vmem:[#allocation2 + $0xe0] sm:$0xff] %v3105_v2  ;;  %277 = vst [vmem:[#allocation2 + $0xe8] sm:$0x3] %v3105_v2  ;;  %2487 = vmatprep.subr.bf16.mxu0 %v3032_v9  ;;  %3003 = vmatprep.subr.bf16.mxu1 %v3032_v9  ;;  %v3045_v38 = vld [vmem:[%s4145_s1 + $0xb0] sm:$0xff]   ;;  %v219_v43 = vld [vmem:[%s3179_s12 + $0x18] sm:$0xff] }
  0x1b   : > { %278 = vst [vmem:[#allocation2 + $0xf0] sm:$0xff] %v3105_v2  ;;  %279 = vst [vmem:[#allocation2 + $0xf8] sm:$0xff] %v3105_v2  ;;  %v3051_v42 = vld [vmem:[%s4145_s1 + $0x130] sm:$0xff]   ;;  %v243_v45 = vld [vmem:[%s3179_s12 + $0xd8] sm:$0xff]  ;;  %v3255_v56 = vpack.c.bf16 %v219_v43, %v218_v37 }
  0x1c   : > { %280 = vst [vmem:[#allocation2 + $0x100] sm:$0x3] %v3105_v2  ;;  %281 = vst [vmem:[#allocation2 + $0x108] sm:$0xff] %v3105_v2  ;;  %v242_v44 = vld [vmem:[%s3179_s12 + $0xd0] sm:$0xff]  ;;  %v3046_v49 = vld [vmem:[%s4145_s1 + $0xe8] sm:$0xff]  }
  0x1d   : > { %282 = vst [vmem:[#allocation2 + $0x110] sm:$0xff] %v3105_v2  ;;  %283 = vst [vmem:[#allocation2 + $0x118] sm:$0x3] %v3105_v2  ;;  %2488 = vmatpush3.bf16.msra.mxu0 %v3033_v10  ;;  %3011 = vmatpush3.bf16.msra.mxu1 %v3033_v10  ;;  %v3047_v50 = vld [vmem:[%s4145_s1 + $0xa8] sm:$0xff]   ;;  %v220_v53 = vld [vmem:[%s3179_s12 + $0x20] sm:$0xff]  ;;  %v751_v59 = vpack.c.bf16 %v243_v45, %v242_v44 }
  0x1e   : > { %284 = vst [vmem:[#allocation2 + $0x120] sm:$0xff] %v3105_v2  ;;  %285 = vst [vmem:[#allocation2 + $0x128] sm:$0xff] %v3105_v2  ;;  %2489 = vmatprep.subr.bf16.mxu0 %v3034_v11  ;;  %3004 = vmatprep.subr.bf16.mxu1 %v3034_v11  ;;  %v221_v54 = vld [vmem:[%s3179_s12 + $0x28] sm:$0xff]  ;;  %v244_v55 = vld [vmem:[%s3179_s12 + $0xe0] sm:$0xff] }
  0x1f   : > { %286 = vst [vmem:[#allocation2 + $0x130] sm:$0x3] %v3105_v2  ;;  %287 = vst [vmem:[#allocation2 + $0x138] sm:$0xff] %v3105_v2  ;;  %v245_v57 = vld [vmem:[%s3179_s12 + $0xe8] sm:$0xff]  ;;  %v3048_v58 = vld [vmem:[%s4145_s1 + $0xe0] sm:$0xff]   ;;  %v3283_v7 = vpack.c.bf16 %v221_v54, %v220_v53 }
  0x20   : > { %288 = vst [vmem:[#allocation2 + $0x140] sm:$0xff] %v3105_v2  ;;  %289 = vst [vmem:[#allocation2 + $0x148] sm:$0x3] %v3105_v2  ;;  %v3050_v60 = vld [vmem:[%s4145_s1 + $0xa0] sm:$0xff]   ;;  %v3052_v0 = vld [vmem:[%s4145_s1 + $0xd8] sm:$0xff]   ;;  %v760_v9 = vpack.c.bf16 %v245_v57, %v244_v55 }
  0x21   : > { %290 = vst [vmem:[#allocation2 + $0x150] sm:$0xff] %v3105_v2  ;;  %291 = vst [vmem:[#allocation2 + $0x158] sm:$0xff] %v3105_v2  ;;  %2490 = vmatpush3.bf16.msra.mxu0 %v3035_v18  ;;  %3012 = vmatpush3.bf16.msra.mxu1 %v3035_v18  ;;  %v3057_v1 = vld [vmem:[%s4145_s1 + $0x168] sm:$0xff]   ;;  %v3053_v6 = vld [vmem:[%s4145_s1 + $0x98] sm:$0xff]  }
  0x22   : > { %292 = vst [vmem:[#allocation2 + $0x160] sm:$0x3] %v3105_v2  ;;  %293 = vst [vmem:[#allocation2 + $0x168] sm:$0xff] %v3105_v2  ;;  %2491 = vmatprep.subr.bf16.mxu0 %v3036_v19  ;;  %3005 = vmatprep.subr.bf16.mxu1 %v3036_v19  ;;  %v3059_v3 = vld [vmem:[%s4145_s1 + $0x128] sm:$0xff]   ;;  %v3054_v8 = vld [vmem:[%s4145_s1 + $0xd0] sm:$0xff]  }
  0x23   : > { %294 = vst [vmem:[#allocation2 + $0x170] sm:$0xff] %v3105_v2  ;;  %295 = vst [vmem:[#allocation2 + $0x178] sm:$0x3] %v3105_v2  ;;  %v222_v10 = vld [vmem:[%s3179_s12 + $0x30] sm:$0xff]  ;;  %v223_v11 = vld [vmem:[%s3179_s12 + $0x38] sm:$0xff] }
  0x24   : > { %296 = vst [vmem:[#allocation2 + $0x180] sm:$0xff] %v3105_v2  ;;  %297 = vst [vmem:[#allocation2 + $0x188] sm:$0xff] %v3105_v2  ;;  %v3055_v12 = vld [vmem:[%s4145_s1 + $0x90] sm:$0xff]   ;;  %v3064_v18 = vld [vmem:[%s4145_s1 + $0x160] sm:$0xff]  }
  0x25   : > { %298 = vst [vmem:[#allocation2 + $0x190] sm:$0x3] %v3105_v2  ;;  %299 = vst [vmem:[#allocation2 + $0x198] sm:$0xff] %v3105_v2  ;;  %2492 = vmatpush3.bf16.msra.mxu0 %v3037_v20  ;;  %3013 = vmatpush3.bf16.msra.mxu1 %v3037_v20  ;;  %v3065_v19 = vld [vmem:[%s4145_s1 + $0x120] sm:$0xff]  }
  0x26   : > { %300 = vst [vmem:[#allocation2 + $0x1a0] sm:$0xff] %v3105_v2  ;;  %301 = vst [vmem:[#allocation2 + $0x1a8] sm:$0x3] %v3105_v2  ;;  %2493 = vmatprep.subr.bf16.mxu0 %v3038_v23  ;;  %3006 = vmatprep.subr.bf16.mxu1 %v3038_v23  ;;  %v224_v20 = vld [vmem:[%s3179_s12 + $0x40] sm:$0xff] }
  0x27   : > { %325 = vst [vmem:[#allocation2 + $0x121] sm:$0xff] %v238_v14  ;;  %326 = vst [vmem:[#allocation2 + $0x129] sm:$0xff] %v239_v16  ;;  %v3056_v16 = vld [vmem:[%s4145_s1 + $0xc8] sm:$0xff]  }
  0x28   : > { %303 = vst [vmem:[#allocation2 + $0x19] sm:$0xff] %v216_v21  ;;  %304 = vst [vmem:[#allocation2 + $0x21] sm:$0xff] %v217_v22  ;;  %v225_v21 = vld [vmem:[%s3179_s12 + $0x48] sm:$0xff] }
  0x29   : > { %327 = vst [vmem:[#allocation2 + $0x139] sm:$0xff] %v240_v24  ;;  %328 = vst [vmem:[#allocation2 + $0x141] sm:$0xff] %v241_v25  ;;  %2494 = vmatpush3.bf16.msra.mxu0 %v3039_v26  ;;  %3014 = vmatpush3.bf16.msra.mxu1 %v3039_v26  ;;  %v3312_v24 = vld [vmem:[%s3179_s12 + $0x50] sm:$0xff]  ;;  %v3058_v25 = vld [vmem:[%s4145_s1 + $0x88] sm:$0xff]   ;;  %v3317_v26 = vpack.c.bf16 %v223_v11, %v222_v10 }
  0x2a   : > { %2591 = vmatprep.subr.bf16.mxu1 %v3040_v28  ;;  %2703 = vmatprep.subr.bf16.mxu0 %v3041_v30  ;;  %305 = vst [vmem:[#allocation2 + $0x31] sm:$0xff] %v218_v37  ;;  %306 = vst [vmem:[#allocation2 + $0x39] sm:$0xff] %v219_v43  ;;  %v3060_v28 = vld [vmem:[%s4145_s1 + $0xc0] sm:$0xff]   ;;  %v3068_v37 = vld [vmem:[%s4145_s1 + $0x118] sm:$0xff]  }
  0x2b   : > { %329 = vst [vmem:[#allocation2 + $0x151] sm:$0xff] %v242_v44  ;;  %330 = vst [vmem:[#allocation2 + $0x159] sm:$0xff] %v243_v45  ;;  %v3063_v43 = vld [vmem:[%s4145_s1 + $0x1b8] sm:$0xff]   ;;  %v3353_v44 = vpack.c.bf16 %v225_v21, %v224_v20  ;;  %v3067_v45 = vld [vmem:[%s4145_s1 + $0x1f0] sm:$0xff]  }
  0x2c   : > { %1377 = vmatmul.mubr.bf16.vlgmr.msra.gmra.mxu0 %v3106_v46  ;;  %307 = vst [vmem:[#allocation2 + $0x49] sm:$0xff] %v220_v53  ;;  %308 = vst [vmem:[#allocation2 + $0x51] sm:$0xff] %v221_v54  ;;  %v3071_v54 = vld [vmem:[%s4145_s1 + $0x110] sm:$0xff]  }
  0x2d   : > { %2704 = vmatpush3.bf16.msra.mxu0 %v3043_v33  ;;  %1384 = vmatprep.mubr.bf16.mxu0 %v3225_v35  ;;  %331 = vst [vmem:[#allocation2 + $0x169] sm:$0xff] %v244_v55  ;;  %332 = vst [vmem:[#allocation2 + $0x171] sm:$0xff] %v245_v57  ;;  %v400_v33 = vld [vmem:[#allocation2 + $0xa] sm:$0xff] }
  0x2e   : > { %v359_v27 = vld [vmem:[#allocation2 + $0x120] sm:$0xff]  ;;  %v360_v29 = vld [vmem:[#allocation2 + $0x128] sm:$0xff]  ;;  %2705 = vmatprep.subr.bf16.mxu0 %v3049_v36  ;;  %309 = vst [vmem:[#allocation2 + $0x61] sm:$0xff] %v222_v10  ;;  %310 = vst [vmem:[#allocation2 + $0x69] sm:$0xff] %v223_v11 }
  0x2f   : > { %v3214_v31 = vpack.c.bf16 %v360_v29, %v359_v27  ;;  %v337_v40 = vld [vmem:[#allocation2 + $0x18] sm:$0xff]  ;;  %v338_v41 = vld [vmem:[#allocation2 + $0x20] sm:$0xff]  ;;  %311 = vst [vmem:[#allocation2 + $0x79] sm:$0xff] %v224_v20  ;;  %312 = vst [vmem:[#allocation2 + $0x81] sm:$0xff] %v225_v21 }
  0x30   : > { %v361_v47 = vld [vmem:[#allocation2 + $0x138] sm:$0xff]  ;;  %v362_v48 = vld [vmem:[#allocation2 + $0x140] sm:$0xff]  ;;  %v3248_v51 = vpack.c.bf16 %v338_v41, %v337_v40  ;;  %313 = vst [vmem:[#allocation2 + $0x91] sm:$0xff] %v3312_v24  ;;  %v3344_v40 = vld [vmem:[%s3179_s12 + $0x68] sm:$0xff] }
  0x31   : > { %1473 = vmatmul.mubr.bf16.vlgmr.msra.gmra.mxu1 %v3214_v31  ;;  %v3250_v52 = vpack.c.bf16 %v362_v48, %v361_v47  ;;  %2706 = vmatpush3.bf16.msra.mxu0 %v3051_v42  ;;  %v339_v61 = vld [vmem:[#allocation2 + $0x30] sm:$0xff]  ;;  %v340_v62 = vld [vmem:[#allocation2 + $0x38] sm:$0xff]  ;;  %v3061_v29 = vld [vmem:[%s4145_s1 + $0x80] sm:$0xff]   ;;  %316 = vst [vmem:[#allocation2 + $0xb1] sm:$0xff] %v3344_v40 }
  0x32   : > { %2592 = vmatpush3.bf16.msra.mxu1 %v3042_v32  ;;  %1480 = vmatprep.mubr.bf16.mxu1 %v742_v39  ;;  %v363_v63 = vld [vmem:[#allocation2 + $0x150] sm:$0xff]  ;;  %v364_v2 = vld [vmem:[#allocation2 + $0x158] sm:$0xff]  ;;  %v3276_v4 = vpack.c.bf16 %v340_v62, %v339_v61  ;;  %v399_v32 = vld [vmem:[#allocation2 + $0x2] sm:$0xff] }
  0x33   : > { %2593 = vmatprep.subr.bf16.mxu1 %v3044_v34  ;;  %2707 = vmatprep.subr.bf16.mxu0 %v3057_v1  ;;  %v3278_v5 = vpack.c.bf16 %v364_v2, %v363_v63  ;;  %v341_v13 = vld [vmem:[#allocation2 + $0x48] sm:$0xff]  ;;  %v342_v14 = vld [vmem:[#allocation2 + $0x50] sm:$0xff]  ;;  %v227_v27 = vld [vmem:[%s3179_s12 + $0x58] sm:$0xff]  ;;  %v626_v42 = vpack.c.bf16 %v400_v33, %v399_v32 }
  0x34   : > { %1385 = vmatmul.mubr.bf16.gmra.mxu0 %v3248_v51  ;;  %v365_v15 = vld [vmem:[#allocation2 + $0x168] sm:$0xff]  ;;  %v366_v17 = vld [vmem:[#allocation2 + $0x170] sm:$0xff]  ;;  %v3307_v22 = vpack.c.bf16 %v342_v14, %v341_v13  ;;  %314 = vst [vmem:[#allocation2 + $0x99] sm:$0xff] %v227_v27  ;;  %v3066_v34 = vld [vmem:[%s4145_s1 + $0x158] sm:$0xff]   ;;  %v3397_v63 = vpack.c.bf16 %v227_v27, %v3312_v24 }
  0x35   : > { %1392 = vmatprep.mubr.bf16.mxu0 %v3255_v56  ;;  %2708 = vmatpush3.bf16.msra.mxu0 %v3059_v3  ;;  %v3309_v23 = vpack.c.bf16 %v366_v17, %v365_v15  ;;  %v343_v30 = vld [vmem:[#allocation2 + $0x60] sm:$0xff]  ;;  %v344_v36 = vld [vmem:[#allocation2 + $0x68] sm:$0xff]  ;;  %v3069_v48 = vld [vmem:[%s4145_s1 + $0x1b0] sm:$0xff]  }
  0x36   : > { %2594 = vmatpush3.bf16.msra.mxu1 %v3045_v38  ;;  %2709 = vmatprep.subr.bf16.mxu0 %v3064_v18  ;;  %v3062_v38 = vld [vmem:[%s4145_s1 + $0x1f8] sm:$0xff]   ;;  %v3341_v39 = vld [vmem:[%s3179_s12 + $0x60] sm:$0xff]  ;;  %v3347_v41 = vpack.c.bf16 %v344_v36, %v343_v30  ;;  %v3072_v57 = vld [vmem:[%s4145_s1 + $0x1e8] sm:$0xff]  }
  0x37   : > { %2595 = vmatprep.subr.bf16.mxu1 %v3046_v49  ;;  %315 = vst [vmem:[#allocation2 + $0xa9] sm:$0xff] %v3341_v39  ;;  %v401_v46 = vld [vmem:[#allocation2 + $0x1a] sm:$0xff]  ;;  %v402_v47 = vld [vmem:[#allocation2 + $0x22] sm:$0xff]  ;;  %v3070_v49 = vld [vmem:[%s4145_s1 + $0x150] sm:$0xff]  }
  0x38   : > { %v345_v53 = vld [vmem:[#allocation2 + $0x78] sm:$0xff]  ;;  %v346_v55 = vld [vmem:[#allocation2 + $0x80] sm:$0xff]  ;;  %v3389_v61 = vpack.c.bf16 %v402_v47, %v401_v46  ;;  %v3073_v62 = vld [vmem:[%s4145_s1 + $0x1a8] sm:$0xff]  }
  0x39   : > { %1481 = vmatmul.mubr.bf16.gmra.mxu1 %v3250_v52  ;;  %2710 = vmatpush3.bf16.msra.mxu0 %v3065_v19  ;;  %v3075_v1 = vld [vmem:[%s4145_s1 + $0x108] sm:$0xff]   ;;  %v3406_v2 = vld [vmem:[%s3179_s12 + $0x90] sm:$0xff]  ;;  %v3076_v11 = vld [vmem:[%s4145_s1 + $0x1e0] sm:$0xff]  }
  0x3a   : > { %2596 = vmatpush3.bf16.msra.mxu1 %v3047_v50  ;;  %1488 = vmatprep.mubr.bf16.mxu1 %v751_v59  ;;  %v3365_v50 = vld [vmem:[%s3179_s12 + $0x70] sm:$0xff]  ;;  %v3385_v59 = vld [vmem:[%s3179_s12 + $0x88] sm:$0xff]  ;;  %321 = vst [vmem:[#allocation2 + $0xf1] sm:$0xff] %v3406_v2  ;;  %v3078_v15 = vld [vmem:[%s4145_s1 + $0x140] sm:$0xff]  }
  0x3b   : > { %2597 = vmatprep.subr.bf16.mxu1 %v3048_v58  ;;  %2711 = vmatprep.subr.bf16.mxu0 %v3066_v34  ;;  %317 = vst [vmem:[#allocation2 + $0xc1] sm:$0xff] %v3365_v50  ;;  %v3382_v58 = vld [vmem:[%s3179_s12 + $0x80] sm:$0xff]  ;;  %320 = vst [vmem:[#allocation2 + $0xe1] sm:$0xff] %v3385_v59  ;;  %v403_v3 = vld [vmem:[#allocation2 + $0x32] sm:$0xff] }
  0x3c   : > { %1393 = vmatmul.mubr.bf16.gmra.mxu0 %v3276_v4  ;;  %319 = vst [vmem:[#allocation2 + $0xd9] sm:$0xff] %v3382_v58  ;;  %v348_v10 = vld [vmem:[#allocation2 + $0x98] sm:$0xff]  ;;  %v3079_v17 = vld [vmem:[%s4145_s1 + $0x100] sm:$0xff]   ;;  %v3441_v19 = vld [vmem:[%s3179_s12 + $0xa8] sm:$0xff]  ;;  %v3491_v47 = vpack.c.bf16 %v3385_v59, %v3382_v58 }
  0x3d   : > { %1400 = vmatprep.mubr.bf16.mxu0 %v3283_v7  ;;  %2712 = vmatpush3.bf16.msra.mxu0 %v3068_v37  ;;  %v3438_v18 = vld [vmem:[%s3179_s12 + $0xa0] sm:$0xff]  ;;  %324 = vst [vmem:[#allocation2 + $0x111] sm:$0xff] %v3441_v19  ;;  %v405_v24 = vld [vmem:[#allocation2 + $0x4a] sm:$0xff]  ;;  %v3080_v27 = vld [vmem:[%s4145_s1 + $0x1d8] sm:$0xff]  }
  0x3e   : > { %2598 = vmatpush3.bf16.msra.mxu1 %v3050_v60  ;;  %2713 = vmatprep.subr.bf16.mxu0 %v3070_v49  ;;  %v3387_v60 = vpack.c.bf16 %v346_v55, %v345_v53  ;;  %323 = vst [vmem:[#allocation2 + $0x109] sm:$0xff] %v3438_v18  ;;  %v349_v20 = vld [vmem:[#allocation2 + $0xa8] sm:$0xff]  ;;  %v350_v21 = vld [vmem:[#allocation2 + $0xb0] sm:$0xff]  ;;  %v409_v49 = vld [vmem:[#allocation2 + $0x7a] sm:$0xff] }
  0x3f   : > { %2599 = vmatprep.subr.bf16.mxu1 %v3052_v0  ;;  %v3074_v0 = vld [vmem:[%s4145_s1 + $0x148] sm:$0xff]   ;;  %v3461_v30 = vpack.c.bf16 %v350_v21, %v349_v20  ;;  %v3083_v34 = vld [vmem:[%s4145_s1 + $0x1d0] sm:$0xff]  }
  0x40   : > { %v3085_v36 = vld [vmem:[%s4145_s1 + $0x190] sm:$0xff]   ;;  %v3088_v46 = vld [vmem:[%s4145_s1 + $0x188] sm:$0xff]  }
  0x41   : > { %1489 = vmatmul.mubr.bf16.gmra.mxu1 %v3278_v5  ;;  %2714 = vmatpush3.bf16.msra.mxu0 %v3071_v54  ;;  %v246_v53 = vld [vmem:[%s3179_s12 + $0xf0] sm:$0xff] }
  0x42   : > { %2600 = vmatpush3.bf16.msra.mxu1 %v3053_v6  ;;  %1496 = vmatprep.mubr.bf16.mxu1 %v760_v9  ;;  %v404_v6 = vld [vmem:[#allocation2 + $0x3a] sm:$0xff]  ;;  %v347_v9 = vld [vmem:[#allocation2 + $0x90] sm:$0xff]  ;;  %333 = vst [vmem:[#allocation2 + $0x181] sm:$0xff] %v246_v53 }
  0x43   : > { %2601 = vmatprep.subr.bf16.mxu1 %v3054_v8  ;;  %2715 = vmatprep.subr.bf16.mxu0 %v3074_v0  ;;  %v3409_v8 = vld [vmem:[%s3179_s12 + $0x98] sm:$0xff]  ;;  %v3423_v13 = vpack.c.bf16 %v348_v10, %v347_v9  ;;  %v3425_v14 = vpack.c.bf16 %v404_v6, %v403_v3  ;;  %v351_v37 = vld [vmem:[#allocation2 + $0xc0] sm:$0xff] }
  0x44   : > { %1401 = vmatmul.mubr.bf16.gmra.mxu0 %v3307_v22  ;;  %322 = vst [vmem:[#allocation2 + $0xf9] sm:$0xff] %v3409_v8  ;;  %v353_v54 = vld [vmem:[#allocation2 + $0xd8] sm:$0xff]  ;;  %v354_v55 = vld [vmem:[#allocation2 + $0xe0] sm:$0xff] }
  0x45   : > { %1408 = vmatprep.mubr.bf16.mxu0 %v3317_v26  ;;  %2716 = vmatpush3.bf16.msra.mxu0 %v3075_v1  ;;  %v3505_v58 = vpack.c.bf16 %v354_v55, %v353_v54  ;;  %v411_v0 = vld [vmem:[#allocation2 + $0x92] sm:$0xff]  ;;  %v412_v6 = vld [vmem:[#allocation2 + $0x9a] sm:$0xff] }
  0x46   : > { %2602 = vmatpush3.bf16.msra.mxu1 %v3055_v12  ;;  %v3077_v12 = vld [vmem:[%s4145_s1 + $0x1a0] sm:$0xff]   ;;  %2717 = vmatprep.subr.bf16.mxu0 %v3078_v15  ;;  %v355_v1 = vld [vmem:[#allocation2 + $0xf0] sm:$0xff]  ;;  %v3519_v10 = vpack.c.bf16 %v412_v6, %v411_v0 }
  0x47   : > { %2603 = vmatprep.subr.bf16.mxu1 %v3056_v16  ;;  %v3432_v16 = vpack.c.bf16 %v3344_v40, %v3341_v39  ;;  %v408_v39 = vld [vmem:[#allocation2 + $0x6a] sm:$0xff]  ;;  %v414_v15 = vld [vmem:[#allocation2 + $0xb2] sm:$0xff]  ;;  %v428_v54 = vld [vmem:[#allocation2 + $0x15a] sm:$0xff] }
  0x49   : > { %1497 = vmatmul.mubr.bf16.gmra.mxu1 %v3309_v23  ;;  %2718 = vmatpush3.bf16.msra.mxu0 %v3079_v17  ;;  %v461_v55 = vld [vmem:[#allocation2 + $0x180] sm:$0xff] }
  0x4a   : > { %2604 = vmatpush3.bf16.msra.mxu1 %v3058_v25  ;;  %1537 = vmatprep.mubr.bf16.mxu1 %v3248_v51  ;;  %v3368_v51 = vld [vmem:[%s3179_s12 + $0x78] sm:$0xff] }
  0x4b   : > { %2605 = vmatprep.subr.bf16.mxu1 %v3060_v28  ;;  %318 = vst [vmem:[#allocation2 + $0xc9] sm:$0xff] %v3368_v51  ;;  %v406_v25 = vld [vmem:[#allocation2 + $0x52] sm:$0xff]  ;;  %v3467_v33 = vpack.c.bf16 %v3368_v51, %v3365_v50  ;;  %v410_v50 = vld [vmem:[#allocation2 + $0x82] sm:$0xff] }
  0x4c   : > { %1409 = vmatmul.mubr.bf16.gmra.mxu0 %v3347_v41  ;;  %v3455_v28 = vld [vmem:[%s4145_s1 + $0x238] sm:$0xff]   ;;  %v3463_v32 = vpack.c.bf16 %v406_v25, %v405_v24  ;;  %v3091_v51 = vld [vmem:[%s4145_s1 + $0x180] sm:$0xff]   ;;  %v3507_v59 = vpack.c.bf16 %v410_v50, %v409_v49  ;;  %v3084_v25 = vld [vmem:[%s4145_s1 + $0x230] sm:$0xff]  }
  0x4d   : > { %1416 = vmatprep.mubr.bf16.mxu0 %v3353_v44  ;;  %2951 = vmatprep.subr.bf16.mxu0 %v3455_v28  ;;  %v356_v3 = vld [vmem:[#allocation2 + $0xf8] sm:$0xff] }
  0x4e   : > { %2606 = vmatpush3.bf16.msra.mxu1 %v3061_v29  ;;  %v3082_v29 = vld [vmem:[%s4145_s1 + $0x198] sm:$0xff]   ;;  %v3517_v9 = vpack.c.bf16 %v356_v3, %v355_v1  ;;  %v429_v1 = vld [vmem:[#allocation2 + $0x16a] sm:$0xff] }
  0x4f   : > { %2815 = vmatprep.subr.bf16.mxu1 %v3062_v38  ;;  %v407_v38 = vld [vmem:[#allocation2 + $0x62] sm:$0xff]  ;;  %v425_v50 = vld [vmem:[#allocation2 + $0x13a] sm:$0xff] }
  0x51   : > { %1538 = vmatmul.mubr.bf16.vlgmr.msra.gmra.mxu1 %v626_v42  ;;  %v3086_v42 = vld [vmem:[%s4145_s1 + $0x1c8] sm:$0xff]  }
  0x52   : > { %2816 = vmatpush3.bf16.msra.mxu1 %v3063_v43  ;;  %1545 = vmatprep.mubr.bf16.mxu1 %v3276_v4  ;;  %v352_v40 = vld [vmem:[#allocation2 + $0xc8] sm:$0xff] }
  0x53   : > { %2817 = vmatprep.subr.bf16.mxu1 %v3067_v45  ;;  %v3482_v43 = vpack.c.bf16 %v352_v40, %v351_v37  ;;  %v3484_v45 = vpack.c.bf16 %v408_v39, %v407_v38  ;;  %v3093_v38 = vld [vmem:[%s4145_s1 + $0x210] sm:$0xff]   ;;  %v3094_v40 = vld [vmem:[%s4145_s1 + $0x208] sm:$0xff]  }
  0x54   : > { %1417 = vmatmul.mubr.bf16.gmra.mxu0 %v3387_v60  ;;  %v422_v39 = vld [vmem:[#allocation2 + $0x112] sm:$0xff] }
  0x55   : > { %1424 = vmatprep.mubr.bf16.mxu0 %v3397_v63 }
  0x56   : > { %2818 = vmatpush3.bf16.msra.mxu1 %v3069_v48  ;;  %v3089_v48 = vld [vmem:[%s4145_s1 + $0x1c0] sm:$0xff]  }
  0x57   : > { %2819 = vmatprep.subr.bf16.mxu1 %v3072_v57  ;;  %v247_v57 = vld [vmem:[%s3179_s12 + $0xf8] sm:$0xff] }
  0x58   : > { %334 = vst [vmem:[#allocation2 + $0x189] sm:$0xff] %v247_v57  ;;  %v3533_v21 = vpack.c.bf16 %v247_v57, %v246_v53  ;;  %v427_v53 = vld [vmem:[#allocation2 + $0x152] sm:$0xff] }
  0x59   : > { %1546 = vmatmul.mubr.bf16.gmra.mxu1 %v3389_v61  ;;  %v3597_v0 = vpack.c.bf16 %v428_v54, %v427_v53 }
  0x5a   : > { %1553 = vmatprep.mubr.bf16.mxu1 %v3307_v22  ;;  %2820 = vmatpush3.bf16.msra.mxu1 %v3073_v62  ;;  %v3511_v62 = vpack.c.bf16 %v3409_v8, %v3406_v2  ;;  %v3523_v2 = vpack.c.bf16 %v3441_v19, %v3438_v18  ;;  %v413_v8 = vld [vmem:[#allocation2 + $0xaa] sm:$0xff]  ;;  %v415_v18 = vld [vmem:[#allocation2 + $0xc2] sm:$0xff] }
  0x5b   : > { %2821 = vmatprep.subr.bf16.mxu1 %v3076_v11  ;;  %v357_v11 = vld [vmem:[#allocation2 + $0x108] sm:$0xff]  ;;  %v3531_v20 = vpack.c.bf16 %v414_v15, %v413_v8 }
  0x5c   : > { %1425 = vmatmul.mubr.bf16.gmra.mxu0 %v3423_v13  ;;  %v416_v19 = vld [vmem:[#allocation2 + $0xca] sm:$0xff] }
  0x5d   : > { %1432 = vmatprep.mubr.bf16.mxu0 %v3432_v16  ;;  %v3539_v24 = vpack.c.bf16 %v416_v19, %v415_v18 }
  0x5e   : > { %2822 = vmatpush3.bf16.msra.mxu1 %v3077_v12  ;;  %v358_v12 = vld [vmem:[#allocation2 + $0x110] sm:$0xff] }
  0x5f   : > { %2823 = vmatprep.subr.bf16.mxu1 %v3080_v27  ;;  %v3529_v17 = vpack.c.bf16 %v358_v12, %v357_v11  ;;  %v417_v27 = vld [vmem:[#allocation2 + $0xda] sm:$0xff]  ;;  %v462_v57 = vld [vmem:[#allocation2 + $0x188] sm:$0xff] }
  0x61   : > { %1554 = vmatmul.mubr.bf16.gmra.mxu1 %v3425_v14 }
  0x62   : > { %1561 = vmatprep.mubr.bf16.mxu1 %v3347_v41  ;;  %2824 = vmatpush3.bf16.msra.mxu1 %v3082_v29  ;;  %v418_v29 = vld [vmem:[#allocation2 + $0xe2] sm:$0xff] }
  0x63   : > { %2825 = vmatprep.subr.bf16.mxu1 %v3083_v34  ;;  %v3552_v34 = vpack.c.bf16 %v418_v29, %v417_v27 }
  0x64   : > { %1433 = vmatmul.mubr.bf16.gmra.mxu0 %v3461_v30 }
  0x65   : > { %1440 = vmatprep.mubr.bf16.mxu0 %v3467_v33 }
  0x66   : > { %2826 = vmatpush3.bf16.msra.mxu1 %v3085_v36  ;;  %v3092_v36 = vld [vmem:[%s4145_s1 + $0x218] sm:$0xff]  }
  0x67   : > { %2827 = vmatprep.subr.bf16.mxu1 %v3086_v42 }
  0x69   : > { %1562 = vmatmul.mubr.bf16.gmra.mxu1 %v3463_v32 }
  0x6a   : > { %1569 = vmatprep.mubr.bf16.mxu1 %v3387_v60  ;;  %2828 = vmatpush3.bf16.msra.mxu1 %v3088_v46  ;;  %v3095_v46 = vld [vmem:[%s4145_s1 + $0x200] sm:$0xff]  }
  0x6b   : > { %2829 = vmatprep.subr.bf16.mxu1 %v3089_v48  ;;  %v424_v48 = vld [vmem:[#allocation2 + $0x12a] sm:$0xff] }
  0x6c   : > { %1441 = vmatmul.mubr.bf16.gmra.mxu0 %v3482_v43 }
  0x6d   : > { %1448 = vmatprep.mubr.bf16.mxu0 %v3491_v47 }
  0x6e   : > { %2830 = vmatpush3.bf16.msra.mxu1 %v3091_v51  ;;  %v426_v51 = vld [vmem:[#allocation2 + $0x142] sm:$0xff] }
  0x71   : > { %1570 = vmatmul.mubr.bf16.gmra.mxu1 %v3484_v45 }
  0x72   : > { %1577 = vmatprep.mubr.bf16.mxu1 %v3423_v13 }
  0x74   : > { %1449 = vmatmul.mubr.bf16.gmra.mxu0 %v3505_v58 }
  0x75   : > { %1456 = vmatprep.mubr.bf16.mxu0 %v3511_v62 }
  0x79   : > { %1578 = vmatmul.mubr.bf16.gmra.mxu1 %v3507_v59 }
  0x7a   : > { %1585 = vmatprep.mubr.bf16.mxu1 %v3461_v30 }
  0x7c   : > { %1457 = vmatmul.mubr.bf16.gmra.mxu0 %v3517_v9 }
  0x7d   : > { %1464 = vmatprep.mubr.bf16.mxu0 %v3523_v2 }
  0x81   : > { %1586 = vmatmul.mubr.bf16.gmra.mxu1 %v3519_v10 }
  0x82   : > { %1593 = vmatprep.mubr.bf16.mxu1 %v3482_v43 }
  0x84   : > { %1465 = vmatmul.mubr.bf16.gmra.mxu0 %v3529_v17 }
  0x85   : > { %1698 = vmatprep.mubr.bf16.mxu0 %v3389_v61  ;;  %v3087_v61 = vld [vmem:[%s4145_s1 + $0x228] sm:$0xff]  }
  0x89   : > { %1594 = vmatmul.mubr.bf16.gmra.mxu1 %v3531_v20 }
  0x8a   : > { %1601 = vmatprep.mubr.bf16.mxu1 %v3505_v58 }
  0x8c   : > { %1699 = vmatmul.mubr.bf16.vlgmr.msra.gmra.mxu0 %v3225_v35  ;;  %v3090_v35 = vld [vmem:[%s4145_s1 + $0x220] sm:$0xff]  }
  0x8d   : > { %2952 = vmatpush3.bf16.msra.mxu0 %v3455_v28  ;;  %1706 = vmatprep.mubr.bf16.mxu0 %v3425_v14  ;;  %v419_v14 = vld [vmem:[#allocation2 + $0xf2] sm:$0xff]  ;;  %v420_v28 = vld [vmem:[#allocation2 + $0xfa] sm:$0xff] }
  0x8e   : > { %2953 = vmatprep.subr.bf16.mxu0 %v3084_v25  ;;  %v3564_v37 = vpack.c.bf16 %v420_v28, %v419_v14  ;;  %v491_v14 = vld [vmem:[#allocation2 + $0x169] sm:$0xff]  ;;  %v492_v28 = vld [vmem:[#allocation2 + $0x171] sm:$0xff] }
  0x91   : > { %1602 = vmatmul.mubr.bf16.gmra.mxu1 %v3539_v24  ;;  %2954 = vmatpush3.bf16.msra.mxu0 %v3084_v25 }
  0x92   : > { %1609 = vmatprep.mubr.bf16.mxu1 %v3517_v9  ;;  %2955 = vmatprep.subr.bf16.mxu0 %v3087_v61 }
  0x94   : > { %1707 = vmatmul.mubr.bf16.gmra.mxu0 %v3255_v56 }
  0x95   : > { %1714 = vmatprep.mubr.bf16.mxu0 %v3463_v32  ;;  %2956 = vmatpush3.bf16.msra.mxu0 %v3087_v61  ;;  %v421_v32 = vld [vmem:[#allocation2 + $0x10a] sm:$0xff] }
  0x96   : > { %2957 = vmatprep.subr.bf16.mxu0 %v3090_v35  ;;  %v3576_v42 = vpack.c.bf16 %v422_v39, %v421_v32  ;;  %v525_v32 = vld [vmem:[#allocation2 + $0x182] sm:$0xff]  ;;  %v526_v39 = vld [vmem:[#allocation2 + $0x18a] sm:$0xff] }
  0x99   : > { %1610 = vmatmul.mubr.bf16.gmra.mxu1 %v3552_v34  ;;  %2958 = vmatpush3.bf16.msra.mxu0 %v3090_v35 }
  0x9a   : > { %1617 = vmatprep.mubr.bf16.mxu1 %v3529_v17  ;;  %2959 = vmatprep.subr.bf16.mxu0 %v3092_v36 }
  0x9c   : > { %1715 = vmatmul.mubr.bf16.gmra.mxu0 %v3283_v7 }
  0x9d   : > { %1722 = vmatprep.mubr.bf16.mxu0 %v3484_v45  ;;  %2960 = vmatpush3.bf16.msra.mxu0 %v3092_v36 }
  0x9e   : > { %2961 = vmatprep.subr.bf16.mxu0 %v3093_v38 }
  0xa1   : > { %1618 = vmatmul.mubr.bf16.gmra.mxu1 %v3564_v37  ;;  %2962 = vmatpush3.bf16.msra.mxu0 %v3093_v38 }
  0xa2   : > { %1625 = vmatprep.mubr.bf16.mxu1 %v3214_v31  ;;  %2963 = vmatprep.subr.bf16.mxu0 %v3094_v40  ;;  %v423_v31 = vld [vmem:[#allocation2 + $0x122] sm:$0xff] }
  0xa3   : > { %v3585_v49 = vpack.c.bf16 %v424_v48, %v423_v31 }
  0xa4   : > { %1723 = vmatmul.mubr.bf16.gmra.mxu0 %v3317_v26 }
  0xa5   : > { %1730 = vmatprep.mubr.bf16.mxu0 %v3507_v59  ;;  %2964 = vmatpush3.bf16.msra.mxu0 %v3094_v40 }
  0xa6   : > { %2965 = vmatprep.subr.bf16.mxu0 %v3095_v46 }
  0xa9   : > { %1626 = vmatmul.mubr.bf16.gmra.mxu1 %v3576_v42  ;;  %2966 = vmatpush3.bf16.msra.mxu0 %v3095_v46 }
  0xaa   : > { %1633 = vmatprep.mubr.bf16.mxu1 %v3250_v52  ;;  %v3591_v52 = vpack.c.bf16 %v426_v51, %v425_v50  ;;  %v3653_v50 = vpack.c.bf16 %v492_v28, %v491_v14  ;;  %v3655_v51 = vpack.c.bf16 %v526_v39, %v525_v32 }
  0xac   : > { %1731 = vmatmul.mubr.bf16.gmra.mxu0 %v3353_v44 }
  0xad   : > { %1738 = vmatprep.mubr.bf16.mxu0 %v3519_v10 }
  0xb1   : > { %1634 = vmatmul.mubr.bf16.gmra.mxu1 %v3585_v49 }
  0xb2   : > { %1641 = vmatprep.mubr.bf16.mxu1 %v3278_v5  ;;  %v3599_v5 = vpack.c.bf16 %v462_v57, %v461_v55 }
  0xb4   : > { %1739 = vmatmul.mubr.bf16.gmra.mxu0 %v3397_v63 }
  0xb5   : > { %1746 = vmatprep.mubr.bf16.mxu0 %v3531_v20 }
  0xb9   : > { %1642 = vmatmul.mubr.bf16.gmra.mxu1 %v3591_v52 }
  0xba   : > { %1649 = vmatprep.mubr.bf16.mxu1 %v3309_v23  ;;  %v430_v23 = vld [vmem:[#allocation2 + $0x172] sm:$0xff] }
  0xbb   : > { %v3605_v3 = vpack.c.bf16 %v430_v23, %v429_v1 }
  0xbc   : > { %1747 = vmatmul.mubr.bf16.gmra.mxu0 %v3432_v16 }
  0xbd   : > { %1754 = vmatprep.mubr.bf16.mxu0 %v3539_v24 }
  0xc1   : > { %1650 = vmatmul.mubr.bf16.gmra.mxu1 %v3597_v0 }
  0xc2   : > { %1657 = vmatprep.mubr.bf16.mxu1 %v3599_v5 }
  0xc4   : > { %1755 = vmatmul.mubr.bf16.gmra.mxu0 %v3467_v33 }
  0xc5   : > { %1762 = vmatprep.mubr.bf16.mxu0 %v3552_v34 }
  0xc9   : > { %1658 = vmatmul.mubr.bf16.gmra.mxu1 %v3605_v3 }
  0xca   : > { %1859 = vmatprep.mubr.bf16.mxu1 %v3255_v56  ;;  %v485_v56 = vld [vmem:[#allocation2 + $0x121] sm:$0xff] }
  0xcc   : > { %1763 = vmatmul.mubr.bf16.gmra.mxu0 %v3491_v47 }
  0xcd   : > { %1770 = vmatprep.mubr.bf16.mxu0 %v3564_v37 }
  0xd1   : > { %1860 = vmatmul.mubr.bf16.vlgmr.msra.gmra.mxu1 %v3276_v4  ;;  %v486_v4 = vld [vmem:[#allocation2 + $0x129] sm:$0xff] }
  0xd2   : > { %1867 = vmatprep.mubr.bf16.mxu1 %v3283_v7  ;;  %v3623_v6 = vpack.c.bf16 %v486_v4, %v485_v56  ;;  %v487_v7 = vld [vmem:[#allocation2 + $0x139] sm:$0xff] }
  0xd3   : > { %v592_v56 = vld [vmem:[#allocation2 + $0x32] sm:$0xff]  ;;  %v593_v4 = vld [vmem:[#allocation2 + $0x3a] sm:$0xff] }
  0xd4   : > { %1771 = vmatmul.mubr.bf16.gmra.mxu0 %v3511_v62 }
  0xd5   : > { %1778 = vmatprep.mubr.bf16.mxu0 %v3576_v42 }
  0xd9   : > { %1868 = vmatmul.mubr.bf16.gmra.mxu1 %v3307_v22  ;;  %v488_v22 = vld [vmem:[#allocation2 + $0x141] sm:$0xff] }
  0xda   : > { %1875 = vmatprep.mubr.bf16.mxu1 %v3317_v26  ;;  %v3629_v26 = vpack.c.bf16 %v488_v22, %v487_v7 }
  0xdc   : > { %1779 = vmatmul.mubr.bf16.gmra.mxu0 %v3523_v2 }
  0xdd   : > { %1786 = vmatprep.mubr.bf16.mxu0 %v3585_v49 }
  0xe1   : > { %1876 = vmatmul.mubr.bf16.gmra.mxu1 %v3347_v41 }
  0xe2   : > { %1883 = vmatprep.mubr.bf16.mxu1 %v3353_v44  ;;  %v489_v44 = vld [vmem:[#allocation2 + $0x151] sm:$0xff] }
  0xe4   : > { %1787 = vmatmul.mubr.bf16.gmra.mxu0 %v3623_v6 }
  0xe5   : > { %1794 = vmatprep.mubr.bf16.mxu0 %v3591_v52 }
  0xe9   : > { %1884 = vmatmul.mubr.bf16.gmra.mxu1 %v3387_v60  ;;  %v490_v60 = vld [vmem:[#allocation2 + $0x159] sm:$0xff] }
  0xea   : > { %1891 = vmatprep.mubr.bf16.mxu1 %v3397_v63  ;;  %v3639_v25 = vpack.c.bf16 %v490_v60, %v489_v44  ;;  %v632_v44 = vpack.c.bf16 %v593_v4, %v592_v56 }
  0xec   : > { %v2495_v41 = vpop.f32.mrf.mxu0  ;;  %1795 = vmatmul.mubr.bf16.gmra.mxu0 %v3629_v26 }
  0xed   : > { %1802 = vmatprep.mubr.bf16.mxu0 %v3597_v0 }
  0xee   : > { %v2496_v11 = vpop.f32.mrf.mxu0 }
  0xef   : > { %v3635_v15 = vadd.f32 %v2496_v11, %v2495_v41 }
  0xf0   : > { %v2498_v18 = vpop.f32.mrf.mxu0 }
  0xf1   : > { %v2567_v8 = vpop.f32.mrf.mxu1  ;;  %1892 = vmatmul.mubr.bf16.gmra.mxu1 %v3423_v13 }
  0xf2   : > { %1899 = vmatprep.mubr.bf16.mxu1 %v3432_v16  ;;  %v2499_v27 = vpop.f32.mrf.mxu0 }
  0xf3   : > { %v2568_v12 = vpop.f32.mrf.mxu1  ;;  %v3641_v61 = vadd.f32 %v2499_v27, %v2498_v18  ;;  %v595_v27 = vld [vmem:[#allocation2 + $0x52] sm:$0xff] }
  0xf4   : > { %v3637_v63 = vadd.f32 %v2568_v12, %v2567_v8  ;;  %v2501_v35 = vpop.f32.mrf.mxu0  ;;  %1803 = vmatmul.mubr.bf16.gmra.mxu0 %v3639_v25 }
  0xf5   : > { %v2570_v19 = vpop.f32.mrf.mxu1  ;;  %1810 = vmatprep.mubr.bf16.mxu0 %v3605_v3 }
  0xf6   : > { %v2502_v36 = vpop.f32.mrf.mxu0 }
  0xf7   : > { %v2571_v29 = vpop.f32.mrf.mxu1  ;;  %v3649_v40 = vadd.f32 %v2502_v36, %v2501_v35 }
  0xf8   : > { %v3643_v13 = vadd.f32 %v2571_v29, %v2570_v19  ;;  %v2504_v31 = vpop.f32.mrf.mxu0 }
  0xf9   : > { %v2573_v16 = vpop.f32.mrf.mxu1  ;;  %1900 = vmatmul.mubr.bf16.gmra.mxu1 %v3461_v30 }
  0xfa   : > { %1907 = vmatprep.mubr.bf16.mxu1 %v3467_v33  ;;  %v2505_v30 = vpop.f32.mrf.mxu0 }
  0xfb   : > { %v2574_v38 = vpop.f32.mrf.mxu1  ;;  %v3657_v54 = vadd.f32 %v2505_v30, %v2504_v31 }
  0xfc   : > { %v3651_v46 = vadd.f32 %v2574_v38, %v2573_v16  ;;  %v2507_v55 = vpop.f32.mrf.mxu0  ;;  %1811 = vmatmul.mubr.bf16.gmra.mxu0 %v3653_v50 }
  0xfd   : > { %v2576_v48 = vpop.f32.mrf.mxu1  ;;  %1818 = vmatprep.mubr.bf16.mxu0 %v3655_v51 }
  0xfe   : > { %v2508_v1 = vpop.f32.mrf.mxu0 }
  0xff   : > { %v2577_v53 = vpop.f32.mrf.mxu1  ;;  %v3665_v7 = vadd.f32 %v2508_v1, %v2507_v55 }
 0x100   : > { %v3659_v33 = vadd.f32 %v2577_v53, %v2576_v48  ;;  %v2510_v41 = vpop.f32.mrf.mxu0 }
 0x101   : > { %v2579_v57 = vpop.f32.mrf.mxu1  ;;  %1908 = vmatmul.mubr.bf16.gmra.mxu1 %v3482_v43 }
 0x102   : > { %1915 = vmatprep.mubr.bf16.mxu1 %v3491_v47  ;;  %v2511_v60 = vpop.f32.mrf.mxu0  ;;  %v594_v47 = vld [vmem:[#allocation2 + $0x4a] sm:$0xff] }
 0x103   : > { %v2580_v23 = vpop.f32.mrf.mxu1  ;;  %v3669_v12 = vadd.f32 %v2511_v60, %v2510_v41  ;;  %v641_v38 = vpack.c.bf16 %v595_v27, %v594_v47 }
 0x104   : > { %v3667_v22 = vadd.f32 %v2580_v23, %v2579_v57  ;;  %v2513_v18 = vpop.f32.mrf.mxu0  ;;  %1819 = vmatmul.mubr.bf16.gmra.mxu0 %v3533_v21 }
 0x105   : > { %v2582_v8 = vpop.f32.mrf.mxu1  ;;  %2967 = vmatprep.mubr.bf16.mxu0 %v632_v44 }
 0x106   : > { %v2514_v29 = vpop.f32.mrf.mxu0 }
 0x107   : > { %v2583_v11 = vpop.f32.mrf.mxu1  ;;  %v3676_v16 = vadd.f32 %v2514_v29, %v2513_v18 }
 0x108   : > { %v3671_v43 = vadd.f32 %v2583_v11, %v2582_v8  ;;  %v2516_v28 = vpop.f32.mrf.mxu0 }
 0x109   : > { %v2585_v19 = vpop.f32.mrf.mxu1  ;;  %1916 = vmatmul.mubr.bf16.gmra.mxu1 %v3505_v58 }
 0x10a   : > { %1923 = vmatprep.mubr.bf16.mxu1 %v3511_v62  ;;  %v2517_v32 = vpop.f32.mrf.mxu0 }
 0x10b   : > { %v2586_v35 = vpop.f32.mrf.mxu1  ;;  %v3680_v31 = vadd.f32 %v2517_v32, %v2516_v28  ;;  %v550_v32 = vld [vmem:[#allocation2 + $0x138] sm:$0xff] }
 0x10c   : > { %v3678_v14 = vadd.f32 %v2586_v35, %v2585_v19  ;;  %v2519_v58 = vpop.f32.mrf.mxu0  ;;  %2968 = vmatmul.mubr.bf16.vlgmr.msra.gmra.mxu0 %v641_v38 }
 0x10d   : > { %v2588_v36 = vpop.f32.mrf.mxu1  ;;  %2971 = vmatprep.mubr.bf16.mxu0 %v3484_v45 }
 0x10e   : > { %v2520_v30 = vpop.f32.mrf.mxu0 }
 0x10f   : > { %v2589_v39 = vpop.f32.mrf.mxu1  ;;  %v3687_v55 = vadd.f32 %v2520_v30, %v2519_v58 }
 0x110   : > { %v3682_v48 = vadd.f32 %v2589_v39, %v2588_v36  ;;  %v2522_v1 = vpop.f32.mrf.mxu0 }
 0x111   : > { %v2607_v62 = vpop.f32.mrf.mxu1  ;;  %1924 = vmatmul.mubr.bf16.gmra.mxu1 %v3517_v9 }
 0x112   : > { %1931 = vmatprep.mubr.bf16.mxu1 %v3523_v2  ;;  %v2523_v4 = vpop.f32.mrf.mxu0  ;;  %v548_v2 = vld [vmem:[#allocation2 + $0x120] sm:$0xff] }
 0x113   : > { %v2608_v53 = vpop.f32.mrf.mxu1  ;;  %v3692_v8 = vadd.f32 %v2523_v4, %v2522_v1 }
 0x114   : > { %v2609_v57 = vadd.f32 %v2608_v53, %v2607_v62  ;;  %v2525_v44 = vpop.f32.mrf.mxu0  ;;  %2972 = vmatmul.mubr.bf16.gmra.mxu0 %v3507_v59 }
 0x115   : > { %v2610_v23 = vpop.f32.mrf.mxu1  ;;  %2975 = vmatprep.mubr.bf16.mxu0 %v3519_v10 }
 0x116   : > { %v3690_v56 = vadd.f32 %v2609_v57, %v3635_v15  ;;  %v549_v15 = vld [vmem:[#allocation2 + $0x128] sm:$0xff]  ;;  %v2526_v11 = vpop.f32.mrf.mxu0 }
 0x117   : > { %v2611_v41 = vpop.f32.mrf.mxu1  ;;  %v3701_v19 = vadd.f32 %v2526_v11, %v2525_v44  ;;  %v720_v35 = vpack.c.bf16 %v549_v15, %v548_v2  ;;  %v552_v44 = vld [vmem:[#allocation2 + $0x150] sm:$0xff] }
 0x118   : > { %v2612_v9 = vadd.f32 %v2611_v41, %v2610_v23  ;;  %v2528_v27 = vpop.f32.mrf.mxu0 }
 0x119   : > { %v2613_v60 = vpop.f32.mrf.mxu1  ;;  %1932 = vmatmul.mubr.bf16.gmra.mxu1 %v3529_v17 }
 0x11a   : > { %v3697_v45 = vadd.f32 %v2612_v9, %v3641_v61  ;;  %1939 = vmatprep.mubr.bf16.mxu1 %v3623_v6  ;;  %v2529_v59 = vpop.f32.mrf.mxu0 }
 0x11b   : > { %v2614_v18 = vpop.f32.mrf.mxu1  ;;  %v3706_v28 = vadd.f32 %v2529_v59, %v2528_v27 }
 0x11c   : > { %v2615_v47 = vadd.f32 %v2614_v18, %v2613_v60  ;;  %v2531_v36 = vpop.f32.mrf.mxu0  ;;  %2976 = vmatmul.mubr.bf16.gmra.mxu0 %v3531_v20 }
 0x11d   : > { %v2616_v29 = vpop.f32.mrf.mxu1  ;;  %2979 = vmatprep.mubr.bf16.mxu0 %v3539_v24 }
 0x11e   : > { %v3704_v17 = vadd.f32 %v2615_v47, %v3649_v40  ;;  %v551_v40 = vld [vmem:[#allocation2 + $0x140] sm:$0xff]  ;;  %v2532_v39 = vpop.f32.mrf.mxu0 }
 0x11f   : > { %v2617_v61 = vpop.f32.mrf.mxu1  ;;  %v3714_v62 = vadd.f32 %v2532_v39, %v2531_v36  ;;  %v729_v1 = vpack.c.bf16 %v551_v40, %v550_v32 }
 0x120   : > { %v2618_v6 = vadd.f32 %v2617_v61, %v2616_v29  ;;  %v2534_v53 = vpop.f32.mrf.mxu0 }
 0x121   : > { %v2619_v10 = vpop.f32.mrf.mxu1  ;;  %1940 = vmatmul.mubr.bf16.gmra.mxu1 %v720_v35 }
 0x122   : > { %v3710_v38 = vadd.f32 %v2618_v6, %v3657_v54  ;;  %1947 = vmatprep.mubr.bf16.mxu1 %v3629_v26  ;;  %v2535_v20 = vpop.f32.mrf.mxu0  ;;  %v554_v6 = vld [vmem:[#allocation2 + $0x168] sm:$0xff] }
 0x123   : > { %v2620_v58 = vpop.f32.mrf.mxu1  ;;  %v3719_v4 = vadd.f32 %v2535_v20, %v2534_v53 }
 0x124   : > { %v2621_v30 = vadd.f32 %v2620_v58, %v2619_v10  ;;  %v2537_v41 = vpop.f32.mrf.mxu0  ;;  %2980 = vmatmul.mubr.bf16.gmra.mxu0 %v3552_v34 }
 0x125   : > { %v2622_v57 = vpop.f32.mrf.mxu1  ;;  %2983 = vmatprep.mubr.bf16.mxu0 %v3564_v37 }
 0x126   : > { %v3717_v23 = vadd.f32 %v2621_v30, %v3665_v7  ;;  %v553_v7 = vld [vmem:[#allocation2 + $0x158] sm:$0xff]  ;;  %v2538_v60 = vpop.f32.mrf.mxu0 }
 0x127   : > { %v2623_v54 = vpop.f32.mrf.mxu1  ;;  %v3727_v15 = vadd.f32 %v2538_v60, %v2537_v41  ;;  %v738_v27 = vpack.c.bf16 %v553_v7, %v552_v44  ;;  %v591_v41 = vld [vmem:[#allocation2 + $0x1a1] sm:$0xff] }
 0x128   : > { %v2624_v26 = vadd.f32 %v2623_v54, %v2622_v57  ;;  %v2540_v18 = vpop.f32.mrf.mxu0 }
 0x129   : > { %v2625_v24 = vpop.f32.mrf.mxu1  ;;  %1948 = vmatmul.mubr.bf16.gmra.mxu1 %v729_v1 }
 0x12a   : > { %v3723_v9 = vadd.f32 %v2624_v26, %v3669_v12  ;;  %1955 = vmatprep.mubr.bf16.mxu1 %v3639_v25  ;;  %v2541_v34 = vpop.f32.mrf.mxu0  ;;  %v590_v26 = vld [vmem:[#allocation2 + $0x199] sm:$0xff] }
 0x12b   : > { %v2626_v2 = vpop.f32.mrf.mxu1  ;;  %v3732_v35 = vadd.f32 %v2541_v34, %v2540_v18  ;;  %v623_v34 = vld [vmem:[#allocation2 + $0x1a2] sm:$0xff] }
 0x12c   : > { %v2627_v11 = vadd.f32 %v2626_v2, %v2625_v24  ;;  %v2543_v59 = vpop.f32.mrf.mxu0  ;;  %2984 = vmatmul.mubr.bf16.gmra.mxu0 %v3576_v42 }
 0x12d   : > { %v2628_v47 = vpop.f32.mrf.mxu1  ;;  %2987 = vmatprep.mubr.bf16.mxu0 %v3585_v49 }
 0x12e   : > { %v3730_v29 = vadd.f32 %v2627_v11, %v3676_v16  ;;  %v555_v16 = vld [vmem:[#allocation2 + $0x170] sm:$0xff]  ;;  %v2544_v36 = vpop.f32.mrf.mxu0 }
 0x12f   : > { %v2629_v12 = vpop.f32.mrf.mxu1  ;;  %v3740_v32 = vadd.f32 %v2544_v36, %v2543_v59  ;;  %v747_v30 = vpack.c.bf16 %v555_v16, %v554_v6  ;;  %v3096_v36 = vld [vmem:[#allocation2] sm:$0xff] }
 0x130   : > { %v2630_v25 = vadd.f32 %v2629_v12, %v2628_v47  ;;  %v2546_v39 = vpop.f32.mrf.mxu0 }
 0x131   : > { %v2631_v37 = vpop.f32.mrf.mxu1  ;;  %1956 = vmatmul.mubr.bf16.gmra.mxu1 %v738_v27 }
 0x132   : > { %v3736_v61 = vadd.f32 %v2630_v25, %v3680_v31  ;;  %1963 = vmatprep.mubr.bf16.mxu1 %v3653_v50  ;;  %v2547_v42 = vpop.f32.mrf.mxu0 }
 0x133   : > { %v2632_v10 = vpop.f32.mrf.mxu1  ;;  %v3745_v57 = vadd.f32 %v2547_v42, %v2546_v39 }
 0x134   : > { %v2633_v40 = vadd.f32 %v2632_v10, %v2631_v37  ;;  %v2549_v1 = vpop.f32.mrf.mxu0  ;;  %2988 = vmatmul.mubr.bf16.gmra.mxu0 %v3591_v52  ;;  %v766_v52 = vpack.c.bf16 %v591_v41, %v590_v26  ;;  %v765_v10 = vpack.c.bf16 %v3096_v36, %v3096_v36 }
 0x135   : > { %v2634_v58 = vpop.f32.mrf.mxu1  ;;  %2991 = vmatprep.mubr.bf16.mxu0 %v3597_v0 }
 0x136   : > { %v3743_v53 = vadd.f32 %v2633_v40, %v3687_v55  ;;  %v2550_v54 = vpop.f32.mrf.mxu0 }
 0x137   : > { %v2635_v31 = vpop.f32.mrf.mxu1  ;;  %v3753_v24 = vadd.f32 %v2550_v54, %v2549_v1 }
 0x138   : > { %v2636_v50 = vadd.f32 %v2635_v31, %v2634_v58  ;;  %v2552_v7 = vpop.f32.mrf.mxu0 }
 0x139   : > { %v2637_v49 = vpop.f32.mrf.mxu1  ;;  %1964 = vmatmul.mubr.bf16.gmra.mxu1 %v747_v30 }
 0x13a   : > { %v3749_v20 = vadd.f32 %v2636_v50, %v3692_v8  ;;  %1971 = vmatprep.mubr.bf16.mxu1 %v3533_v21  ;;  %v2553_v11 = vpop.f32.mrf.mxu0 }
 0x13b   : > { %v2638_v55 = vpop.f32.mrf.mxu1  ;;  %v3758_v18 = vadd.f32 %v2553_v11, %v2552_v7 }
 0x13c   : > { %v2639_v44 = vadd.f32 %v2638_v55, %v2637_v49  ;;  %v2555_v47 = vpop.f32.mrf.mxu0  ;;  %2992 = vmatmul.mubr.bf16.gmra.mxu0 %v3605_v3 }
 0x13d   : > { %v2640_v60 = vpop.f32.mrf.mxu1  ;;  %2995 = vmatprep.mubr.bf16.mxu0 %v3655_v51 }
 0x13e   : > { %v3756_v2 = vadd.f32 %v2639_v44, %v3701_v19  ;;  %v622_v19 = vld [vmem:[#allocation2 + $0x19a] sm:$0xff]  ;;  %v2556_v12 = vpop.f32.mrf.mxu0 }
 0x13f   : > { %v2641_v8 = vpop.f32.mrf.mxu1  ;;  %v3766_v59 = vadd.f32 %v2556_v12, %v2555_v47 }
 0x140   : > { %v2642_v21 = vadd.f32 %v2641_v8, %v2640_v60  ;;  %v2558_v6 = vpop.f32.mrf.mxu0 }
 0x141   : > { %v2643_v0 = vpop.f32.mrf.mxu1  ;;  %1972 = vmatmul.mubr.bf16.gmra.mxu1 %v3599_v5  ;;  %v767_v5 = vpack.c.bf16 %v623_v34, %v622_v19 }
 0x142   : > { %v3763_v27 = vadd.f32 %v2642_v21, %v3706_v28  ;;  %1979 = vmatprep.mubr.bf16.mxu1 %v766_v52  ;;  %v2559_v28 = vpop.f32.mrf.mxu0 }
 0x143   : > { %v2644_v25 = vpop.f32.mrf.mxu1  ;;  %v3771_v39 = vadd.f32 %v2559_v28, %v2558_v6 }
 0x144   : > { %v2645_v37 = vadd.f32 %v2644_v25, %v2643_v0  ;;  %v2561_v58 = vpop.f32.mrf.mxu0  ;;  %2996 = vmatmul.mubr.bf16.gmra.mxu0 %v767_v5 }
 0x145   : > { %v2646_v16 = vpop.f32.mrf.mxu1 }
 0x146   : > { %v3769_v3 = vadd.f32 %v2645_v37, %v3714_v62  ;;  %v2562_v31 = vpop.f32.mrf.mxu0 }
 0x147   : > { %v2647_v40 = vpop.f32.mrf.mxu1  ;;  %v3776_v1 = vadd.f32 %v2562_v31, %v2561_v58 }
 0x148   : > { %v2648_v51 = vadd.f32 %v2647_v40, %v2646_v16  ;;  %v2564_v54 = vpop.f32.mrf.mxu0 }
 0x149   : > { %v2649_v30 = vpop.f32.mrf.mxu1  ;;  %1980 = vmatmul.mubr.bf16.gmra.mxu1 %v765_v10 }
 0x14a   : > { %v3774_v42 = vadd.f32 %v2648_v51, %v3719_v4  ;;  %v2565_v26 = vpop.f32.mrf.mxu0 }
 0x14b   : > { %v2650_v50 = vpop.f32.mrf.mxu1  ;;  %v3781_v44 = vadd.f32 %v2565_v26, %v2564_v54 }
 0x14c   : > { %v2651_v49 = vadd.f32 %v2650_v50, %v2649_v30  ;;  %v2719_v52 = vpop.f32.mrf.mxu0 }
 0x14d   : > { %v2652_v62 = vpop.f32.mrf.mxu1 }
 0x14e   : > { %v3779_v55 = vadd.f32 %v2651_v49, %v3727_v15  ;;  %v2720_v8 = vpop.f32.mrf.mxu0 }
 0x14f   : > { %v2653_v41 = vpop.f32.mrf.mxu1  ;;  %v2721_v47 = vadd.f32 %v2720_v8, %v2719_v52 }
 0x150   : > { %v2654_v7 = vadd.f32 %v2653_v41, %v2652_v62  ;;  %v2722_v19 = vpop.f32.mrf.mxu0 }
 0x151   : > { %v2655_v60 = vpop.f32.mrf.mxu1  ;;  %v3790_v15 = vadd.f32 %v2721_v47, %v3690_v56 }
 0x152   : > { %v3784_v4 = vadd.f32 %v2654_v7, %v3732_v35  ;;  %v2723_v25 = vpop.f32.mrf.mxu0 }
 0x153   : > { %v2656_v11 = vpop.f32.mrf.mxu1  ;;  %v2724_v6 = vadd.f32 %v2723_v25, %v2722_v19 }
 0x154   : > { %v2657_v21 = vadd.f32 %v2656_v11, %v2655_v60  ;;  %v2725_v36 = vpop.f32.mrf.mxu0 }
 0x155   : > { %v2658_v0 = vpop.f32.mrf.mxu1  ;;  %v3796_v10 = vadd.f32 %v2724_v6, %v3697_v45 }
 0x156   : > { %v3787_v34 = vadd.f32 %v2657_v21, %v3740_v32  ;;  %v2726_v28 = vpop.f32.mrf.mxu0 }
 0x157   : > { %v2659_v12 = vpop.f32.mrf.mxu1  ;;  %v2727_v32 = vadd.f32 %v2726_v28, %v2725_v36 }
 0x158   : > { %v2660_v37 = vadd.f32 %v2659_v12, %v2658_v0  ;;  %v2728_v58 = vpop.f32.mrf.mxu0 }
 0x159   : > { %v2661_v16 = vpop.f32.mrf.mxu1  ;;  %v3802_v30 = vadd.f32 %v2727_v32, %v3704_v17 }
 0x15a   : > { %v3793_v35 = vadd.f32 %v2660_v37, %v3745_v57  ;;  %v2729_v50 = vpop.f32.mrf.mxu0 }
 0x15b   : > { %v2662_v5 = vpop.f32.mrf.mxu1  ;;  %v2730_v57 = vadd.f32 %v2729_v50, %v2728_v58 }
 0x15c   : > { %v2663_v40 = vadd.f32 %v2662_v5, %v2661_v16  ;;  %v2731_v62 = vpop.f32.mrf.mxu0 }
 0x15d   : > { %v2664_v51 = vpop.f32.mrf.mxu1  ;;  %v3808_v26 = vadd.f32 %v2730_v57, %v3710_v38 }
 0x15e   : > { %v3799_v56 = vadd.f32 %v2663_v40, %v3753_v24  ;;  %v2732_v7 = vpop.f32.mrf.mxu0 }
 0x15f   : > { %v2665_v31 = vpop.f32.mrf.mxu1  ;;  %v2733_v24 = vadd.f32 %v2732_v7, %v2731_v62 }
 0x160   : > { %v2666_v49 = vadd.f32 %v2665_v31, %v2664_v51  ;;  %v2734_v11 = vpop.f32.mrf.mxu0 }
 0x161   : > { %v2667_v54 = vpop.f32.mrf.mxu1  ;;  %v3814_v8 = vadd.f32 %v2733_v24, %v3717_v23 }
 0x162   : > { %v3805_v45 = vadd.f32 %v2666_v49, %v3758_v18  ;;  %v2735_v47 = vpop.f32.mrf.mxu0 }
 0x163   : > { %v2668_v41 = vpop.f32.mrf.mxu1  ;;  %v2736_v18 = vadd.f32 %v2735_v47, %v2734_v11 }
 0x164   : > { %v2669_v60 = vadd.f32 %v2668_v41, %v2667_v54  ;;  %v2737_v12 = vpop.f32.mrf.mxu0 }
 0x165   : > { %v2670_v52 = vpop.f32.mrf.mxu1  ;;  %v3820_v25 = vadd.f32 %v2736_v18, %v3723_v9 }
 0x166   : > { %v3811_v17 = vadd.f32 %v2669_v60, %v3766_v59  ;;  %v2738_v6 = vpop.f32.mrf.mxu0 }
 0x167   : > { %v2671_v21 = vpop.f32.mrf.mxu1  ;;  %v2739_v59 = vadd.f32 %v2738_v6, %v2737_v12 }
 0x168   : > { %v2672_v0 = vadd.f32 %v2671_v21, %v2670_v52  ;;  %v2740_v5 = vpop.f32.mrf.mxu0 }
 0x169   : > { %v2673_v19 = vpop.f32.mrf.mxu1  ;;  %v3826_v28 = vadd.f32 %v2739_v59, %v3730_v29 }
 0x16a   : > { %v3817_v38 = vadd.f32 %v2672_v0, %v3771_v39  ;;  %v2741_v32 = vpop.f32.mrf.mxu0 }
 0x16b   : > { %v2674_v37 = vpop.f32.mrf.mxu1  ;;  %v2742_v39 = vadd.f32 %v2741_v32, %v2740_v5 }
 0x16c   : > { %v2675_v16 = vadd.f32 %v2674_v37, %v2673_v19  ;;  %v2743_v31 = vpop.f32.mrf.mxu0 }
 0x16d   : > { %v2676_v36 = vpop.f32.mrf.mxu1  ;;  %v3832_v50 = vadd.f32 %v2742_v39, %v3736_v61 }
 0x16e   : > { %v3823_v23 = vadd.f32 %v2675_v16, %v3776_v1  ;;  %v2744_v57 = vpop.f32.mrf.mxu0 }
 0x16f   : > { %v2677_v40 = vpop.f32.mrf.mxu1  ;;  %v2745_v1 = vadd.f32 %v2744_v57, %v2743_v31 }
 0x170   : > { %v2678_v51 = vadd.f32 %v2677_v40, %v2676_v36  ;;  %v2746_v41 = vpop.f32.mrf.mxu0 }
 0x171   : > { %v2679_v58 = vpop.f32.mrf.mxu1  ;;  %v3838_v7 = vadd.f32 %v2745_v1, %v3743_v53 }
 0x172   : > { %v3829_v9 = vadd.f32 %v2678_v51, %v3781_v44  ;;  %v2747_v24 = vpop.f32.mrf.mxu0 }
 0x173   : > { %v2680_v49 = vpop.f32.mrf.mxu1  ;;  %v2748_v44 = vadd.f32 %v2747_v24, %v2746_v41 }
 0x174   : > { %v2681_v54 = vadd.f32 %v2680_v49, %v2679_v58  ;;  %v2749_v21 = vpop.f32.mrf.mxu0 }
 0x175   : > { %v2682_v62 = vpop.f32.mrf.mxu1  ;;  %v3844_v47 = vadd.f32 %v2748_v44, %v3749_v20 }
 0x176   : > { %v3835_v29 = vadd.f32 %v2681_v54, %v3637_v63  ;;  %v2750_v18 = vpop.f32.mrf.mxu0 }
 0x177   : > { %v2683_v60 = vpop.f32.mrf.mxu1  ;;  %v2751_v63 = vadd.f32 %v2750_v18, %v2749_v21 }
 0x178   : > { %v2684_v52 = vadd.f32 %v2683_v60, %v2682_v62  ;;  %v2752_v37 = vpop.f32.mrf.mxu0 }
 0x179   : > { %v2685_v11 = vpop.f32.mrf.mxu1  ;;  %v3850_v6 = vadd.f32 %v2751_v63, %v3756_v2 }
 0x17a   : > { %v3841_v61 = vadd.f32 %v2684_v52, %v3643_v13  ;;  %v2753_v59 = vpop.f32.mrf.mxu0 }
 0x17b   : > { %v2686_v0 = vpop.f32.mrf.mxu1  ;;  %v2754_v13 = vadd.f32 %v2753_v59, %v2752_v37 }
 0x17c   : > { %v2687_v19 = vadd.f32 %v2686_v0, %v2685_v11  ;;  %v2755_v40 = vpop.f32.mrf.mxu0 }
 0x17d   : > { %v2688_v12 = vpop.f32.mrf.mxu1  ;;  %v3856_v32 = vadd.f32 %v2754_v13, %v3763_v27 }
 0x17e   : > { %v3847_v53 = vadd.f32 %v2687_v19, %v3651_v46  ;;  %v2756_v39 = vpop.f32.mrf.mxu0 }
 0x17f   : > { %v2689_v16 = vpop.f32.mrf.mxu1  ;;  %v2757_v46 = vadd.f32 %v2756_v39, %v2755_v40 }
 0x180   : > { %v2690_v36 = vadd.f32 %v2689_v16, %v2688_v12  ;;  %v2758_v49 = vpop.f32.mrf.mxu0 }
 0x181   : > { %v2691_v5 = vpop.f32.mrf.mxu1  ;;  %v3862_v57 = vadd.f32 %v2757_v46, %v3769_v3 }
 0x182   : > { %v3853_v20 = vadd.f32 %v2690_v36, %v3659_v33  ;;  %v2759_v1 = vpop.f32.mrf.mxu0 }
 0x183   : > { %v2692_v51 = vpop.f32.mrf.mxu1  ;;  %v2760_v33 = vadd.f32 %v2759_v1, %v2758_v49 }
 0x184   : > { %v2693_v58 = vadd.f32 %v2692_v51, %v2691_v5  ;;  %v2761_v60 = vpop.f32.mrf.mxu0 }
 0x185   : > { %v2694_v31 = vpop.f32.mrf.mxu1  ;;  %v3868_v24 = vadd.f32 %v2760_v33, %v3774_v42 }
 0x186   : > { %v3859_v2 = vadd.f32 %v2693_v58, %v3667_v22  ;;  %v2762_v44 = vpop.f32.mrf.mxu0 }
 0x187   : > { %v2695_v54 = vpop.f32.mrf.mxu1  ;;  %v2763_v22 = vadd.f32 %v2762_v44, %v2761_v60 }
 0x188   : > { %v2696_v62 = vadd.f32 %v2695_v54, %v2694_v31  ;;  %v2764_v0 = vpop.f32.mrf.mxu0 }
 0x189   : > { %v2697_v41 = vpop.f32.mrf.mxu1  ;;  %v3874_v18 = vadd.f32 %v2763_v22, %v3779_v55 }
 0x18a   : > { %v3865_v27 = vadd.f32 %v2696_v62, %v3671_v43  ;;  %v2765_v63 = vpop.f32.mrf.mxu0 }
 0x18b   : > { %v2698_v52 = vpop.f32.mrf.mxu1  ;;  %v2766_v43 = vadd.f32 %v2765_v63, %v2764_v0 }
 0x18c   : > { %v2699_v11 = vadd.f32 %v2698_v52, %v2697_v41  ;;  %v2767_v37 = vpop.f32.mrf.mxu0 }
 0x18d   : > { %v2700_v21 = vpop.f32.mrf.mxu1  ;;  %v3882_v59 = vadd.f32 %v2766_v43, %v3784_v4 }
 0x18e   : > { %v3871_v3 = vadd.f32 %v2699_v11, %v3678_v14  ;;  %v2768_v36 = vpop.f32.mrf.mxu0 }
 0x18f   : > { %v2701_v19 = vpop.f32.mrf.mxu1  ;;  %v2769_v14 = vadd.f32 %v2768_v36, %v2767_v37 }
 0x190   : > { %v2702_v12 = vadd.f32 %v2701_v19, %v2700_v21  ;;  %v2770_v5 = vpop.f32.mrf.mxu0 }
 0x191   : > { %v3876_v16 = vpop.f32.mrf.mxu1  ;;  %v3889_v40 = vadd.f32 %v2769_v14, %v3787_v34 }
 0x192   : > { %v3879_v42 = vadd.f32 %v2702_v12, %v3682_v48  ;;  %v2771_v51 = vpop.f32.mrf.mxu0 }
 0x193   : > { %v3884_v13 = vpop.f32.mrf.mxu1  ;;  %v2772_v58 = vadd.f32 %v2771_v51, %v2770_v5 }
 0x194   : > { %v2773_v46 = vpop.f32.mrf.mxu0 }
 0x195   : > { %v3886_v55 = vpop.f32.mrf.mxu1  ;;  %v3896_v4 = vadd.f32 %v2772_v58, %v3793_v35 }
 0x196   : > { %v2774_v31 = vpop.f32.mrf.mxu0 }
 0x197   : > { %v3891_v39 = vpop.f32.mrf.mxu1  ;;  %4149 = vst [vmem:[#allocation3_spill] sm:$0xff] %v3896_v4  ;;  %v2775_v54 = vadd.f32 %v2774_v31, %v2773_v46 }
 0x198   : > { %v2776_v1 = vpop.f32.mrf.mxu0 }
 0x199   : > { %v3893_v48 = vpop.f32.mrf.mxu1  ;;  %v3903_v34 = vadd.f32 %v2775_v54, %v3799_v56 }
 0x19a   : > { %v2777_v33 = vpop.f32.mrf.mxu0 }
 0x19b   : > { %v3898_v49 = vpop.f32.mrf.mxu1  ;;  %v2778_v60 = vadd.f32 %v2777_v33, %v2776_v1 }
 0x19c   : > { %v2779_v52 = vpop.f32.mrf.mxu0 }
 0x19d   : > { %v3900_v62 = vpop.f32.mrf.mxu1  ;;  %v3910_v35 = vadd.f32 %v2778_v60, %v3805_v45 }
 0x19e   : > { %v2780_v11 = vpop.f32.mrf.mxu0 }
 0x19f   : > { %v3905_v41 = vpop.f32.mrf.mxu1  ;;  %v2781_v21 = vadd.f32 %v2780_v11, %v2779_v52 }
 0x1a0   : > { %v2782_v0 = vpop.f32.mrf.mxu0 }
 0x1a1   : > { %v3907_v44 = vpop.f32.mrf.mxu1  ;;  %v3917_v56 = vadd.f32 %v2781_v21, %v3811_v17 }
 0x1a2   : > { %v2783_v63 = vpop.f32.mrf.mxu0 }
 0x1a3   : > { %v3912_v22 = vpop.f32.mrf.mxu1  ;;  %4150 = vst [vmem:[#allocation4_spill] sm:$0xff] %v3917_v56  ;;  %v2784_v43 = vadd.f32 %v2783_v63, %v2782_v0 }
 0x1a4   : > { %v2785_v37 = vpop.f32.mrf.mxu0 }
 0x1a5   : > { %v3914_v19 = vpop.f32.mrf.mxu1  ;;  %v3924_v45 = vadd.f32 %v2784_v43, %v3817_v38 }
 0x1a6   : > { %v2786_v14 = vpop.f32.mrf.mxu0 }
 0x1a7   : > { %v3919_v12 = vpop.f32.mrf.mxu1  ;;  %4151 = vst [vmem:[#allocation5_spill] sm:$0xff] %v3924_v45  ;;  %v2787_v51 = vadd.f32 %v2786_v14, %v2785_v37 }
 0x1a8   : > { %v2788_v58 = vpop.f32.mrf.mxu0 }
 0x1a9   : > { %v3921_v36 = vpop.f32.mrf.mxu1  ;;  %v3931_v17 = vadd.f32 %v2787_v51, %v3823_v23 }
 0x1aa   : > { %v2789_v31 = vpop.f32.mrf.mxu0 }
 0x1ab   : > { %v3926_v5 = vpop.f32.mrf.mxu1  ;;  %4152 = vst [vmem:[#allocation6_spill] sm:$0xff] %v3931_v17  ;;  %v2790_v1 = vadd.f32 %v2789_v31, %v2788_v58 }
 0x1ac   : > { %v2791_v33 = vpop.f32.mrf.mxu0 }
 0x1ad   : > { %v3928_v46 = vpop.f32.mrf.mxu1  ;;  %v3938_v38 = vadd.f32 %v2790_v1, %v3829_v9 }
 0x1ae   : > { %v2792_v52 = vpop.f32.mrf.mxu0 }
 0x1af   : > { %v3933_v54 = vpop.f32.mrf.mxu1  ;;  %4153 = vst [vmem:[#allocation7_spill] sm:$0xff] %v3938_v38  ;;  %v2793_v21 = vadd.f32 %v2792_v52, %v2791_v33 }
 0x1b0   : > { %v2794_v0 = vpop.f32.mrf.mxu0 }
 0x1b1   : > { %v3935_v60 = vpop.f32.mrf.mxu1  ;;  %v3945_v23 = vadd.f32 %v2793_v21, %v3835_v29 }
 0x1b2   : > { %v2795_v43 = vpop.f32.mrf.mxu0 }
 0x1b3   : > { %v3940_v11 = vpop.f32.mrf.mxu1  ;;  %4154 = vst [vmem:[#allocation8_spill] sm:$0xff] %v3945_v23  ;;  %v2796_v14 = vadd.f32 %v2795_v43, %v2794_v0 }
 0x1b4   : > { %v2797_v51 = vpop.f32.mrf.mxu0 }
 0x1b5   : > { %v3942_v63 = vpop.f32.mrf.mxu1  ;;  %v3952_v9 = vadd.f32 %v2796_v14, %v3841_v61 }
 0x1b6   : > { %v2798_v31 = vpop.f32.mrf.mxu0 }
 0x1b7   : > { %v3947_v37 = vpop.f32.mrf.mxu1  ;;  %4155 = vst [vmem:[#allocation9_spill] sm:$0xff] %v3952_v9  ;;  %v2799_v33 = vadd.f32 %v2798_v31, %v2797_v51 }
 0x1b8   : > { %v2800_v52 = vpop.f32.mrf.mxu0 }
 0x1b9   : > { %v3949_v58 = vpop.f32.mrf.mxu1  ;;  %v3959_v29 = vadd.f32 %v2799_v33, %v3847_v53 }
 0x1ba   : > { %v2801_v21 = vpop.f32.mrf.mxu0 }
 0x1bb   : > { %v3954_v1 = vpop.f32.mrf.mxu1  ;;  %4156 = vst [vmem:[#allocation10_spill] sm:$0xff] %v3959_v29  ;;  %v2802_v0 = vadd.f32 %v2801_v21, %v2800_v52 }
 0x1bc   : > { %v2803_v43 = vpop.f32.mrf.mxu0 }
 0x1bd   : > { %v3956_v45 = vpop.f32.mrf.mxu1  ;;  %v3966_v61 = vadd.f32 %v2802_v0, %v3853_v20 }
 0x1be   : > { %v2804_v14 = vpop.f32.mrf.mxu0 }
 0x1bf   : > { %v3961_v23 = vpop.f32.mrf.mxu1  ;;  %4157 = vst [vmem:[#allocation11_spill] sm:$0xff] %v3966_v61  ;;  %v2805_v51 = vadd.f32 %v2804_v14, %v2803_v43  ;;  %v2839_v43 = vadd.f32 %v3898_v49, %v3893_v48 }
 0x1c0   : > { %v2806_v31 = vpop.f32.mrf.mxu0 }
 0x1c1   : > { %v3963_v38 = vpop.f32.mrf.mxu1  ;;  %v3973_v53 = vadd.f32 %v2805_v51, %v3859_v2 }
 0x1c2   : > { %v2807_v33 = vpop.f32.mrf.mxu0 }
 0x1c3   : > { %v3968_v9 = vpop.f32.mrf.mxu1  ;;  %4158 = vst [vmem:[#allocation12_spill] sm:$0xff] %v3973_v53  ;;  %v2808_v52 = vadd.f32 %v2807_v33, %v2806_v31  ;;  %v2833_v31 = vadd.f32 %v3884_v13, %v3876_v16  ;;  %v2836_v16 = vadd.f32 %v3891_v39, %v3886_v55 }
 0x1c4   : > { %v2809_v21 = vpop.f32.mrf.mxu0 }
 0x1c5   : > { %v3970_v56 = vpop.f32.mrf.mxu1  ;;  %v3980_v20 = vadd.f32 %v2808_v52, %v3865_v27  ;;  %v2842_v27 = vadd.f32 %v3905_v41, %v3900_v62  ;;  %v1865_v39 = vadd.f32 %v2836_v16, %v3796_v10 }
 0x1c6   : > { %v2810_v0 = vpop.f32.mrf.mxu0 }
 0x1c7   : > { %v3975_v29 = vpop.f32.mrf.mxu1  ;;  %4159 = vst [vmem:[#allocation13_spill] sm:$0xff] %v3980_v20  ;;  %v2811_v14 = vadd.f32 %v2810_v0, %v2809_v21  ;;  %v1870_v20 = vadd.f32 %v2839_v43, %v3802_v30  ;;  %v1862_v30 = vadd.f32 %v2833_v31, %v3790_v15  ;;  %v1873_v0 = vadd.f32 %v2842_v27, %v3808_v26 }
 0x1c8   : > { %v2812_v2 = vpop.f32.mrf.mxu0  ;;  %v2845_v15 = vadd.f32 %v3912_v22, %v3907_v44  ;;  %v2848_v44 = vadd.f32 %v3919_v12, %v3914_v19  ;;  %v2863_v22 = vadd.f32 %v3954_v1, %v3949_v58 }
 0x1c9   : > { %v3977_v17 = vpop.f32.mrf.mxu1  ;;  %v3991_v33 = vadd.f32 %v2811_v14, %v3871_v3 }
 0x1ca   : > { %v2813_v53 = vpop.f32.mrf.mxu0 }
 0x1cb   : > { %v3982_v61 = vpop.f32.mrf.mxu1  ;;  %v2814_v52 = vadd.f32 %v2813_v53, %v2812_v2  ;;  %v2851_v53 = vadd.f32 %v3926_v5, %v3921_v36  ;;  %v2854_v36 = vadd.f32 %v3933_v54, %v3928_v46 }
 0x1cc   : > { %v2969_v3 = vpop.f32.mrf.mxu0 }
 0x1cd   : > { %v3986_v51 = vpop.f32.mrf.mxu1  ;;  %v4010_v13 = vadd.f32 %v2814_v52, %v3879_v42  ;;  %v2031_v49 = vadd.f32 %v2969_v3, %v1870_v20  ;;  %v1886_v26 = vadd.f32 %v2851_v53, %v3826_v28  ;;  %v1878_v28 = vadd.f32 %v2845_v15, %v3814_v8 }
 0x1ce   : > { %v2022_v41 = vpop.f32.mrf.mxu0  ;;  %v1889_v53 = vadd.f32 %v2854_v36, %v3832_v50  ;;  %v1902_v50 = vadd.f32 %v2863_v22, %v3850_v6 }
 0x1cf   : > { %v3993_v4 = vpop.f32.mrf.mxu1  ;;  %2151 = vst [vmem:[%s4005_s7 + $0x10] sm:$0xff] %v2031_v49  ;;  %v2023_v21 = vadd.f32 %v2022_v41, %v1862_v30  ;;  %v2221_v16 = vmul.f32 %v2031_v49, %v2031_v49 }
 0x1d0   : > { %v2970_v55 = vpop.f32.mrf.mxu0 }
 0x1d1   : > { %v3998_v48 = vpop.f32.mrf.mxu1  ;;  %2149 = vst [vmem:[%s4005_s7] sm:$0xff] %v2023_v21  ;;  %v2034_v42 = vadd.f32 %v2970_v55, %v1873_v0  ;;  %v2219_v27 = vmul.f32 %v2023_v21, %v2023_v21 }
 0x1d2   : > { %v2025_v14 = vpop.f32.mrf.mxu0 }
 0x1d3   : > { %v4013_v62 = vpop.f32.mrf.mxu1  ;;  %2152 = vst [vmem:[%s4005_s7 + $0x18] sm:$0xff] %v2034_v42  ;;  %v2026_v5 = vadd.f32 %v2025_v14, %v1865_v39  ;;  %v2222_v58 = vmul.f32 %v2034_v42, %v2034_v42 }
 0x1d4   : > { %v2973_v31 = vpop.f32.mrf.mxu0 }
 0x1d5   : > { %v4019_v43 = vpop.f32.mrf.mxu1  ;;  %2150 = vst [vmem:[%s4005_s7 + $0x8] sm:$0xff] %v2026_v5  ;;  %v2181_v10 = vadd.f32 %v2026_v5, %v2023_v21  ;;  %v2220_v52 = vmul.f32 %v2026_v5, %v2026_v5  ;;  %v2047_v3 = vadd.f32 %v2973_v31, %v1886_v26  ;;  %v2857_v21 = vadd.f32 %v3940_v11, %v3935_v60 }
 0x1d6   : > { %v2038_v54 = vpop.f32.mrf.mxu0  ;;  %v2866_v60 = vadd.f32 %v3961_v23, %v3956_v45  ;;  %v2860_v31 = vadd.f32 %v3947_v37, %v3942_v63 }
 0x1d7   : > { %v4025_v20 = vpop.f32.mrf.mxu1  ;;  %v2182_v30 = vadd.f32 %v2181_v10, %v2031_v49  ;;  %v2251_v41 = vadd.f32 %v2220_v52, %v2219_v27  ;;  %2155 = vst [vmem:[%s4005_s7 + $0x30] sm:$0xff] %v2047_v3  ;;  %v2039_v0 = vadd.f32 %v2038_v54, %v1878_v28  ;;  %v1881_v49 = vadd.f32 %v2848_v44, %v3820_v25 }
 0x1d8   : > { %v2974_v12 = vpop.f32.mrf.mxu0  ;;  %v1894_v10 = vadd.f32 %v2857_v21, %v3838_v7  ;;  %v2875_v44 = vadd.f32 %v3982_v61, %v3977_v17  ;;  %v1905_v28 = vadd.f32 %v2866_v60, %v3856_v32  ;;  %v2225_v63 = vmul.f32 %v2047_v3, %v2047_v3 }
 0x1d9   : > { %v4031_v2 = vpop.f32.mrf.mxu1  ;;  %v2252_v1 = vadd.f32 %v2251_v41, %v2221_v16  ;;  %v2183_v55 = vadd.f32 %v2182_v30, %v2034_v42  ;;  %v2050_v39 = vadd.f32 %v2974_v12, %v1889_v53  ;;  %2153 = vst [vmem:[%s4005_s7 + $0x20] sm:$0xff] %v2039_v0  ;;  %v2223_v14 = vmul.f32 %v2039_v0, %v2039_v0 }
 0x1da   : > { %v2041_v15 = vpop.f32.mrf.mxu0  ;;  %v2869_v30 = vadd.f32 %v3968_v9, %v3963_v38  ;;  %v1897_v53 = vadd.f32 %v2860_v31, %v3844_v47 }
 0x1db   : > { %v4038_v46 = vpop.f32.mrf.mxu1  ;;  %v2184_v11 = vadd.f32 %v2183_v55, %v2039_v0  ;;  %v2253_v36 = vadd.f32 %v2252_v1, %v2222_v58  ;;  %2156 = vst [vmem:[%s4005_s7 + $0x38] sm:$0xff] %v2050_v39  ;;  %v2042_v5 = vadd.f32 %v2041_v15, %v1881_v49  ;;  %v2226_v17 = vmul.f32 %v2050_v39, %v2050_v39 }
 0x1dc   : > { %v2977_v26 = vpop.f32.mrf.mxu0  ;;  %v1918_v58 = vadd.f32 %v2875_v44, %v3874_v18  ;;  %v2872_v49 = vadd.f32 %v3975_v29, %v3970_v56  ;;  %v2887_v18 = vadd.f32 %v4038_v46, %v4031_v2 }
 0x1dd   : > { %v4045_v19 = vpop.f32.mrf.mxu1  ;;  %v2254_v27 = vadd.f32 %v2253_v36, %v2223_v14  ;;  %v2063_v25 = vadd.f32 %v2977_v26, %v1902_v50  ;;  %2154 = vst [vmem:[%s4005_s7 + $0x28] sm:$0xff] %v2042_v5  ;;  %v2185_v6 = vadd.f32 %v2184_v11, %v2042_v5  ;;  %v2224_v45 = vmul.f32 %v2042_v5, %v2042_v5 }
 0x1de   : > { %v2054_v52 = vpop.f32.mrf.mxu0  ;;  %v1910_v50 = vadd.f32 %v2869_v30, %v3862_v57  ;;  %v2881_v57 = vadd.f32 %v4013_v62, %v3998_v48  ;;  %v1934_v44 = vadd.f32 %v2887_v18, %v3903_v34 }
 0x1df   : > { %v4048_v8 = vpop.f32.mrf.mxu1  ;;  %2159 = vst [vmem:[%s4005_s7 + $0x50] sm:$0xff] %v2063_v25  ;;  %v2055_v22 = vadd.f32 %v2054_v52, %v1894_v10  ;;  %v2186_v37 = vadd.f32 %v2185_v6, %v2047_v3  ;;  %v2255_v54 = vadd.f32 %v2254_v27, %v2224_v45  ;;  %v2878_v3 = vadd.f32 %v3993_v4, %v3986_v51 }
 0x1e0   : > { %v2978_v7 = vpop.f32.mrf.mxu0  ;;  %v2229_v5 = vmul.f32 %v2063_v25, %v2063_v25  ;;  %v1913_v10 = vadd.f32 %v2872_v49, %v3868_v24  ;;  %v2884_v24 = vadd.f32 %v4025_v20, %v4019_v43 }
 0x1e1   : > { %v4055_v42 = vpop.f32.mrf.mxu1  ;;  %2157 = vst [vmem:[%s4005_s7 + $0x40] sm:$0xff] %v2055_v22  ;;  %v2066_v41 = vadd.f32 %v2978_v7, %v1905_v28  ;;  %v2256_v61 = vadd.f32 %v2255_v54, %v2225_v63  ;;  %v2187_v21 = vadd.f32 %v2186_v37, %v2050_v39  ;;  %v2227_v9 = vmul.f32 %v2055_v22, %v2055_v22 }
 0x1e2   : > { %v2057_v32 = vpop.f32.mrf.mxu0  ;;  %v1921_v36 = vadd.f32 %v2878_v3, %v3882_v59  ;;  %v2890_v59 = vadd.f32 %v4048_v8, %v4045_v19  ;;  %v1926_v7 = vadd.f32 %v2881_v57, %v3889_v40 }
 0x1e3   : > { %v4061_v23 = vpop.f32.mrf.mxu1  ;;  %2160 = vst [vmem:[%s4005_s7 + $0x58] sm:$0xff] %v2066_v41  ;;  %v2058_v12 = vadd.f32 %v2057_v32, %v1897_v53  ;;  %v2188_v38 = vadd.f32 %v2187_v21, %v2055_v22  ;;  %v2257_v1 = vadd.f32 %v2256_v61, %v2226_v17  ;;  %v2230_v6 = vmul.f32 %v2066_v41, %v2066_v41 }
 0x1e4   : > { %v2981_v47 = vpop.f32.mrf.mxu0  ;;  %v1937_v17 = vadd.f32 %v2890_v59, %v3910_v35  ;;  %v2893_v3 = vadd.f32 %v4061_v23, %v4055_v42  ;;  %v4164_v59 = vld [vmem:[#allocation5_spill] sm:$0xff] }
 0x1e5   : > { %v4067_v16 = vpop.f32.mrf.mxu1  ;;  %2158 = vst [vmem:[%s4005_s7 + $0x48] sm:$0xff] %v2058_v12  ;;  %v2228_v39 = vmul.f32 %v2058_v12, %v2058_v12  ;;  %v2079_v15 = vadd.f32 %v2981_v47, %v1918_v58  ;;  %v2258_v4 = vadd.f32 %v2257_v1, %v2227_v9  ;;  %v2189_v51 = vadd.f32 %v2188_v38, %v2058_v12  ;;  %v4160_v12 = vld [vmem:[#allocation3_spill] sm:$0xff] }
 0x1e6   : > { %v2070_v11 = vpop.f32.mrf.mxu0  ;;  %v1929_v58 = vadd.f32 %v2884_v24, %v4160_v12 }
 0x1e7   : > { %v4073_v0 = vpop.f32.mrf.mxu1  ;;  %2163 = vst [vmem:[%s4005_s7 + $0x70] sm:$0xff] %v2079_v15  ;;  %v2071_v14 = vadd.f32 %v2070_v11, %v1910_v50  ;;  %v2190_v56 = vadd.f32 %v2189_v51, %v2063_v25  ;;  %v2259_v29 = vadd.f32 %v2258_v4, %v2228_v39  ;;  %v2233_v61 = vmul.f32 %v2079_v15, %v2079_v15  ;;  %v4161_v39 = vld [vmem:[#allocation6_spill] sm:$0xff] }
 0x1e8   : > { %v2982_v31 = vpop.f32.mrf.mxu0 }
 0x1e9   : > { %v2897_v55 = vpop.f32.mrf.mxu1  ;;  %2161 = vst [vmem:[%s4005_s7 + $0x60] sm:$0xff] %v2071_v14  ;;  %v2082_v27 = vadd.f32 %v2982_v31, %v1921_v36  ;;  %v2260_v2 = vadd.f32 %v2259_v29, %v2229_v5  ;;  %v2191_v46 = vadd.f32 %v2190_v56, %v2066_v41  ;;  %v2231_v48 = vmul.f32 %v2071_v14, %v2071_v14 }
 0x1ea   : > { %v2073_v52 = vpop.f32.mrf.mxu0 }
 0x1eb   : > { %v2898_v60 = vpop.f32.mrf.mxu1  ;;  %2164 = vst [vmem:[%s4005_s7 + $0x78] sm:$0xff] %v2082_v27  ;;  %v2074_v25 = vadd.f32 %v2073_v52, %v1913_v10  ;;  %v2192_v22 = vadd.f32 %v2191_v46, %v2071_v14  ;;  %v2261_v62 = vadd.f32 %v2260_v2, %v2230_v6  ;;  %v2234_v38 = vmul.f32 %v2082_v27, %v2082_v27  ;;  %v4162_v14 = vld [vmem:[#allocation4_spill] sm:$0xff] }
 0x1ec   : > { %v2985_v63 = vpop.f32.mrf.mxu0  ;;  %v2899_v34 = vadd.f32 %v2898_v60, %v2897_v55  ;;  %v2896_v60 = vadd.f32 %v4073_v0, %v4067_v16  ;;  %v1942_v36 = vadd.f32 %v2893_v3, %v4162_v14 }
 0x1ed   : > { %v2900_v26 = vpop.f32.mrf.mxu1  ;;  %2162 = vst [vmem:[%s4005_s7 + $0x68] sm:$0xff] %v2074_v25  ;;  %v2232_v37 = vmul.f32 %v2074_v25, %v2074_v25  ;;  %v2095_v54 = vadd.f32 %v2985_v63, %v1934_v44  ;;  %v2262_v19 = vadd.f32 %v2261_v62, %v2231_v48  ;;  %v2193_v8 = vadd.f32 %v2192_v22, %v2074_v25 }
 0x1ee   : > { %v2086_v41 = vpop.f32.mrf.mxu0  ;;  %v1945_v25 = vadd.f32 %v2896_v60, %v4164_v59 }
 0x1ef   : > { %v2901_v45 = vpop.f32.mrf.mxu1  ;;  %2167 = vst [vmem:[%s4005_s7 + $0x90] sm:$0xff] %v2095_v54  ;;  %v2087_v53 = vadd.f32 %v2086_v41, %v1926_v7  ;;  %v2194_v21 = vadd.f32 %v2193_v8, %v2079_v15  ;;  %v2263_v32 = vadd.f32 %v2262_v19, %v2232_v37  ;;  %v1950_v15 = vadd.f32 %v2899_v34, %v4161_v39  ;;  %v4165_v7 = vld [vmem:[#allocation10_spill] sm:$0xff]  ;;  %v4168_v39 = vld [vmem:[#allocation9_spill] sm:$0xff] }
 0x1f0   : > { %v2986_v20 = vpop.f32.mrf.mxu0  ;;  %v2902_v35 = vadd.f32 %v2901_v45, %v2900_v26  ;;  %v2237_v6 = vmul.f32 %v2095_v54, %v2095_v54 }
 0x1f1   : > { %v2903_v28 = vpop.f32.mrf.mxu1  ;;  %2165 = vst [vmem:[%s4005_s7 + $0x80] sm:$0xff] %v2087_v53  ;;  %v2098_v40 = vadd.f32 %v2986_v20, %v1937_v17  ;;  %v2264_v9 = vadd.f32 %v2263_v32, %v2233_v61  ;;  %v2195_v1 = vadd.f32 %v2194_v21, %v2082_v27  ;;  %v2235_v4 = vmul.f32 %v2087_v53, %v2087_v53  ;;  %v4163_v27 = vld [vmem:[#allocation7_spill] sm:$0xff]  ;;  %v4166_v61 = vld [vmem:[#allocation8_spill] sm:$0xff] }
 0x1f2   : > { %v2089_v47 = vpop.f32.mrf.mxu0  ;;  %v1953_v10 = vadd.f32 %v2902_v35, %v4163_v27 }
 0x1f3   : > { %v2904_v30 = vpop.f32.mrf.mxu1  ;;  %2168 = vst [vmem:[%s4005_s7 + $0x98] sm:$0xff] %v2098_v40  ;;  %v2090_v49 = vadd.f32 %v2089_v47, %v1929_v58  ;;  %v2196_v50 = vadd.f32 %v2195_v1, %v2087_v53  ;;  %v2265_v51 = vadd.f32 %v2264_v9, %v2234_v38  ;;  %v2238_v44 = vmul.f32 %v2098_v40, %v2098_v40  ;;  %v4167_v58 = vld [vmem:[#allocation11_spill] sm:$0xff] }
 0x1f4   : > { %v2989_v23 = vpop.f32.mrf.mxu0  ;;  %v2905_v45 = vadd.f32 %v2904_v30, %v2903_v28 }
 0x1f5   : > { %v2906_v43 = vpop.f32.mrf.mxu1  ;;  %2166 = vst [vmem:[%s4005_s7 + $0x88] sm:$0xff] %v2090_v49  ;;  %v2236_v11 = vmul.f32 %v2090_v49, %v2090_v49  ;;  %v2111_v18 = vadd.f32 %v2989_v23, %v1950_v15  ;;  %v2266_v5 = vadd.f32 %v2265_v51, %v2235_v4  ;;  %v2197_v56 = vadd.f32 %v2196_v50, %v2090_v49 }
 0x1f6   : > { %v2102_v26 = vpop.f32.mrf.mxu0  ;;  %v1958_v21 = vadd.f32 %v2905_v45, %v4166_v61 }
 0x1f7   : > { %v2907_v55 = vpop.f32.mrf.mxu1  ;;  %2171 = vst [vmem:[%s4005_s7 + $0xb0] sm:$0xff] %v2111_v18  ;;  %v2103_v57 = vadd.f32 %v2102_v26, %v1942_v36  ;;  %v2198_v2 = vadd.f32 %v2197_v56, %v2095_v54  ;;  %v2267_v46 = vadd.f32 %v2266_v5, %v2236_v11  ;;  %v2241_v9 = vmul.f32 %v2111_v18, %v2111_v18  ;;  %v4169_v26 = vld [vmem:[#allocation12_spill] sm:$0xff] }
 0x1f8   : > { %v2990_v0 = vpop.f32.mrf.mxu0  ;;  %v2908_v34 = vadd.f32 %v2907_v55, %v2906_v43 }
 0x1f9   : > { %v2909_v42 = vpop.f32.mrf.mxu1  ;;  %2169 = vst [vmem:[%s4005_s7 + $0xa0] sm:$0xff] %v2103_v57  ;;  %v2114_v52 = vadd.f32 %v2990_v0, %v1953_v10  ;;  %v2268_v22 = vadd.f32 %v2267_v46, %v2237_v6  ;;  %v2199_v48 = vadd.f32 %v2198_v2, %v2098_v40  ;;  %v2239_v8 = vmul.f32 %v2103_v57, %v2103_v57 }
 0x1fa   : > { %v2105_v63 = vpop.f32.mrf.mxu0  ;;  %v1961_v15 = vadd.f32 %v2908_v34, %v4168_v39 }
 0x1fb   : > { %v2910_v29 = vpop.f32.mrf.mxu1  ;;  %2172 = vst [vmem:[%s4005_s7 + $0xb8] sm:$0xff] %v2114_v52  ;;  %v2106_v37 = vadd.f32 %v2105_v63, %v1945_v25  ;;  %v2200_v19 = vadd.f32 %v2199_v48, %v2103_v57  ;;  %v2269_v41 = vadd.f32 %v2268_v22, %v2238_v44  ;;  %v2242_v50 = vmul.f32 %v2114_v52, %v2114_v52  ;;  %v4170_v44 = vld [vmem:[#allocation13_spill] sm:$0xff] }
 0x1fc   : > { %v2911_v31 = vadd.f32 %v2910_v29, %v2909_v42  ;;  %v2993_v30 = vpop.f32.mrf.mxu0 }
 0x1fd   : > { %v2912_v16 = vpop.f32.mrf.mxu1  ;;  %2170 = vst [vmem:[%s4005_s7 + $0xa8] sm:$0xff] %v2106_v37  ;;  %v2240_v53 = vmul.f32 %v2106_v37, %v2106_v37  ;;  %v2270_v32 = vadd.f32 %v2269_v41, %v2239_v8  ;;  %v2201_v20 = vadd.f32 %v2200_v19, %v2106_v37 }
 0x1fe   : > { %v1966_v54 = vadd.f32 %v2911_v31, %v4165_v7  ;;  %v2118_v40 = vpop.f32.mrf.mxu0 }
 0x1ff   : > { %v2913_v62 = vpop.f32.mrf.mxu1  ;;  %v2119_v12 = vadd.f32 %v2118_v40, %v1958_v21  ;;  %v2202_v1 = vadd.f32 %v2201_v20, %v2111_v18  ;;  %v2271_v47 = vadd.f32 %v2270_v32, %v2240_v53 }
 0x200   : > { %v2914_v24 = vadd.f32 %v2913_v62, %v2912_v16  ;;  %v2127_v17 = vadd.f32 %v2993_v30, %v1966_v54  ;;  %v2994_v43 = vpop.f32.mrf.mxu0 }
 0x201   : > { %v2915_v28 = vpop.f32.mrf.mxu1  ;;  %2173 = vst [vmem:[%s4005_s7 + $0xc0] sm:$0xff] %v2119_v12  ;;  %v2272_v4 = vadd.f32 %v2271_v47, %v2241_v9  ;;  %v2203_v51 = vadd.f32 %v2202_v1, %v2114_v52  ;;  %v2243_v14 = vmul.f32 %v2119_v12, %v2119_v12 }
 0x202   : > { %2175 = vst [vmem:[%s4005_s7 + $0xd0] sm:$0xff] %v2127_v17  ;;  %v1969_v38 = vadd.f32 %v2914_v24, %v4167_v58  ;;  %v2121_v23 = vpop.f32.mrf.mxu0  ;;  %v2245_v16 = vmul.f32 %v2127_v17, %v2127_v17 }
 0x203   : > { %v2916_v3 = vpop.f32.mrf.mxu1  ;;  %v2122_v60 = vadd.f32 %v2121_v23, %v1961_v15  ;;  %v2204_v11 = vadd.f32 %v2203_v51, %v2119_v12  ;;  %v2273_v36 = vadd.f32 %v2272_v4, %v2242_v50 }
 0x204   : > { %v2917_v55 = vadd.f32 %v2916_v3, %v2915_v28  ;;  %v2130_v49 = vadd.f32 %v2994_v43, %v1969_v38  ;;  %v2997_v5 = vpop.f32.mrf.mxu0 }
 0x205   : > { %v2918_v35 = vpop.f32.mrf.mxu1  ;;  %2174 = vst [vmem:[%s4005_s7 + $0xc8] sm:$0xff] %v2122_v60  ;;  %v2244_v29 = vmul.f32 %v2122_v60, %v2122_v60  ;;  %v2274_v57 = vadd.f32 %v2273_v36, %v2243_v14  ;;  %v2205_v27 = vadd.f32 %v2204_v11, %v2122_v60 }
 0x206   : > { %2176 = vst [vmem:[%s4005_s7 + $0xd8] sm:$0xff] %v2130_v49  ;;  %v1974_v31 = vadd.f32 %v2917_v55, %v4169_v26  ;;  %v2134_v6 = vpop.f32.mrf.mxu0  ;;  %v2246_v48 = vmul.f32 %v2130_v49, %v2130_v49 }
 0x207   : > { %v2919_v42 = vpop.f32.mrf.mxu1  ;;  %v2206_v0 = vadd.f32 %v2205_v27, %v2127_v17  ;;  %v2275_v45 = vadd.f32 %v2274_v57, %v2244_v29 }
 0x208   : > { %v2920_v56 = vadd.f32 %v2919_v42, %v2918_v35  ;;  %v2135_v46 = vadd.f32 %v2134_v6, %v1974_v31  ;;  %v2998_v59 = vpop.f32.mrf.mxu0 }
 0x209   : > { %v2921_v18 = vpop.f32.mrf.mxu1  ;;  %v2276_v62 = vadd.f32 %v2275_v45, %v2245_v16  ;;  %v2207_v63 = vadd.f32 %v2206_v0, %v2130_v49 }
 0x20a   : > { %2177 = vst [vmem:[%s4005_s7 + $0xe0] sm:$0xff] %v2135_v46  ;;  %v1977_v22 = vadd.f32 %v2920_v56, %v4170_v44  ;;  %v2137_v37 = vpop.f32.mrf.mxu0  ;;  %v2247_v41 = vmul.f32 %v2135_v46, %v2135_v46 }
 0x20b   : > { %v2922_v10 = vpop.f32.mrf.mxu1  ;;  %v2208_v8 = vadd.f32 %v2207_v63, %v2135_v46  ;;  %v2277_v28 = vadd.f32 %v2276_v62, %v2246_v48 }
 0x20c   : > { %v2923_v2 = vadd.f32 %v2922_v10, %v2921_v18  ;;  %v2138_v19 = vadd.f32 %v2137_v37, %v1977_v22 }
 0x20d   : > { %v2924_v52 = vpop.f32.mrf.mxu1  ;;  %v2278_v34 = vadd.f32 %v2277_v28, %v2247_v41 }
 0x20e   : > { %v1982_v25 = vadd.f32 %v2923_v2, %v3991_v33  ;;  %2178 = vst [vmem:[%s4005_s7 + $0xe8] sm:$0xff] %v2138_v19  ;;  %v2248_v33 = vmul.f32 %v2138_v19, %v2138_v19  ;;  %v2209_v53 = vadd.f32 %v2208_v8, %v2138_v19 }
 0x20f   : > { %v2925_v24 = vpop.f32.mrf.mxu1 }
 0x210   : > { %v2143_v7 = vadd.f32 %v2997_v5, %v1982_v25  ;;  %v2926_v54 = vadd.f32 %v2925_v24, %v2924_v52  ;;  %v2279_v32 = vadd.f32 %v2278_v34, %v2248_v33 }
 0x212   : > { %2179 = vst [vmem:[%s4005_s7 + $0xf0] sm:$0xff] %v2143_v7  ;;  %v1985_v30 = vadd.f32 %v2926_v54, %v4010_v13  ;;  %v2249_v61 = vmul.f32 %v2143_v7, %v2143_v7  ;;  %v2210_v21 = vadd.f32 %v2209_v53, %v2143_v7 }
 0x214   : > { %v2146_v17 = vadd.f32 %v2998_v59, %v1985_v30  ;;  %v2280_v40 = vadd.f32 %v2279_v32, %v2249_v61 }
 0x216   : > { %2180 = vst [vmem:[%s4005_s7 + $0xf8] sm:$0xff] %v2146_v17  ;;  %v2250_v20 = vmul.f32 %v2146_v17, %v2146_v17  ;;  %v2211_v3 = vadd.f32 %v2210_v21, %v2146_v17 }
 0x218   : > { %v2212_v12 = vrot.slane %v2211_v3, 4  ;;  %v2281_v58 = vadd.f32 %v2280_v40, %v2250_v20 }
 0x21a   : > { %v2213_v38 = vadd.f32 %v2212_v12, %v2211_v3  ;;  %v2282_v9 = vrot.slane %v2281_v58, 4 }
 0x21c   : > { %v2214_v1 = vrot.slane %v2213_v38, 2  ;;  %v2283_v13 = vadd.f32 %v2282_v9, %v2281_v58 }
 0x21e   : > { %v2215_v47 = vadd.f32 %v2214_v1, %v2213_v38  ;;  %v2284_v35 = vrot.slane %v2283_v13, 2 }
 0x220   : > { %v2216_v43 = vrot.slane %v2215_v47, 1  ;;  %v2285_v55 = vadd.f32 %v2284_v35, %v2283_v13 }
 0x222   : > { %v2217_v49 = vadd.f32 %v2216_v43, %v2215_v47  ;;  %v2286_v39 = vrot.slane %v2285_v55, 1 }
 0x224   : > { %2218 = vst [vmem:[%s211_s9] sm:$0x1] %v2217_v49  ;;  %v2287_v15 = vadd.f32 %v2286_v39, %v2285_v55 }
 0x226   : > { %2288 = vst [vmem:[%s214_s13] sm:$0x1] %v2287_v15 }
 0x227 PF: > { %s15_s15 = sadd.s32 1, %s3103_s15  }
 0x228   : > { %p12_p4 = scmp.ge.s32.totalorder %s15_s15, 4  }
 0x22a   :  { %14 = sbr.rel (!%p12_p4) target bundleno = 1 (0x1), region = 84 }

// kernel: conv_block_forward.4
= control target key start
LH: loop header
LB: loop body
LE: loop exit
PB: predicated region body
PF: predicated region fallthrough
CT: control target
= control target key end

     0   :  { %s3308_s21 = smov 0   ;;  %s4418_s0 = inlined_call_operand.vmem [shape: f32[2,16,16,128], index: 0, kind: input, shape index: {}]   ;;  %s4419_s1 = inlined_call_operand.vmem [shape: bf16[1152,128], index: 1, kind: input, shape index: {}]   ;;  %s4420_s2 = inlined_call_operand.vmem [shape: f32[1,128], index: 2, kind: input, shape index: {}]   ;;  %s4421_s3 = inlined_call_operand.vmem [shape: f32[1,128], index: 3, kind: input, shape index: {}]   ;;  %s4422_s4 = inlined_call_operand.vmem [shape: f32[2,16,16,128], index: 4, kind: output, shape index: {0}]   ;;  %s4423_s5 = inlined_call_operand.vmem [shape: f32[2,1,128], index: 5, kind: output, shape index: {1}]   ;;  %s4424_s6 = inlined_call_operand.vmem [shape: f32[2,1,128], index: 6, kind: output, shape index: {2}]  }
   0x1 LB: > { %s2558_s22 = sadd.s32 4294967295, %s3269_s21   ;;  %p2562_p0 = scmp.ge.s32.totalorder %s3269_s21, 1  ;;  %s3269_s21 = sphi %s3308_s21, %s17_s21  }
   0x2   : > { %p217_p1 = scmp.lt.s32.totalorder %s3269_s21, 3 }
   0x4   : > { %p218_p2 = pnand %p2562_p0, %p217_p1 }
   0x6   : > { %221 = sbr.rel (%p218_p2) target bundleno = 551 (0x227), region = 36 }
   0xb   : > { %v3190_v0 = vld [vmem:[%s4419_s1 + $0x78] sm:$0xff]   ;;  %v3271_v2 = vmov 0.0   ;;  %v3192_v3 = vld [vmem:[%s4419_s1 + $0x70] sm:$0xff]   ;;  %p253_p3 = scmp.lt.s32.totalorder %s2558_s22, 1  ;;  %v3194_v5 = vld [vmem:[%s4419_s1 + $0x68] sm:$0xff]   ;;  %v3272_v63 = vmov 0.0|0.0  }
   0xc   : > { %v3191_v1 = vld [vmem:[%s4419_s1 + $0x38] sm:$0xff]   ;;  %412 = vst [vmem:[#allocation2] sm:$0xff] %v3271_v2  ;;  %413 = vst [vmem:[#allocation2 + $0x8] sm:$0xff] %v3271_v2  ;;  %2645 = vmatprep.subr.bf16.mxu0 %v3190_v0  ;;  %3165 = vmatprep.subr.bf16.mxu1 %v3190_v0  ;;  %v3193_v4 = vld [vmem:[%s4419_s1 + $0x30] sm:$0xff]  }
   0xd   : > { %414 = vst [vmem:[#allocation2 + $0x10] sm:$0x3] %v3271_v2  ;;  %415 = vst [vmem:[#allocation2 + $0x18] sm:$0xff] %v3271_v2  ;;  %2646 = vmatpush3.bf16.msra.mxu0 %v3191_v1  ;;  %3173 = vmatpush3.bf16.msra.mxu1 %v3191_v1  ;;  %s4448_s22 = smov (!%p253_p3, %s2558_s22), 1  ;;  %v3195_v6 = vld [vmem:[%s4419_s1 + $0x28] sm:$0xff]   ;;  %v3196_v7 = vld [vmem:[%s4419_s1 + $0x60] sm:$0xff]  }
   0xe   : > { %416 = vst [vmem:[#allocation2 + $0x20] sm:$0xff] %v3271_v2  ;;  %417 = vst [vmem:[#allocation2 + $0x28] sm:$0x3] %v3271_v2  ;;  %2647 = vmatprep.subr.bf16.mxu0 %v3192_v3  ;;  %3166 = vmatprep.subr.bf16.mxu1 %v3192_v3  ;;  %s2643_s13 = sshll.u32 %s4448_s22, 8  ;;  %v3197_v8 = vld [vmem:[%s4419_s1 + $0x20] sm:$0xff]   ;;  %v3198_v9 = vld [vmem:[%s4419_s1 + $0x58] sm:$0xff]   ;;  %s265_s12 = scalar_lea.vmem %s4423_s5, %s4448_s22 }
   0xf   : > { %418 = vst [vmem:[#allocation2 + $0x30] sm:$0xff] %v3271_v2  ;;  %419 = vst [vmem:[#allocation2 + $0x38] sm:$0xff] %v3271_v2  ;;  %s3355_s20 = scalar_lea.vmem %s4418_s0, %s2643_s13  ;;  %v3199_v10 = vld [vmem:[%s4419_s1 + $0x18] sm:$0xff]   ;;  %v3200_v11 = vld [vmem:[%s4419_s1 + $0x50] sm:$0xff]   ;;  %s4279_s10 = scalar_lea.vmem %s4422_s4, %s2643_s13 }
  0x10   : > { %420 = vst [vmem:[#allocation2 + $0x40] sm:$0x3] %v3271_v2  ;;  %421 = vst [vmem:[#allocation2 + $0x48] sm:$0xff] %v3271_v2  ;;  %v292_v14 = vld [vmem:[%s3355_s20 + $0xb0] sm:$0xff]  ;;  %v293_v16 = vld [vmem:[%s3355_s20 + $0xb8] sm:$0xff] }
  0x11   : > { %422 = vst [vmem:[#allocation2 + $0x50] sm:$0xff] %v3271_v2  ;;  %423 = vst [vmem:[#allocation2 + $0x58] sm:$0x3] %v3271_v2  ;;  %2648 = vmatpush3.bf16.msra.mxu0 %v3193_v4  ;;  %3174 = vmatpush3.bf16.msra.mxu1 %v3193_v4  ;;  %v3368_v17 = vld [vmem:[%s4420_s2] ss:$0 sm:$0xff]  ;;  %v3201_v21 = vld [vmem:[%s4419_s1 + $0x10] sm:$0xff]  }
  0x12   : > { %424 = vst [vmem:[#allocation2 + $0x60] sm:$0xff] %v3271_v2  ;;  %425 = vst [vmem:[#allocation2 + $0x68] sm:$0xff] %v3271_v2  ;;  %2649 = vmatprep.subr.bf16.mxu0 %v3194_v5  ;;  %3167 = vmatprep.subr.bf16.mxu1 %v3194_v5  ;;  %v3373_v18 = vld [vmem:[%s4421_s3] ss:$0 sm:$0xff]  ;;  %v331_v19 = vmul.f32 %v3368_v17, %v292_v14  ;;  %v332_v20 = vmul.f32 %v3368_v17, %v293_v16  ;;  %v3202_v22 = vld [vmem:[%s4419_s1 + $0x48] sm:$0xff]  }
  0x13   : > { %426 = vst [vmem:[#allocation2 + $0x70] sm:$0x3] %v3271_v2  ;;  %427 = vst [vmem:[#allocation2 + $0x78] sm:$0xff] %v3271_v2  ;;  %v531_v12 = vld [vmem:[#allocation2 + $0x1] sm:$0xff]  ;;  %v3206_v39 = vld [vmem:[%s4419_s1 + $0xf8] sm:$0xff]  }
  0x14   : > { %428 = vst [vmem:[#allocation2 + $0x80] sm:$0xff] %v3271_v2  ;;  %429 = vst [vmem:[#allocation2 + $0x88] sm:$0x3] %v3271_v2  ;;  %v532_v13 = vld [vmem:[#allocation2 + $0x9] sm:$0xff]  ;;  %v370_v23 = vadd.f32 %v3373_v18, %v331_v19  ;;  %v371_v24 = vadd.f32 %v3373_v18, %v332_v20  ;;  %v3204_v28 = vld [vmem:[%s4419_s1 + $0x40] sm:$0xff]  }
  0x15   : > { %430 = vst [vmem:[#allocation2 + $0x90] sm:$0xff] %v3271_v2  ;;  %431 = vst [vmem:[#allocation2 + $0x98] sm:$0xff] %v3271_v2  ;;  %2650 = vmatpush3.bf16.msra.mxu0 %v3195_v6  ;;  %3175 = vmatpush3.bf16.msra.mxu1 %v3195_v6  ;;  %v789_v15 = vpack.c.bf16 %v532_v13, %v531_v12  ;;  %v3203_v27 = vld [vmem:[%s4419_s1 + $0x8] sm:$0xff]   ;;  %v270_v30 = vld [vmem:[%s3355_s20] sm:$0xff] }
  0x16   : > { %432 = vst [vmem:[#allocation2 + $0xa0] sm:$0x3] %v3271_v2  ;;  %433 = vst [vmem:[#allocation2 + $0xa8] sm:$0xff] %v3271_v2  ;;  %2651 = vmatprep.subr.bf16.mxu0 %v3196_v7  ;;  %3168 = vmatprep.subr.bf16.mxu1 %v3196_v7  ;;  %v402_v25 = vmax.f32 %v370_v23, 0.0  ;;  %v403_v26 = vmax.f32 %v371_v24, 0.0  ;;  %v271_v31 = vld [vmem:[%s3355_s20 + $0x8] sm:$0xff]  ;;  %v309_v32 = vmul.f32 %v3368_v17, %v270_v30 }
  0x17   : > { %434 = vst [vmem:[#allocation2 + $0xb0] sm:$0xff] %v3271_v2  ;;  %435 = vst [vmem:[#allocation2 + $0xb8] sm:$0x3] %v3271_v2  ;;  %1540 = vmatprep.mubr.bf16.mxu0 %v789_v15  ;;  %v310_v33 = vmul.f32 %v3368_v17, %v271_v31  ;;  %v294_v34 = vld [vmem:[%s3355_s20 + $0xc0] sm:$0xff]  ;;  %v295_v35 = vld [vmem:[%s3355_s20 + $0xc8] sm:$0xff] }
  0x18   : > { %436 = vst [vmem:[#allocation2 + $0xc0] sm:$0xff] %v3271_v2  ;;  %437 = vst [vmem:[#allocation2 + $0xc8] sm:$0xff] %v3271_v2  ;;  %v897_v29 = vpack.c.bf16 %v403_v26, %v402_v25  ;;  %v3205_v36 = vld [vmem:[%s4419_s1] sm:$0xff]   ;;  %v333_v37 = vmul.f32 %v3368_v17, %v294_v34  ;;  %v334_v38 = vmul.f32 %v3368_v17, %v295_v35  ;;  %v3207_v42 = vld [vmem:[%s4419_s1 + $0x178] sm:$0xff]  }
  0x19   : > { %438 = vst [vmem:[#allocation2 + $0xd0] sm:$0x3] %v3271_v2  ;;  %439 = vst [vmem:[#allocation2 + $0xd8] sm:$0xff] %v3271_v2  ;;  %2652 = vmatpush3.bf16.msra.mxu0 %v3197_v8  ;;  %3176 = vmatpush3.bf16.msra.mxu1 %v3197_v8  ;;  %v348_v40 = vadd.f32 %v3373_v18, %v309_v32  ;;  %v349_v41 = vadd.f32 %v3373_v18, %v310_v33  ;;  %v3208_v45 = vld [vmem:[%s4419_s1 + $0xb8] sm:$0xff]   ;;  %v3210_v49 = vld [vmem:[%s4419_s1 + $0xf0] sm:$0xff]  }
  0x1a   : > { %440 = vst [vmem:[#allocation2 + $0xe0] sm:$0xff] %v3271_v2  ;;  %441 = vst [vmem:[#allocation2 + $0xe8] sm:$0x3] %v3271_v2  ;;  %2653 = vmatprep.subr.bf16.mxu0 %v3198_v9  ;;  %3169 = vmatprep.subr.bf16.mxu1 %v3198_v9  ;;  %v372_v43 = vadd.f32 %v3373_v18, %v333_v37  ;;  %v373_v44 = vadd.f32 %v3373_v18, %v334_v38  ;;  %v3209_v46 = vld [vmem:[%s4419_s1 + $0x138] sm:$0xff]   ;;  %v3215_v56 = vld [vmem:[%s4419_s1 + $0x170] sm:$0xff]  }
  0x1b   : > { %442 = vst [vmem:[#allocation2 + $0xf0] sm:$0xff] %v3271_v2  ;;  %443 = vst [vmem:[#allocation2 + $0xf8] sm:$0xff] %v3271_v2  ;;  %1636 = vmatprep.mubr.bf16.mxu1 %v897_v29  ;;  %v380_v47 = vmax.f32 %v348_v40, 0.0  ;;  %v381_v48 = vmax.f32 %v349_v41, 0.0  ;;  %v272_v57 = vld [vmem:[%s3355_s20 + $0x10] sm:$0xff]  ;;  %v273_v59 = vld [vmem:[%s3355_s20 + $0x18] sm:$0xff] }
  0x1c   : > { %444 = vst [vmem:[#allocation2 + $0x100] sm:$0x3] %v3271_v2  ;;  %445 = vst [vmem:[#allocation2 + $0x108] sm:$0xff] %v3271_v2  ;;  %v404_v50 = vmax.f32 %v372_v43, 0.0  ;;  %v405_v51 = vmax.f32 %v373_v44, 0.0  ;;  %v311_v60 = vmul.f32 %v3368_v17, %v272_v57  ;;  %v296_v61 = vld [vmem:[%s3355_s20 + $0xd0] sm:$0xff]  ;;  %v312_v1 = vmul.f32 %v3368_v17, %v273_v59 }
  0x1d   : > { %446 = vst [vmem:[#allocation2 + $0x110] sm:$0xff] %v3271_v2  ;;  %447 = vst [vmem:[#allocation2 + $0x118] sm:$0x3] %v3271_v2  ;;  %2654 = vmatpush3.bf16.msra.mxu0 %v3199_v10  ;;  %3177 = vmatpush3.bf16.msra.mxu1 %v3199_v10  ;;  %v3421_v55 = vpack.c.bf16 %v381_v48, %v380_v47  ;;  %v297_v62 = vld [vmem:[%s3355_s20 + $0xd8] sm:$0xff]  ;;  %v3211_v0 = vld [vmem:[%s4419_s1 + $0xb0] sm:$0xff]  }
  0x1e   : > { %448 = vst [vmem:[#allocation2 + $0x120] sm:$0xff] %v3271_v2  ;;  %449 = vst [vmem:[#allocation2 + $0x128] sm:$0xff] %v3271_v2  ;;  %2655 = vmatprep.subr.bf16.mxu0 %v3200_v11  ;;  %3170 = vmatprep.subr.bf16.mxu1 %v3200_v11  ;;  %v906_v58 = vpack.c.bf16 %v405_v51, %v404_v50  ;;  %v336_v3 = vmul.f32 %v3368_v17, %v297_v62  ;;  %v3217_v4 = vld [vmem:[%s4419_s1 + $0x130] sm:$0xff]   ;;  %v3212_v6 = vld [vmem:[%s4419_s1 + $0xe8] sm:$0xff]  }
  0x1f   : > { %450 = vst [vmem:[#allocation2 + $0x130] sm:$0x3] %v3271_v2  ;;  %451 = vst [vmem:[#allocation2 + $0x138] sm:$0xff] %v3271_v2  ;;  %v350_v5 = vadd.f32 %v3373_v18, %v311_v60  ;;  %v351_v7 = vadd.f32 %v3373_v18, %v312_v1  ;;  %v3213_v10 = vld [vmem:[%s4419_s1 + $0xa8] sm:$0xff]   ;;  %v3214_v14 = vld [vmem:[%s4419_s1 + $0xe0] sm:$0xff]  }
  0x20   : > { %452 = vst [vmem:[#allocation2 + $0x140] sm:$0xff] %v3271_v2  ;;  %453 = vst [vmem:[#allocation2 + $0x148] sm:$0x3] %v3271_v2  ;;  %v375_v9 = vadd.f32 %v3373_v18, %v336_v3  ;;  %v274_v20 = vld [vmem:[%s3355_s20 + $0x20] sm:$0xff]  ;;  %v275_v24 = vld [vmem:[%s3355_s20 + $0x28] sm:$0xff] }
  0x21   : > { %454 = vst [vmem:[#allocation2 + $0x150] sm:$0xff] %v3271_v2  ;;  %455 = vst [vmem:[#allocation2 + $0x158] sm:$0xff] %v3271_v2  ;;  %2656 = vmatpush3.bf16.msra.mxu0 %v3201_v21  ;;  %3178 = vmatpush3.bf16.msra.mxu1 %v3201_v21  ;;  %v382_v11 = vmax.f32 %v350_v5, 0.0  ;;  %v383_v15 = vmax.f32 %v351_v7, 0.0  ;;  %v314_v29 = vmul.f32 %v3368_v17, %v275_v24  ;;  %v298_v30 = vld [vmem:[%s3355_s20 + $0xe0] sm:$0xff]  ;;  %v299_v31 = vld [vmem:[%s3355_s20 + $0xe8] sm:$0xff] }
  0x22   : > { %456 = vst [vmem:[#allocation2 + $0x160] sm:$0x3] %v3271_v2  ;;  %457 = vst [vmem:[#allocation2 + $0x168] sm:$0xff] %v3271_v2  ;;  %2657 = vmatprep.subr.bf16.mxu0 %v3202_v22  ;;  %3171 = vmatprep.subr.bf16.mxu1 %v3202_v22  ;;  %v407_v19 = vmax.f32 %v375_v9, 0.0  ;;  %v3216_v32 = vld [vmem:[%s4419_s1 + $0xa0] sm:$0xff]   ;;  %v337_v34 = vmul.f32 %v3368_v17, %v298_v30  ;;  %v338_v35 = vmul.f32 %v3368_v17, %v299_v31  ;;  %v3223_v37 = vld [vmem:[%s4419_s1 + $0x168] sm:$0xff]  }
  0x23   : > { %458 = vst [vmem:[#allocation2 + $0x170] sm:$0xff] %v3271_v2  ;;  %459 = vst [vmem:[#allocation2 + $0x178] sm:$0x3] %v3271_v2  ;;  %v3218_v38 = vld [vmem:[%s4419_s1 + $0xd8] sm:$0xff]   ;;  %v3225_v43 = vld [vmem:[%s4419_s1 + $0x128] sm:$0xff]  }
  0x24   : > { %460 = vst [vmem:[#allocation2 + $0x180] sm:$0xff] %v3271_v2  ;;  %461 = vst [vmem:[#allocation2 + $0x188] sm:$0xff] %v3271_v2  ;;  %v376_v40 = vadd.f32 %v3373_v18, %v337_v34  ;;  %v377_v41 = vadd.f32 %v3373_v18, %v338_v35  ;;  %v3219_v44 = vld [vmem:[%s4419_s1 + $0x98] sm:$0xff]   ;;  %v276_v57 = vld [vmem:[%s3355_s20 + $0x30] sm:$0xff] }
  0x25   : > { %462 = vst [vmem:[#allocation2 + $0x190] sm:$0x3] %v3271_v2  ;;  %463 = vst [vmem:[#allocation2 + $0x198] sm:$0xff] %v3271_v2  ;;  %2658 = vmatpush3.bf16.msra.mxu0 %v3203_v27  ;;  %3179 = vmatpush3.bf16.msra.mxu1 %v3203_v27  ;;  %v3461_v27 = vpack.c.bf16 %v383_v15, %v382_v11  ;;  %v315_v59 = vmul.f32 %v3368_v17, %v276_v57  ;;  %v3222_v62 = vld [vmem:[%s4419_s1 + $0xc8] sm:$0xff]  }
  0x26   : > { %464 = vst [vmem:[#allocation2 + $0x1a0] sm:$0xff] %v3271_v2  ;;  %465 = vst [vmem:[#allocation2 + $0x1a8] sm:$0x3] %v3271_v2  ;;  %2659 = vmatprep.subr.bf16.mxu0 %v3204_v28  ;;  %3172 = vmatprep.subr.bf16.mxu1 %v3204_v28  ;;  %v335_v2 = vmul.f32 %v3368_v17, %v296_v61  ;;  %v3221_v61 = vld [vmem:[%s4419_s1 + $0x90] sm:$0xff]   ;;  %v563_v24 = vld [vmem:[#allocation2 + $0x2] sm:$0xff] }
  0x27   : > { %489 = vst [vmem:[#allocation2 + $0x121] sm:$0xff] %v402_v25  ;;  %490 = vst [vmem:[#allocation2 + $0x129] sm:$0xff] %v403_v26  ;;  %v313_v25 = vmul.f32 %v3368_v17, %v274_v20  ;;  %v280_v20 = vld [vmem:[%s3355_s20 + $0x50] sm:$0xff] }
  0x28   : > { %467 = vst [vmem:[#allocation2 + $0x19] sm:$0xff] %v380_v47  ;;  %468 = vst [vmem:[#allocation2 + $0x21] sm:$0xff] %v381_v48  ;;  %v374_v8 = vadd.f32 %v3373_v18, %v335_v2  ;;  %v3230_v2 = vld [vmem:[%s4419_s1 + $0x160] sm:$0xff]  }
  0x29   : > { %2660 = vmatpush3.bf16.msra.mxu0 %v3205_v36  ;;  %3180 = vmatpush3.bf16.msra.mxu1 %v3205_v36  ;;  %491 = vst [vmem:[#allocation2 + $0x139] sm:$0xff] %v404_v50  ;;  %492 = vst [vmem:[#allocation2 + $0x141] sm:$0xff] %v405_v51  ;;  %v352_v33 = vadd.f32 %v3373_v18, %v313_v25  ;;  %v353_v36 = vadd.f32 %v3373_v18, %v314_v29  ;;  %v564_v25 = vld [vmem:[#allocation2 + $0xa] sm:$0xff] }
  0x2a   : > { %2757 = vmatprep.subr.bf16.mxu1 %v3206_v39  ;;  %2869 = vmatprep.subr.bf16.mxu0 %v3207_v42  ;;  %v406_v16 = vmax.f32 %v374_v8, 0.0  ;;  %469 = vst [vmem:[#allocation2 + $0x31] sm:$0xff] %v382_v11  ;;  %470 = vst [vmem:[#allocation2 + $0x39] sm:$0xff] %v383_v15  ;;  %v319_v29 = vmul.f32 %v3368_v17, %v280_v20 }
  0x2b   : > { %494 = vst [vmem:[#allocation2 + $0x159] sm:$0xff] %v407_v19  ;;  %v384_v39 = vmax.f32 %v352_v33, 0.0  ;;  %v385_v42 = vmax.f32 %v353_v36, 0.0  ;;  %v3228_v33 = vld [vmem:[%s4419_s1 + $0x1f8] sm:$0xff]  }
  0x2c   : > { %1541 = vmatmul.mubr.bf16.vlgmr.msra.gmra.mxu0 %v3272_v63  ;;  %493 = vst [vmem:[#allocation2 + $0x151] sm:$0xff] %v406_v16  ;;  %v915_v28 = vpack.c.bf16 %v407_v19, %v406_v16  ;;  %v354_v63 = vadd.f32 %v3373_v18, %v315_v59  ;;  %v3226_v16 = vld [vmem:[%s4419_s1 + $0xc0] sm:$0xff]   ;;  %v3555_v35 = vadd.f32 %v3373_v18, %v319_v29  ;;  %v284_v59 = vld [vmem:[%s3355_s20 + $0x70] sm:$0xff]  ;;  %v3241_v29 = vld [vmem:[%s4419_s1 + $0x108] sm:$0xff]  }
  0x2d   : > { %2870 = vmatpush3.bf16.msra.mxu0 %v3209_v46  ;;  %1548 = vmatprep.mubr.bf16.mxu0 %v3421_v55  ;;  %471 = vst [vmem:[#allocation2 + $0x49] sm:$0xff] %v384_v39  ;;  %v409_v46 = vmax.f32 %v377_v41, 0.0  ;;  %472 = vst [vmem:[#allocation2 + $0x51] sm:$0xff] %v385_v42  ;;  %v3490_v51 = vpack.c.bf16 %v385_v42, %v384_v39  ;;  %v282_v41 = vld [vmem:[%s3355_s20 + $0x60] sm:$0xff]  ;;  %v283_v42 = vld [vmem:[%s3355_s20 + $0x68] sm:$0xff] }
  0x2e   : > { %v523_v52 = vld [vmem:[#allocation2 + $0x120] sm:$0xff]  ;;  %v524_v53 = vld [vmem:[#allocation2 + $0x128] sm:$0xff]  ;;  %2871 = vmatprep.subr.bf16.mxu0 %v3215_v56  ;;  %v390_v39 = vmax.f32 %v3555_v35, 0.0 }
  0x2f   : > { %v896_v54 = vpack.c.bf16 %v524_v53, %v523_v52  ;;  %v501_v12 = vld [vmem:[#allocation2 + $0x18] sm:$0xff]  ;;  %v502_v13 = vld [vmem:[#allocation2 + $0x20] sm:$0xff]  ;;  %496 = vst [vmem:[#allocation2 + $0x171] sm:$0xff] %v409_v46 }
  0x30   : > { %v3455_v21 = vpack.c.bf16 %v502_v13, %v501_v12  ;;  %v525_v22 = vld [vmem:[#allocation2 + $0x138] sm:$0xff]  ;;  %v526_v23 = vld [vmem:[#allocation2 + $0x140] sm:$0xff]  ;;  %v3224_v12 = vld [vmem:[%s4419_s1 + $0x88] sm:$0xff]   ;;  %477 = vst [vmem:[#allocation2 + $0x91] sm:$0xff] %v390_v39 }
  0x31   : > { %1637 = vmatmul.mubr.bf16.vlgmr.msra.gmra.mxu1 %v896_v54  ;;  %2872 = vmatpush3.bf16.msra.mxu0 %v3217_v4  ;;  %v3459_v26 = vpack.c.bf16 %v526_v23, %v525_v22  ;;  %v503_v47 = vld [vmem:[#allocation2 + $0x30] sm:$0xff]  ;;  %v504_v48 = vld [vmem:[#allocation2 + $0x38] sm:$0xff]  ;;  %v386_v4 = vmax.f32 %v354_v63, 0.0  ;;  %v3227_v23 = vld [vmem:[%s4419_s1 + $0x80] sm:$0xff]  }
  0x32   : > { %2758 = vmatpush3.bf16.msra.mxu1 %v3208_v45  ;;  %1644 = vmatprep.mubr.bf16.mxu1 %v906_v58  ;;  %v408_v45 = vmax.f32 %v376_v40, 0.0  ;;  %v3492_v52 = vpack.c.bf16 %v504_v48, %v503_v47  ;;  %v3220_v54 = vld [vmem:[%s4419_s1 + $0xd0] sm:$0xff]   ;;  %v277_v58 = vld [vmem:[%s3355_s20 + $0x38] sm:$0xff] }
  0x33   : > { %2759 = vmatprep.subr.bf16.mxu1 %v3210_v49  ;;  %2873 = vmatprep.subr.bf16.mxu0 %v3223_v37  ;;  %v527_v49 = vld [vmem:[#allocation2 + $0x150] sm:$0xff]  ;;  %v528_v50 = vld [vmem:[#allocation2 + $0x158] sm:$0xff]  ;;  %v316_v60 = vmul.f32 %v3368_v17, %v277_v58  ;;  %473 = vst [vmem:[#allocation2 + $0x61] sm:$0xff] %v386_v4 }
  0x34   : > { %1549 = vmatmul.mubr.bf16.gmra.mxu0 %v3455_v21  ;;  %495 = vst [vmem:[#allocation2 + $0x169] sm:$0xff] %v408_v45  ;;  %v3494_v53 = vpack.c.bf16 %v528_v50, %v527_v49  ;;  %v924_v56 = vpack.c.bf16 %v409_v46, %v408_v45  ;;  %v505_v1 = vld [vmem:[#allocation2 + $0x48] sm:$0xff]  ;;  %v506_v3 = vld [vmem:[#allocation2 + $0x50] sm:$0xff]  ;;  %v281_v22 = vld [vmem:[%s3355_s20 + $0x58] sm:$0xff]  ;;  %v790_v45 = vpack.c.bf16 %v564_v25, %v563_v24 }
  0x35   : > { %1556 = vmatprep.mubr.bf16.mxu0 %v3461_v27  ;;  %2874 = vmatpush3.bf16.msra.mxu0 %v3225_v43  ;;  %v3520_v7 = vpack.c.bf16 %v506_v3, %v505_v1  ;;  %v320_v30 = vmul.f32 %v3368_v17, %v281_v22  ;;  %v322_v46 = vmul.f32 %v3368_v17, %v283_v42  ;;  %v3229_v48 = vld [vmem:[%s4419_s1 + $0x1b8] sm:$0xff]   ;;  %v3236_v58 = vld [vmem:[%s4419_s1 + $0x150] sm:$0xff]   ;;  %v3239_v22 = vld [vmem:[%s4419_s1 + $0x1a8] sm:$0xff]  }
  0x36   : > { %2760 = vmatpush3.bf16.msra.mxu1 %v3211_v0  ;;  %v355_v0 = vadd.f32 %v3373_v18, %v316_v60  ;;  %2875 = vmatprep.subr.bf16.mxu0 %v3230_v2  ;;  %v565_v50 = vld [vmem:[#allocation2 + $0x1a] sm:$0xff]  ;;  %v323_v1 = vmul.f32 %v3368_v17, %v284_v59  ;;  %v3235_v3 = vld [vmem:[%s4419_s1 + $0x1b0] sm:$0xff]   ;;  %v3240_v25 = vld [vmem:[%s4419_s1 + $0x148] sm:$0xff]  }
  0x37   : > { %2761 = vmatprep.subr.bf16.mxu1 %v3212_v6  ;;  %v3231_v6 = vld [vmem:[%s4419_s1 + $0x120] sm:$0xff]   ;;  %v359_v36 = vadd.f32 %v3373_v18, %v320_v30  ;;  %v3581_v57 = vadd.f32 %v3373_v18, %v322_v46  ;;  %v285_v60 = vld [vmem:[%s3355_s20 + $0x78] sm:$0xff]  ;;  %v288_v30 = vld [vmem:[%s3355_s20 + $0x90] sm:$0xff] }
  0x38   : > { %v387_v5 = vmax.f32 %v355_v0, 0.0  ;;  %v3237_v0 = vld [vmem:[%s4419_s1 + $0x110] sm:$0xff]   ;;  %v324_v2 = vmul.f32 %v3368_v17, %v285_v60  ;;  %v327_v35 = vmul.f32 %v3368_v17, %v288_v30  ;;  %v3242_v42 = vld [vmem:[%s4419_s1 + $0x1e0] sm:$0xff]  }
  0x39   : > { %1645 = vmatmul.mubr.bf16.gmra.mxu1 %v3459_v26  ;;  %2876 = vmatpush3.bf16.msra.mxu0 %v3231_v6  ;;  %v391_v40 = vmax.f32 %v359_v36, 0.0  ;;  %v393_v63 = vmax.f32 %v3581_v57, 0.0  ;;  %v3244_v46 = vld [vmem:[%s4419_s1 + $0x140] sm:$0xff]   ;;  %v569_v60 = vld [vmem:[#allocation2 + $0x4a] sm:$0xff] }
  0x3a   : > { %2762 = vmatpush3.bf16.msra.mxu1 %v3213_v10  ;;  %1652 = vmatprep.mubr.bf16.mxu1 %v915_v28  ;;  %v278_v10 = vld [vmem:[%s3355_s20 + $0x40] sm:$0xff]  ;;  %474 = vst [vmem:[#allocation2 + $0x69] sm:$0xff] %v387_v5  ;;  %v3528_v13 = vpack.c.bf16 %v387_v5, %v386_v4  ;;  %v3606_v5 = vadd.f32 %v3373_v18, %v323_v1 }
  0x3b   : > { %2763 = vmatprep.subr.bf16.mxu1 %v3214_v14  ;;  %v529_v8 = vld [vmem:[#allocation2 + $0x168] sm:$0xff]  ;;  %v530_v9 = vld [vmem:[#allocation2 + $0x170] sm:$0xff]  ;;  %v317_v15 = vmul.f32 %v3368_v17, %v278_v10  ;;  %v507_v43 = vld [vmem:[#allocation2 + $0x60] sm:$0xff]  ;;  %478 = vst [vmem:[#allocation2 + $0x99] sm:$0xff] %v391_v40  ;;  %v3609_v6 = vadd.f32 %v3373_v18, %v324_v2  ;;  %v3623_v20 = vpack.c.bf16 %v391_v40, %v390_v39 }
  0x3c   : > { %1557 = vmatmul.mubr.bf16.gmra.mxu0 %v3492_v52  ;;  %v3523_v11 = vpack.c.bf16 %v530_v9, %v529_v8  ;;  %v279_v14 = vld [vmem:[%s3355_s20 + $0x48] sm:$0xff]  ;;  %480 = vst [vmem:[#allocation2 + $0xb1] sm:$0xff] %v393_v63  ;;  %v286_v10 = vld [vmem:[%s3355_s20 + $0x80] sm:$0xff]  ;;  %v3658_v40 = vadd.f32 %v3373_v18, %v327_v35  ;;  %v3713_v2 = vld [vmem:[%s4419_s1 + $0x238] sm:$0xff]  }
  0x3d   : > { %1564 = vmatprep.mubr.bf16.mxu0 %v3490_v51  ;;  %v318_v19 = vmul.f32 %v3368_v17, %v279_v14  ;;  %v356_v28 = vadd.f32 %v3373_v18, %v317_v15  ;;  %v3238_v8 = vld [vmem:[%s4419_s1 + $0x1e8] sm:$0xff]   ;;  %v394_v15 = vmax.f32 %v3606_v5, 0.0 }
  0x3e   : > { %2764 = vmatpush3.bf16.msra.mxu1 %v3216_v32  ;;  %v3232_v32 = vld [vmem:[%s4419_s1 + $0x158] sm:$0xff]  }
  0x3f   : > { %2765 = vmatprep.subr.bf16.mxu1 %v3218_v38  ;;  %v357_v31 = vadd.f32 %v3373_v18, %v318_v19  ;;  %v388_v34 = vmax.f32 %v356_v28, 0.0  ;;  %v3234_v38 = vld [vmem:[%s4419_s1 + $0x118] sm:$0xff]   ;;  %2877 = vmatprep.subr.bf16.mxu0 %v3232_v32  ;;  %v325_v19 = vmul.f32 %v3368_v17, %v286_v10  ;;  %481 = vst [vmem:[#allocation2 + $0xc1] sm:$0xff] %v394_v15 }
  0x40   : > { %2878 = vmatpush3.bf16.msra.mxu0 %v3234_v38  ;;  %v567_v32 = vld [vmem:[#allocation2 + $0x32] sm:$0xff] }
  0x41   : > { %1653 = vmatmul.mubr.bf16.gmra.mxu1 %v3494_v53  ;;  %v389_v37 = vmax.f32 %v357_v31, 0.0  ;;  %475 = vst [vmem:[#allocation2 + $0x79] sm:$0xff] %v388_v34  ;;  %2879 = vmatprep.subr.bf16.mxu0 %v3236_v58  ;;  %v3634_v24 = vadd.f32 %v3373_v18, %v325_v19  ;;  %v289_v31 = vld [vmem:[%s3355_s20 + $0x98] sm:$0xff]  ;;  %v291_v58 = vld [vmem:[%s3355_s20 + $0xa8] sm:$0xff]  ;;  %v3249_v19 = vld [vmem:[%s4419_s1 + $0x1d0] sm:$0xff]  }
  0x42   : > { %2766 = vmatpush3.bf16.msra.mxu1 %v3219_v44  ;;  %1660 = vmatprep.mubr.bf16.mxu1 %v924_v56  ;;  %v508_v44 = vld [vmem:[#allocation2 + $0x68] sm:$0xff]  ;;  %v328_v36 = vmul.f32 %v3368_v17, %v289_v31  ;;  %v512_v38 = vld [vmem:[#allocation2 + $0x98] sm:$0xff]  ;;  %v330_v57 = vmul.f32 %v3368_v17, %v291_v58 }
  0x43   : > { %2767 = vmatprep.subr.bf16.mxu1 %v3220_v54  ;;  %476 = vst [vmem:[#allocation2 + $0x81] sm:$0xff] %v389_v37  ;;  %v3567_v47 = vpack.c.bf16 %v508_v44, %v507_v43  ;;  %v3572_v49 = vpack.c.bf16 %v389_v37, %v388_v34  ;;  %v3233_v54 = vld [vmem:[%s4419_s1 + $0x1f0] sm:$0xff]   ;;  %v396_v34 = vmax.f32 %v3634_v24, 0.0  ;;  %v571_v5 = vld [vmem:[#allocation2 + $0x62] sm:$0xff] }
  0x44   : > { %1565 = vmatmul.mubr.bf16.gmra.mxu0 %v3520_v7  ;;  %v511_v37 = vld [vmem:[#allocation2 + $0x90] sm:$0xff]  ;;  %v3708_v1 = vadd.f32 %v3373_v18, %v330_v57  ;;  %v3254_v31 = vld [vmem:[%s4419_s1 + $0x188] sm:$0xff]   ;;  %v3255_v24 = vld [vmem:[%s4419_s1 + $0x1c0] sm:$0xff]  }
  0x45   : > { %1572 = vmatprep.mubr.bf16.mxu0 %v3528_v13  ;;  %2880 = vmatpush3.bf16.msra.mxu0 %v3237_v0  ;;  %483 = vst [vmem:[#allocation2 + $0xd9] sm:$0xff] %v396_v34  ;;  %v3671_v43 = vpack.c.bf16 %v512_v38, %v511_v37  ;;  %v301_v37 = vld [vmem:[%s3355_s20 + $0xf8] sm:$0xff] }
  0x46   : > { %2768 = vmatpush3.bf16.msra.mxu1 %v3221_v61  ;;  %v566_v61 = vld [vmem:[#allocation2 + $0x22] sm:$0xff]  ;;  %2881 = vmatprep.subr.bf16.mxu0 %v3240_v25 }
  0x47   : > { %2769 = vmatprep.subr.bf16.mxu1 %v3222_v62 }
  0x48   : > { %v509_v4 = vld [vmem:[#allocation2 + $0x78] sm:$0xff] }
  0x49   : > { %1661 = vmatmul.mubr.bf16.gmra.mxu1 %v3523_v11  ;;  %2882 = vmatpush3.bf16.msra.mxu0 %v3241_v29 }
  0x4a   : > { %2770 = vmatpush3.bf16.msra.mxu1 %v3224_v12  ;;  %1701 = vmatprep.mubr.bf16.mxu1 %v3455_v21  ;;  %v321_v21 = vmul.f32 %v3368_v17, %v282_v41  ;;  %v510_v9 = vld [vmem:[#allocation2 + $0x80] sm:$0xff]  ;;  %v287_v12 = vld [vmem:[%s3355_s20 + $0x88] sm:$0xff]  ;;  %v3661_v41 = vadd.f32 %v3373_v18, %v328_v36  ;;  %v300_v36 = vld [vmem:[%s3355_s20 + $0xf0] sm:$0xff] }
  0x4b   : > { %2771 = vmatprep.subr.bf16.mxu1 %v3226_v16  ;;  %v3618_v14 = vpack.c.bf16 %v510_v9, %v509_v4  ;;  %v395_v16 = vmax.f32 %v3609_v6, 0.0  ;;  %2883 = vmatprep.subr.bf16.mxu0 %v3244_v46  ;;  %v401_v4 = vmax.f32 %v3708_v1, 0.0  ;;  %v3251_v6 = vld [vmem:[%s4419_s1 + $0x190] sm:$0xff]   ;;  %v574_v35 = vld [vmem:[#allocation2 + $0x82] sm:$0xff]  ;;  %v339_v38 = vmul.f32 %v3368_v17, %v300_v36  ;;  %v589_v36 = vld [vmem:[#allocation2 + $0x13a] sm:$0xff] }
  0x4c   : > { %v3578_v56 = vadd.f32 %v3373_v18, %v321_v21  ;;  %1573 = vmatmul.mubr.bf16.gmra.mxu0 %v3567_v47  ;;  %v399_v21 = vmax.f32 %v3661_v41, 0.0  ;;  %v576_v41 = vld [vmem:[#allocation2 + $0x9a] sm:$0xff] }
  0x4d   : > { %1580 = vmatprep.mubr.bf16.mxu0 %v3572_v49  ;;  %482 = vst [vmem:[#allocation2 + $0xc9] sm:$0xff] %v395_v16  ;;  %488 = vst [vmem:[#allocation2 + $0x111] sm:$0xff] %v401_v4 }
  0x4e   : > { %2772 = vmatpush3.bf16.msra.mxu1 %v3227_v23  ;;  %v392_v62 = vmax.f32 %v3578_v56, 0.0  ;;  %v326_v23 = vmul.f32 %v3368_v17, %v287_v12  ;;  %486 = vst [vmem:[#allocation2 + $0xf9] sm:$0xff] %v399_v21  ;;  %v3729_v12 = vpack.c.bf16 %v395_v16, %v394_v15  ;;  %v515_v15 = vld [vmem:[#allocation2 + $0xc0] sm:$0xff] }
  0x4f   : > { %2981 = vmatprep.subr.bf16.mxu1 %v3228_v33  ;;  %v568_v33 = vld [vmem:[#allocation2 + $0x3a] sm:$0xff] }
  0x50   : > { %479 = vst [vmem:[#allocation2 + $0xa9] sm:$0xff] %v392_v62  ;;  %v3640_v28 = vadd.f32 %v3373_v18, %v326_v23  ;;  %v3673_v44 = vpack.c.bf16 %v568_v33, %v567_v32  ;;  %v3252_v23 = vld [vmem:[%s4419_s1 + $0x1c8] sm:$0xff]   ;;  %v517_v32 = vld [vmem:[#allocation2 + $0xd8] sm:$0xff] }
  0x51   : > { %1702 = vmatmul.mubr.bf16.vlgmr.msra.gmra.mxu1 %v790_v45  ;;  %v398_v45 = vmax.f32 %v3658_v40, 0.0  ;;  %v573_v33 = vld [vmem:[#allocation2 + $0x7a] sm:$0xff] }
  0x52   : > { %2982 = vmatpush3.bf16.msra.mxu1 %v3229_v48  ;;  %1709 = vmatprep.mubr.bf16.mxu1 %v3492_v52  ;;  %v3614_v52 = vpack.c.bf16 %v566_v61, %v565_v50  ;;  %v397_v39 = vmax.f32 %v3640_v28, 0.0  ;;  %v3245_v48 = vld [vmem:[%s4419_s1 + $0x100] sm:$0xff]   ;;  %v3687_v50 = vpack.c.bf16 %v393_v63, %v392_v62  ;;  %v570_v61 = vld [vmem:[#allocation2 + $0x52] sm:$0xff] }
  0x53   : > { %2983 = vmatprep.subr.bf16.mxu1 %v3233_v54  ;;  %485 = vst [vmem:[#allocation2 + $0xf1] sm:$0xff] %v398_v45  ;;  %v290_v54 = vld [vmem:[%s3355_s20 + $0xa0] sm:$0xff]  ;;  %2884 = vmatpush3.bf16.msra.mxu0 %v3245_v48  ;;  %v3246_v62 = vld [vmem:[%s4419_s1 + $0x1d8] sm:$0xff]   ;;  %v3722_v10 = vpack.c.bf16 %v570_v61, %v569_v60  ;;  %v3783_v46 = vpack.c.bf16 %v399_v21, %v398_v45  ;;  %s268_s20 = scalar_lea.vmem %s4424_s6, %s4448_s22 }
  0x54   : > { %1581 = vmatmul.mubr.bf16.gmra.mxu0 %v3618_v14  ;;  %484 = vst [vmem:[#allocation2 + $0xe1] sm:$0xff] %v397_v39  ;;  %v329_v56 = vmul.f32 %v3368_v17, %v290_v54  ;;  %3117 = vmatprep.subr.bf16.mxu0 %v3713_v2  ;;  %v516_v16 = vld [vmem:[#allocation2 + $0xc8] sm:$0xff]  ;;  %v3756_v30 = vpack.c.bf16 %v397_v39, %v396_v34  ;;  %v3257_v34 = vld [vmem:[%s4419_s1 + $0x180] sm:$0xff]  }
  0x55   : > { %1588 = vmatprep.mubr.bf16.mxu0 %v3623_v20  ;;  %v3748_v25 = vpack.c.bf16 %v516_v16, %v515_v15  ;;  %v378_v48 = vadd.f32 %v3373_v18, %v339_v38  ;;  %v579_v1 = vld [vmem:[#allocation2 + $0xc2] sm:$0xff]  ;;  %v591_v38 = vld [vmem:[#allocation2 + $0x152] sm:$0xff] }
  0x56   : > { %2984 = vmatpush3.bf16.msra.mxu1 %v3235_v3  ;;  %v3705_v0 = vadd.f32 %v3373_v18, %v329_v56  ;;  %v617_v16 = vld [vmem:[#allocation2 + $0x120] sm:$0xff] }
  0x57   : > { %2985 = vmatprep.subr.bf16.mxu1 %v3238_v8  ;;  %v513_v59 = vld [vmem:[#allocation2 + $0xa8] sm:$0xff]  ;;  %v514_v63 = vld [vmem:[#allocation2 + $0xb0] sm:$0xff]  ;;  %v3248_v8 = vld [vmem:[%s4419_s1 + $0x198] sm:$0xff]   ;;  %v410_v58 = vmax.f32 %v378_v48, 0.0 }
  0x58   : > { %v400_v3 = vmax.f32 %v3705_v0, 0.0  ;;  %v3720_v9 = vpack.c.bf16 %v514_v63, %v513_v59  ;;  %v575_v59 = vld [vmem:[#allocation2 + $0x92] sm:$0xff]  ;;  %v577_v61 = vld [vmem:[#allocation2 + $0xaa] sm:$0xff] }
  0x59   : > { %1710 = vmatmul.mubr.bf16.gmra.mxu1 %v3614_v52  ;;  %497 = vst [vmem:[#allocation2 + $0x181] sm:$0xff] %v410_v58  ;;  %v3793_v21 = vpack.c.bf16 %v576_v41, %v575_v59  ;;  %v593_v59 = vld [vmem:[#allocation2 + $0x16a] sm:$0xff] }
  0x5a   : > { %1717 = vmatprep.mubr.bf16.mxu1 %v3520_v7  ;;  %2986 = vmatpush3.bf16.msra.mxu1 %v3239_v22  ;;  %v3243_v7 = vld [vmem:[%s4419_s1 + $0x1a0] sm:$0xff]   ;;  %487 = vst [vmem:[#allocation2 + $0x109] sm:$0xff] %v400_v3  ;;  %v572_v22 = vld [vmem:[#allocation2 + $0x6a] sm:$0xff]  ;;  %v520_v40 = vld [vmem:[#allocation2 + $0xf8] sm:$0xff] }
  0x5b   : > { %2987 = vmatprep.subr.bf16.mxu1 %v3242_v42  ;;  %v3750_v29 = vpack.c.bf16 %v572_v22, %v571_v5  ;;  %v518_v28 = vld [vmem:[#allocation2 + $0xe0] sm:$0xff]  ;;  %v3776_v42 = vpack.c.bf16 %v574_v35, %v573_v33  ;;  %v618_v22 = vld [vmem:[#allocation2 + $0x128] sm:$0xff]  ;;  %v586_v33 = vld [vmem:[#allocation2 + $0x112] sm:$0xff] }
  0x5c   : > { %1589 = vmatmul.mubr.bf16.gmra.mxu0 %v3671_v43  ;;  %v3774_v39 = vpack.c.bf16 %v518_v28, %v517_v32  ;;  %v581_v5 = vld [vmem:[#allocation2 + $0xda] sm:$0xff]  ;;  %v3842_v32 = vpack.c.bf16 %v618_v22, %v617_v16  ;;  %v3260_v35 = vld [vmem:[%s4419_s1 + $0x208] sm:$0xff]  }
  0x5d   : > { %1596 = vmatprep.mubr.bf16.mxu0 %v3687_v50  ;;  %v588_v28 = vld [vmem:[#allocation2 + $0x12a] sm:$0xff] }
  0x5e   : > { %2988 = vmatpush3.bf16.msra.mxu1 %v3243_v7  ;;  %v340_v7 = vmul.f32 %v3368_v17, %v301_v37  ;;  %v519_v17 = vld [vmem:[#allocation2 + $0xf0] sm:$0xff]  ;;  %v590_v37 = vld [vmem:[#allocation2 + $0x142] sm:$0xff] }
  0x5f   : > { %2989 = vmatprep.subr.bf16.mxu1 %v3246_v62  ;;  %v3791_v45 = vpack.c.bf16 %v520_v40, %v519_v17  ;;  %v578_v62 = vld [vmem:[#allocation2 + $0xb2] sm:$0xff] }
  0x60   : > { %v379_v54 = vadd.f32 %v3373_v18, %v340_v7  ;;  %v3799_v18 = vpack.c.bf16 %v401_v4, %v400_v3  ;;  %v580_v3 = vld [vmem:[#allocation2 + $0xca] sm:$0xff]  ;;  %v592_v7 = vld [vmem:[#allocation2 + $0x15a] sm:$0xff] }
  0x61   : > { %1718 = vmatmul.mubr.bf16.gmra.mxu1 %v3673_v44  ;;  %v521_v56 = vld [vmem:[#allocation2 + $0x108] sm:$0xff]  ;;  %v522_v57 = vld [vmem:[#allocation2 + $0x110] sm:$0xff]  ;;  %v3815_v4 = vpack.c.bf16 %v580_v3, %v579_v1  ;;  %v625_v48 = vld [vmem:[#allocation2 + $0x180] sm:$0xff] }
  0x62   : > { %1725 = vmatprep.mubr.bf16.mxu1 %v3567_v47  ;;  %2990 = vmatpush3.bf16.msra.mxu1 %v3248_v8  ;;  %v411_v60 = vmax.f32 %v379_v54, 0.0  ;;  %v3805_v63 = vpack.c.bf16 %v522_v57, %v521_v56  ;;  %v3807_v8 = vpack.c.bf16 %v578_v62, %v577_v61  ;;  %v725_v17 = vld [vmem:[#allocation2 + $0x39] sm:$0xff]  ;;  %v692_v61 = vld [vmem:[#allocation2 + $0x30] sm:$0xff] }
  0x63   : > { %2991 = vmatprep.subr.bf16.mxu1 %v3249_v19  ;;  %v3250_v19 = vld [vmem:[%s4419_s1 + $0x230] sm:$0xff]   ;;  %v693_v56 = vld [vmem:[#allocation2 + $0x38] sm:$0xff] }
  0x64   : > { %1597 = vmatmul.mubr.bf16.gmra.mxu0 %v3720_v9  ;;  %498 = vst [vmem:[#allocation2 + $0x189] sm:$0xff] %v411_v60  ;;  %v3809_v0 = vpack.c.bf16 %v411_v60, %v410_v58  ;;  %v3875_v58 = vpack.c.bf16 %v592_v7, %v591_v38  ;;  %v724_v60 = vld [vmem:[#allocation2 + $0x31] sm:$0xff]  ;;  %v726_v57 = vld [vmem:[#allocation2 + $0x49] sm:$0xff]  ;;  %v794_v1 = vpack.c.bf16 %v693_v56, %v692_v61 }
  0x65   : > { %1604 = vmatprep.mubr.bf16.mxu0 %v3729_v12  ;;  %v795_v41 = vpack.c.bf16 %v725_v17, %v724_v60  ;;  %v727_v62 = vld [vmem:[#allocation2 + $0x51] sm:$0xff]  ;;  %v655_v38 = vld [vmem:[#allocation2 + $0x169] sm:$0xff] }
  0x66   : > { %2992 = vmatpush3.bf16.msra.mxu1 %v3251_v6  ;;  %v582_v6 = vld [vmem:[#allocation2 + $0xe2] sm:$0xff]  ;;  %v804_v3 = vpack.c.bf16 %v727_v62, %v726_v57  ;;  %v656_v7 = vld [vmem:[#allocation2 + $0x171] sm:$0xff] }
  0x67   : > { %2993 = vmatprep.subr.bf16.mxu1 %v3252_v23  ;;  %v3828_v15 = vpack.c.bf16 %v582_v6, %v581_v5  ;;  %v3258_v23 = vld [vmem:[%s4419_s1 + $0x218] sm:$0xff]   ;;  %v695_v5 = vld [vmem:[#allocation2 + $0x50] sm:$0xff]  ;;  %v3927_v56 = vpack.c.bf16 %v656_v7, %v655_v38 }
  0x68   : > { %v761_v38 = vld [vmem:[#allocation2 + $0x6a] sm:$0xff] }
  0x69   : > { %1726 = vmatmul.mubr.bf16.gmra.mxu1 %v3722_v10 }
  0x6a   : > { %1733 = vmatprep.mubr.bf16.mxu1 %v3618_v14  ;;  %2994 = vmatpush3.bf16.msra.mxu1 %v3254_v31 }
  0x6b   : > { %2995 = vmatprep.subr.bf16.mxu1 %v3255_v24  ;;  %v626_v54 = vld [vmem:[#allocation2 + $0x188] sm:$0xff] }
  0x6c   : > { %1605 = vmatmul.mubr.bf16.gmra.mxu0 %v3748_v25 }
  0x6d   : > { %1612 = vmatprep.mubr.bf16.mxu0 %v3756_v30 }
  0x6e   : > { %2996 = vmatpush3.bf16.msra.mxu1 %v3257_v34 }
  0x71   : > { %1734 = vmatmul.mubr.bf16.gmra.mxu1 %v3750_v29 }
  0x72   : > { %1741 = vmatprep.mubr.bf16.mxu1 %v3671_v43 }
  0x74   : > { %1613 = vmatmul.mubr.bf16.gmra.mxu0 %v3774_v39 }
  0x75   : > { %1620 = vmatprep.mubr.bf16.mxu0 %v3783_v46 }
  0x79   : > { %1742 = vmatmul.mubr.bf16.gmra.mxu1 %v3776_v42 }
  0x7a   : > { %1749 = vmatprep.mubr.bf16.mxu1 %v3720_v9 }
  0x7c   : > { %1621 = vmatmul.mubr.bf16.gmra.mxu0 %v3791_v45 }
  0x7d   : > { %1628 = vmatprep.mubr.bf16.mxu0 %v3799_v18 }
  0x81   : > { %1750 = vmatmul.mubr.bf16.gmra.mxu1 %v3793_v21 }
  0x82   : > { %1757 = vmatprep.mubr.bf16.mxu1 %v3748_v25 }
  0x84   : > { %1629 = vmatmul.mubr.bf16.gmra.mxu0 %v3805_v63 }
  0x85   : > { %1862 = vmatprep.mubr.bf16.mxu0 %v3614_v52  ;;  %v3253_v52 = vld [vmem:[%s4419_s1 + $0x228] sm:$0xff]  }
  0x89   : > { %1758 = vmatmul.mubr.bf16.gmra.mxu1 %v3807_v8 }
  0x8a   : > { %1765 = vmatprep.mubr.bf16.mxu1 %v3774_v39 }
  0x8c   : > { %1863 = vmatmul.mubr.bf16.vlgmr.msra.gmra.mxu0 %v3421_v55  ;;  %v3256_v55 = vld [vmem:[%s4419_s1 + $0x220] sm:$0xff]  }
  0x8d   : > { %3118 = vmatpush3.bf16.msra.mxu0 %v3713_v2  ;;  %1870 = vmatprep.mubr.bf16.mxu0 %v3673_v44  ;;  %v583_v44 = vld [vmem:[#allocation2 + $0xf2] sm:$0xff]  ;;  %v584_v2 = vld [vmem:[#allocation2 + $0xfa] sm:$0xff] }
  0x8e   : > { %3119 = vmatprep.subr.bf16.mxu0 %v3250_v19  ;;  %v3840_v31 = vpack.c.bf16 %v584_v2, %v583_v44  ;;  %v652_v2 = vld [vmem:[#allocation2 + $0x141] sm:$0xff] }
  0x91   : > { %1766 = vmatmul.mubr.bf16.gmra.mxu1 %v3815_v4  ;;  %3120 = vmatpush3.bf16.msra.mxu0 %v3250_v19  ;;  %v694_v19 = vld [vmem:[#allocation2 + $0x48] sm:$0xff] }
  0x92   : > { %1773 = vmatprep.mubr.bf16.mxu1 %v3791_v45  ;;  %3121 = vmatprep.subr.bf16.mxu0 %v3253_v52  ;;  %v803_v6 = vpack.c.bf16 %v695_v5, %v694_v19 }
  0x94   : > { %1871 = vmatmul.mubr.bf16.gmra.mxu0 %v3461_v27  ;;  %v3259_v27 = vld [vmem:[%s4419_s1 + $0x210] sm:$0xff]  }
  0x95   : > { %1878 = vmatprep.mubr.bf16.mxu0 %v3722_v10  ;;  %3122 = vmatpush3.bf16.msra.mxu0 %v3253_v52  ;;  %v585_v10 = vld [vmem:[#allocation2 + $0x10a] sm:$0xff]  ;;  %v649_v52 = vld [vmem:[#allocation2 + $0x121] sm:$0xff] }
  0x96   : > { %3123 = vmatprep.subr.bf16.mxu0 %v3256_v55  ;;  %v3854_v24 = vpack.c.bf16 %v586_v33, %v585_v10 }
  0x99   : > { %1774 = vmatmul.mubr.bf16.gmra.mxu1 %v3828_v15  ;;  %3124 = vmatpush3.bf16.msra.mxu0 %v3256_v55  ;;  %v650_v55 = vld [vmem:[#allocation2 + $0x129] sm:$0xff] }
  0x9a   : > { %1781 = vmatprep.mubr.bf16.mxu1 %v3805_v63  ;;  %3125 = vmatprep.subr.bf16.mxu0 %v3258_v23  ;;  %v3897_v44 = vpack.c.bf16 %v650_v55, %v649_v52  ;;  %v756_v52 = vld [vmem:[#allocation2 + $0x32] sm:$0xff]  ;;  %v757_v55 = vld [vmem:[#allocation2 + $0x3a] sm:$0xff] }
  0x9c   : > { %1879 = vmatmul.mubr.bf16.gmra.mxu0 %v3490_v51  ;;  %v3261_v51 = vld [vmem:[%s4419_s1 + $0x200] sm:$0xff]  }
  0x9d   : > { %1886 = vmatprep.mubr.bf16.mxu0 %v3750_v29  ;;  %3126 = vmatpush3.bf16.msra.mxu0 %v3258_v23  ;;  %v587_v29 = vld [vmem:[#allocation2 + $0x122] sm:$0xff] }
  0x9e   : > { %3127 = vmatprep.subr.bf16.mxu0 %v3259_v27  ;;  %v3863_v34 = vpack.c.bf16 %v588_v28, %v587_v29 }
  0xa1   : > { %1782 = vmatmul.mubr.bf16.gmra.mxu1 %v3840_v31  ;;  %3128 = vmatpush3.bf16.msra.mxu0 %v3259_v27 }
  0xa2   : > { %1789 = vmatprep.mubr.bf16.mxu1 %v3842_v32  ;;  %3129 = vmatprep.subr.bf16.mxu0 %v3260_v35 }
  0xa4   : > { %1887 = vmatmul.mubr.bf16.gmra.mxu0 %v3528_v13 }
  0xa5   : > { %1894 = vmatprep.mubr.bf16.mxu0 %v3776_v42  ;;  %3130 = vmatpush3.bf16.msra.mxu0 %v3260_v35 }
  0xa6   : > { %3131 = vmatprep.subr.bf16.mxu0 %v3261_v51 }
  0xa9   : > { %1790 = vmatmul.mubr.bf16.gmra.mxu1 %v3854_v24  ;;  %3132 = vmatpush3.bf16.msra.mxu0 %v3261_v51 }
  0xaa   : > { %1797 = vmatprep.mubr.bf16.mxu1 %v3459_v26  ;;  %v3869_v26 = vpack.c.bf16 %v590_v37, %v589_v36 }
  0xac   : > { %1895 = vmatmul.mubr.bf16.gmra.mxu0 %v3572_v49 }
  0xad   : > { %1902 = vmatprep.mubr.bf16.mxu0 %v3793_v21 }
  0xb1   : > { %1798 = vmatmul.mubr.bf16.gmra.mxu1 %v3863_v34 }
  0xb2   : > { %1805 = vmatprep.mubr.bf16.mxu1 %v3494_v53  ;;  %v3877_v53 = vpack.c.bf16 %v626_v54, %v625_v48 }
  0xb4   : > { %1903 = vmatmul.mubr.bf16.gmra.mxu0 %v3623_v20 }
  0xb5   : > { %1910 = vmatprep.mubr.bf16.mxu0 %v3807_v8 }
  0xb9   : > { %1806 = vmatmul.mubr.bf16.gmra.mxu1 %v3869_v26 }
  0xba   : > { %1813 = vmatprep.mubr.bf16.mxu1 %v3523_v11  ;;  %v594_v11 = vld [vmem:[#allocation2 + $0x172] sm:$0xff] }
  0xbb   : > { %v3883_v40 = vpack.c.bf16 %v594_v11, %v593_v59  ;;  %v689_v59 = vld [vmem:[#allocation2 + $0x182] sm:$0xff]  ;;  %v690_v11 = vld [vmem:[#allocation2 + $0x18a] sm:$0xff] }
  0xbc   : > { %1911 = vmatmul.mubr.bf16.gmra.mxu0 %v3687_v50  ;;  %v3929_v57 = vpack.c.bf16 %v690_v11, %v689_v59 }
  0xbd   : > { %1918 = vmatprep.mubr.bf16.mxu0 %v3815_v4 }
  0xc1   : > { %1814 = vmatmul.mubr.bf16.gmra.mxu1 %v3875_v58 }
  0xc2   : > { %1821 = vmatprep.mubr.bf16.mxu1 %v3877_v53 }
  0xc4   : > { %1919 = vmatmul.mubr.bf16.gmra.mxu0 %v3729_v12 }
  0xc5   : > { %1926 = vmatprep.mubr.bf16.mxu0 %v3828_v15 }
  0xc9   : > { %1822 = vmatmul.mubr.bf16.gmra.mxu1 %v3883_v40 }
  0xca   : > { %2023 = vmatprep.mubr.bf16.mxu1 %v795_v41 }
  0xcc   : > { %1927 = vmatmul.mubr.bf16.gmra.mxu0 %v3756_v30 }
  0xcd   : > { %1934 = vmatprep.mubr.bf16.mxu0 %v3840_v31 }
  0xd1   : > { %2024 = vmatmul.mubr.bf16.vlgmr.msra.gmra.mxu1 %v794_v1 }
  0xd2   : > { %2031 = vmatprep.mubr.bf16.mxu1 %v804_v3 }
  0xd4   : > { %1935 = vmatmul.mubr.bf16.gmra.mxu0 %v3783_v46 }
  0xd5   : > { %1942 = vmatprep.mubr.bf16.mxu0 %v3854_v24 }
  0xd9   : > { %2032 = vmatmul.mubr.bf16.gmra.mxu1 %v803_v6 }
  0xda   : > { %2039 = vmatprep.mubr.bf16.mxu1 %v3528_v13  ;;  %v651_v13 = vld [vmem:[#allocation2 + $0x139] sm:$0xff] }
  0xdb   : > { %v3903_v16 = vpack.c.bf16 %v652_v2, %v651_v13 }
  0xdc   : > { %1943 = vmatmul.mubr.bf16.gmra.mxu0 %v3799_v18 }
  0xdd   : > { %1950 = vmatprep.mubr.bf16.mxu0 %v3863_v34 }
  0xe1   : > { %2040 = vmatmul.mubr.bf16.gmra.mxu1 %v3567_v47 }
  0xe2   : > { %2047 = vmatprep.mubr.bf16.mxu1 %v3572_v49  ;;  %v653_v49 = vld [vmem:[#allocation2 + $0x151] sm:$0xff] }
  0xe4   : > { %1951 = vmatmul.mubr.bf16.gmra.mxu0 %v3897_v44 }
  0xe5   : > { %1958 = vmatprep.mubr.bf16.mxu0 %v3869_v26 }
  0xe9   : > { %2048 = vmatmul.mubr.bf16.gmra.mxu1 %v3618_v14  ;;  %v654_v14 = vld [vmem:[#allocation2 + $0x159] sm:$0xff] }
  0xea   : > { %2055 = vmatprep.mubr.bf16.mxu1 %v3623_v20  ;;  %v3913_v51 = vpack.c.bf16 %v654_v14, %v653_v49  ;;  %v796_v49 = vpack.c.bf16 %v757_v55, %v756_v52 }
  0xec   : > { %v2661_v47 = vpop.f32.mrf.mxu0  ;;  %1959 = vmatmul.mubr.bf16.gmra.mxu0 %v3903_v16 }
  0xed   : > { %1966 = vmatprep.mubr.bf16.mxu0 %v3875_v58 }
  0xee   : > { %v2662_v23 = vpop.f32.mrf.mxu0 }
  0xef   : > { %v3909_v10 = vadd.f32 %v2662_v23, %v2661_v47 }
  0xf0   : > { %v2664_v33 = vpop.f32.mrf.mxu0 }
  0xf1   : > { %v2733_v22 = vpop.f32.mrf.mxu1  ;;  %2056 = vmatmul.mubr.bf16.gmra.mxu1 %v3671_v43 }
  0xf2   : > { %2063 = vmatprep.mubr.bf16.mxu1 %v3687_v50  ;;  %v2665_v29 = vpop.f32.mrf.mxu0 }
  0xf3   : > { %v2734_v27 = vpop.f32.mrf.mxu1  ;;  %v3915_v36 = vadd.f32 %v2665_v29, %v2664_v33  ;;  %v759_v29 = vld [vmem:[#allocation2 + $0x52] sm:$0xff] }
  0xf4   : > { %v3911_v20 = vadd.f32 %v2734_v27, %v2733_v22  ;;  %v2667_v37 = vpop.f32.mrf.mxu0  ;;  %1967 = vmatmul.mubr.bf16.gmra.mxu0 %v3913_v51 }
  0xf5   : > { %v2736_v35 = vpop.f32.mrf.mxu1  ;;  %1974 = vmatprep.mubr.bf16.mxu0 %v3883_v40 }
  0xf6   : > { %v2668_v48 = vpop.f32.mrf.mxu0 }
  0xf7   : > { %v2737_v28 = vpop.f32.mrf.mxu1  ;;  %v3923_v60 = vadd.f32 %v2668_v48, %v2667_v37 }
  0xf8   : > { %v3917_v43 = vadd.f32 %v2737_v28, %v2736_v35  ;;  %v2670_v41 = vpop.f32.mrf.mxu0 }
  0xf9   : > { %v2739_v50 = vpop.f32.mrf.mxu1  ;;  %2064 = vmatmul.mubr.bf16.gmra.mxu1 %v3720_v9 }
  0xfa   : > { %2071 = vmatprep.mubr.bf16.mxu1 %v3729_v12  ;;  %v2671_v9 = vpop.f32.mrf.mxu0 }
  0xfb   : > { %v2740_v54 = vpop.f32.mrf.mxu1  ;;  %v3931_v1 = vadd.f32 %v2671_v9, %v2670_v41 }
  0xfc   : > { %v3925_v17 = vadd.f32 %v2740_v54, %v2739_v50  ;;  %v2673_v3 = vpop.f32.mrf.mxu0  ;;  %1975 = vmatmul.mubr.bf16.gmra.mxu0 %v3927_v56  ;;  %v760_v50 = vld [vmem:[#allocation2 + $0x62] sm:$0xff] }
  0xfd   : > { %v2742_v61 = vpop.f32.mrf.mxu1  ;;  %1982 = vmatprep.mubr.bf16.mxu0 %v3929_v57  ;;  %v814_v41 = vpack.c.bf16 %v761_v38, %v760_v50 }
  0xfe   : > { %v2674_v5 = vpop.f32.mrf.mxu0 }
  0xff   : > { %v2743_v62 = vpop.f32.mrf.mxu1  ;;  %v3939_v13 = vadd.f32 %v2674_v5, %v2673_v3 }
 0x100   : > { %v3933_v12 = vadd.f32 %v2743_v62, %v2742_v61  ;;  %v2676_v47 = vpop.f32.mrf.mxu0 }
 0x101   : > { %v2745_v19 = vpop.f32.mrf.mxu1  ;;  %2072 = vmatmul.mubr.bf16.gmra.mxu1 %v3748_v25 }
 0x102   : > { %2079 = vmatprep.mubr.bf16.mxu1 %v3756_v30  ;;  %v2677_v14 = vpop.f32.mrf.mxu0  ;;  %v758_v30 = vld [vmem:[#allocation2 + $0x4a] sm:$0xff] }
 0x103   : > { %v2746_v6 = vpop.f32.mrf.mxu1  ;;  %v3943_v27 = vadd.f32 %v2677_v14, %v2676_v47  ;;  %v805_v11 = vpack.c.bf16 %v759_v29, %v758_v30 }
 0x104   : > { %v3941_v2 = vadd.f32 %v2746_v6, %v2745_v19  ;;  %v2679_v33 = vpop.f32.mrf.mxu0  ;;  %1983 = vmatmul.mubr.bf16.gmra.mxu0 %v3809_v0 }
 0x105   : > { %v2748_v22 = vpop.f32.mrf.mxu1  ;;  %3133 = vmatprep.mubr.bf16.mxu0 %v796_v49 }
 0x106   : > { %v2680_v28 = vpop.f32.mrf.mxu0 }
 0x107   : > { %v2749_v23 = vpop.f32.mrf.mxu1  ;;  %v3950_v7 = vadd.f32 %v2680_v28, %v2679_v33 }
 0x108   : > { %v3945_v25 = vadd.f32 %v2749_v23, %v2748_v22  ;;  %v2682_v54 = vpop.f32.mrf.mxu0 }
 0x109   : > { %v2751_v35 = vpop.f32.mrf.mxu1  ;;  %2080 = vmatmul.mubr.bf16.gmra.mxu1 %v3774_v39 }
 0x10a   : > { %2087 = vmatprep.mubr.bf16.mxu1 %v3783_v46  ;;  %v2683_v61 = vpop.f32.mrf.mxu0 }
 0x10b   : > { %v2752_v37 = vpop.f32.mrf.mxu1  ;;  %v3954_v39 = vadd.f32 %v2683_v61, %v2682_v54 }
 0x10c   : > { %v3952_v48 = vadd.f32 %v2752_v37, %v2751_v35  ;;  %v2685_v62 = vpop.f32.mrf.mxu0  ;;  %3134 = vmatmul.mubr.bf16.vlgmr.msra.gmra.mxu0 %v805_v11 }
 0x10d   : > { %v2754_v59 = vpop.f32.mrf.mxu1  ;;  %3137 = vmatprep.mubr.bf16.mxu0 %v814_v41 }
 0x10e   : > { %v2686_v19 = vpop.f32.mrf.mxu0 }
 0x10f   : > { %v2755_v9 = vpop.f32.mrf.mxu1  ;;  %v3960_v6 = vadd.f32 %v2686_v19, %v2685_v62 }
 0x110   : > { %v3956_v46 = vadd.f32 %v2755_v9, %v2754_v59  ;;  %v2688_v55 = vpop.f32.mrf.mxu0 }
 0x111   : > { %v2773_v3 = vpop.f32.mrf.mxu1  ;;  %2088 = vmatmul.mubr.bf16.gmra.mxu1 %v3791_v45 }
 0x112   : > { %2095 = vmatprep.mubr.bf16.mxu1 %v3799_v18  ;;  %v2689_v49 = vpop.f32.mrf.mxu0 }
 0x113   : > { %v2774_v5 = vpop.f32.mrf.mxu1  ;;  %v3965_v23 = vadd.f32 %v2689_v49, %v2688_v55  ;;  %v716_v49 = vld [vmem:[#allocation2 + $0x150] sm:$0xff] }
 0x114   : > { %v2775_v52 = vadd.f32 %v2774_v5, %v2773_v3  ;;  %v2691_v45 = vpop.f32.mrf.mxu0  ;;  %3138 = vmatmul.mubr.bf16.gmra.mxu0 %v3776_v42 }
 0x115   : > { %v2776_v47 = vpop.f32.mrf.mxu1  ;;  %3141 = vmatprep.mubr.bf16.mxu0 %v3793_v21 }
 0x116   : > { %v3963_v22 = vadd.f32 %v2775_v52, %v3909_v10  ;;  %v2692_v10 = vpop.f32.mrf.mxu0 }
 0x117   : > { %v2777_v14 = vpop.f32.mrf.mxu1  ;;  %v3974_v29 = vadd.f32 %v2692_v10, %v2691_v45 }
 0x118   : > { %v2778_v33 = vadd.f32 %v2777_v14, %v2776_v47  ;;  %v2694_v37 = vpop.f32.mrf.mxu0 }
 0x119   : > { %v2779_v35 = vpop.f32.mrf.mxu1  ;;  %2096 = vmatmul.mubr.bf16.gmra.mxu1 %v3805_v63 }
 0x11a   : > { %v3970_v18 = vadd.f32 %v2778_v33, %v3915_v36  ;;  %2103 = vmatprep.mubr.bf16.mxu1 %v3897_v44  ;;  %v2695_v63 = vpop.f32.mrf.mxu0  ;;  %v714_v44 = vld [vmem:[#allocation2 + $0x138] sm:$0xff] }
 0x11b   : > { %v2780_v30 = vpop.f32.mrf.mxu1  ;;  %v3979_v42 = vadd.f32 %v2695_v63, %v2694_v37 }
 0x11c   : > { %v2781_v28 = vadd.f32 %v2780_v30, %v2779_v35  ;;  %v2697_v59 = vpop.f32.mrf.mxu0  ;;  %3142 = vmatmul.mubr.bf16.gmra.mxu0 %v3807_v8 }
 0x11d   : > { %v2782_v50 = vpop.f32.mrf.mxu1  ;;  %3145 = vmatprep.mubr.bf16.mxu0 %v3815_v4 }
 0x11e   : > { %v3977_v38 = vadd.f32 %v2781_v28, %v3923_v60  ;;  %v715_v60 = vld [vmem:[#allocation2 + $0x140] sm:$0xff]  ;;  %v2698_v41 = vpop.f32.mrf.mxu0 }
 0x11f   : > { %v2783_v54 = vpop.f32.mrf.mxu1  ;;  %v3988_v9 = vadd.f32 %v2698_v41, %v2697_v59  ;;  %v893_v5 = vpack.c.bf16 %v715_v60, %v714_v44 }
 0x120   : > { %v2784_v36 = vadd.f32 %v2783_v54, %v2782_v50  ;;  %v2700_v3 = vpop.f32.mrf.mxu0 }
 0x121   : > { %v2785_v11 = vpop.f32.mrf.mxu1  ;;  %2104 = vmatmul.mubr.bf16.gmra.mxu1 %v3842_v32 }
 0x122   : > { %v3984_v21 = vadd.f32 %v2784_v36, %v3931_v1  ;;  %2111 = vmatprep.mubr.bf16.mxu1 %v3903_v16  ;;  %v2701_v8 = vpop.f32.mrf.mxu0  ;;  %v718_v36 = vld [vmem:[#allocation2 + $0x168] sm:$0xff] }
 0x123   : > { %v2786_v61 = vpop.f32.mrf.mxu1  ;;  %v3993_v52 = vadd.f32 %v2701_v8, %v2700_v3 }
 0x124   : > { %v2787_v62 = vadd.f32 %v2786_v61, %v2785_v11  ;;  %v2703_v55 = vpop.f32.mrf.mxu0  ;;  %3146 = vmatmul.mubr.bf16.gmra.mxu0 %v3828_v15 }
 0x125   : > { %v2788_v19 = vpop.f32.mrf.mxu1  ;;  %3149 = vmatprep.mubr.bf16.mxu0 %v3840_v31 }
 0x126   : > { %v3991_v32 = vadd.f32 %v2787_v62, %v3939_v13  ;;  %v717_v13 = vld [vmem:[#allocation2 + $0x158] sm:$0xff]  ;;  %v2704_v14 = vpop.f32.mrf.mxu0 }
 0x127   : > { %v2789_v1 = vpop.f32.mrf.mxu1  ;;  %v4001_v45 = vadd.f32 %v2704_v14, %v2703_v55  ;;  %v902_v28 = vpack.c.bf16 %v717_v13, %v716_v49  ;;  %v755_v55 = vld [vmem:[#allocation2 + $0x1a1] sm:$0xff] }
 0x128   : > { %v2790_v16 = vadd.f32 %v2789_v1, %v2788_v19  ;;  %v2706_v10 = vpop.f32.mrf.mxu0 }
 0x129   : > { %v2791_v4 = vpop.f32.mrf.mxu1  ;;  %2112 = vmatmul.mubr.bf16.gmra.mxu1 %v893_v5 }
 0x12a   : > { %v3997_v47 = vadd.f32 %v2790_v16, %v3943_v27  ;;  %2119 = vmatprep.mubr.bf16.mxu1 %v3913_v51  ;;  %v2707_v15 = vpop.f32.mrf.mxu0  ;;  %v754_v16 = vld [vmem:[#allocation2 + $0x199] sm:$0xff] }
 0x12b   : > { %v2792_v33 = vpop.f32.mrf.mxu1  ;;  %v4006_v50 = vadd.f32 %v2707_v15, %v2706_v10  ;;  %v787_v15 = vld [vmem:[#allocation2 + $0x1a2] sm:$0xff] }
 0x12c   : > { %v2793_v35 = vadd.f32 %v2792_v33, %v2791_v4  ;;  %v2709_v63 = vpop.f32.mrf.mxu0  ;;  %3150 = vmatmul.mubr.bf16.gmra.mxu0 %v3854_v24 }
 0x12d   : > { %v2794_v30 = vpop.f32.mrf.mxu1  ;;  %3153 = vmatprep.mubr.bf16.mxu0 %v3863_v34 }
 0x12e   : > { %v4004_v37 = vadd.f32 %v2793_v35, %v3950_v7  ;;  %v719_v7 = vld [vmem:[#allocation2 + $0x170] sm:$0xff]  ;;  %v2710_v59 = vpop.f32.mrf.mxu0 }
 0x12f   : > { %v2795_v27 = vpop.f32.mrf.mxu1  ;;  %v4014_v44 = vadd.f32 %v2710_v59, %v2709_v63  ;;  %v911_v62 = vpack.c.bf16 %v719_v7, %v718_v36  ;;  %v3262_v59 = vld [vmem:[#allocation2] sm:$0xff] }
 0x130   : > { %v2796_v51 = vadd.f32 %v2795_v27, %v2794_v30  ;;  %v2712_v41 = vpop.f32.mrf.mxu0 }
 0x131   : > { %v2797_v31 = vpop.f32.mrf.mxu1  ;;  %2120 = vmatmul.mubr.bf16.gmra.mxu1 %v902_v28 }
 0x132   : > { %v4010_v54 = vadd.f32 %v2796_v51, %v3954_v39  ;;  %2127 = vmatprep.mubr.bf16.mxu1 %v3927_v56  ;;  %v2713_v24 = vpop.f32.mrf.mxu0 }
 0x133   : > { %v2798_v11 = vpop.f32.mrf.mxu1  ;;  %v4019_v19 = vadd.f32 %v2713_v24, %v2712_v41 }
 0x134   : > { %v2799_v60 = vadd.f32 %v2798_v11, %v2797_v31  ;;  %v2715_v5 = vpop.f32.mrf.mxu0  ;;  %3154 = vmatmul.mubr.bf16.gmra.mxu0 %v3869_v26  ;;  %v930_v26 = vpack.c.bf16 %v755_v55, %v754_v16  ;;  %v929_v11 = vpack.c.bf16 %v3262_v59, %v3262_v59 }
 0x135   : > { %v2800_v61 = vpop.f32.mrf.mxu1  ;;  %3157 = vmatprep.mubr.bf16.mxu0 %v3875_v58 }
 0x136   : > { %v4017_v3 = vadd.f32 %v2799_v60, %v3960_v6  ;;  %v2716_v1 = vpop.f32.mrf.mxu0 }
 0x137   : > { %v2801_v39 = vpop.f32.mrf.mxu1  ;;  %v4027_v4 = vadd.f32 %v2716_v1, %v2715_v5 }
 0x138   : > { %v2802_v56 = vadd.f32 %v2801_v39, %v2800_v61  ;;  %v2718_v13 = vpop.f32.mrf.mxu0 }
 0x139   : > { %v2803_v34 = vpop.f32.mrf.mxu1  ;;  %2128 = vmatmul.mubr.bf16.gmra.mxu1 %v911_v62 }
 0x13a   : > { %v4023_v8 = vadd.f32 %v2802_v56, %v3965_v23  ;;  %2135 = vmatprep.mubr.bf16.mxu1 %v3809_v0  ;;  %v2719_v35 = vpop.f32.mrf.mxu0 }
 0x13b   : > { %v2804_v6 = vpop.f32.mrf.mxu1  ;;  %v4032_v10 = vadd.f32 %v2719_v35, %v2718_v13 }
 0x13c   : > { %v2805_v49 = vadd.f32 %v2804_v6, %v2803_v34  ;;  %v2721_v30 = vpop.f32.mrf.mxu0  ;;  %3158 = vmatmul.mubr.bf16.gmra.mxu0 %v3883_v40 }
 0x13d   : > { %v2806_v14 = vpop.f32.mrf.mxu1  ;;  %3161 = vmatprep.mubr.bf16.mxu0 %v3929_v57 }
 0x13e   : > { %v4030_v33 = vadd.f32 %v2805_v49, %v3974_v29  ;;  %v786_v29 = vld [vmem:[#allocation2 + $0x19a] sm:$0xff]  ;;  %v2722_v27 = vpop.f32.mrf.mxu0 }
 0x13f   : > { %v2807_v23 = vpop.f32.mrf.mxu1  ;;  %v4040_v63 = vadd.f32 %v2722_v27, %v2721_v30 }
 0x140   : > { %v2808_v0 = vadd.f32 %v2807_v23, %v2806_v14  ;;  %v2724_v36 = vpop.f32.mrf.mxu0 }
 0x141   : > { %v2809_v58 = vpop.f32.mrf.mxu1  ;;  %2136 = vmatmul.mubr.bf16.gmra.mxu1 %v3877_v53  ;;  %v931_v53 = vpack.c.bf16 %v787_v15, %v786_v29 }
 0x142   : > { %v4037_v28 = vadd.f32 %v2808_v0, %v3979_v42  ;;  %2143 = vmatprep.mubr.bf16.mxu1 %v930_v26  ;;  %v2725_v42 = vpop.f32.mrf.mxu0 }
 0x143   : > { %v2810_v51 = vpop.f32.mrf.mxu1  ;;  %v4045_v41 = vadd.f32 %v2725_v42, %v2724_v36 }
 0x144   : > { %v2811_v31 = vadd.f32 %v2810_v51, %v2809_v58  ;;  %v2727_v61 = vpop.f32.mrf.mxu0  ;;  %3162 = vmatmul.mubr.bf16.gmra.mxu0 %v931_v53 }
 0x145   : > { %v2812_v7 = vpop.f32.mrf.mxu1 }
 0x146   : > { %v4043_v40 = vadd.f32 %v2811_v31, %v3988_v9  ;;  %v2728_v39 = vpop.f32.mrf.mxu0 }
 0x147   : > { %v2813_v60 = vpop.f32.mrf.mxu1  ;;  %v4050_v5 = vadd.f32 %v2728_v39, %v2727_v61 }
 0x148   : > { %v2814_v57 = vadd.f32 %v2813_v60, %v2812_v7  ;;  %v2730_v1 = vpop.f32.mrf.mxu0 }
 0x149   : > { %v2815_v62 = vpop.f32.mrf.mxu1  ;;  %2144 = vmatmul.mubr.bf16.gmra.mxu1 %v929_v11 }
 0x14a   : > { %v4048_v24 = vadd.f32 %v2814_v57, %v3993_v52  ;;  %v2731_v16 = vpop.f32.mrf.mxu0 }
 0x14b   : > { %v2816_v56 = vpop.f32.mrf.mxu1  ;;  %v4055_v49 = vadd.f32 %v2731_v16, %v2730_v1 }
 0x14c   : > { %v2817_v34 = vadd.f32 %v2816_v56, %v2815_v62  ;;  %v2885_v26 = vpop.f32.mrf.mxu0 }
 0x14d   : > { %v2818_v9 = vpop.f32.mrf.mxu1 }
 0x14e   : > { %v4053_v6 = vadd.f32 %v2817_v34, %v4001_v45  ;;  %v2886_v23 = vpop.f32.mrf.mxu0 }
 0x14f   : > { %v2819_v55 = vpop.f32.mrf.mxu1  ;;  %v2887_v30 = vadd.f32 %v2886_v23, %v2885_v26 }
 0x150   : > { %v2820_v13 = vadd.f32 %v2819_v55, %v2818_v9  ;;  %v2888_v29 = vpop.f32.mrf.mxu0 }
 0x151   : > { %v2821_v14 = vpop.f32.mrf.mxu1  ;;  %v4064_v45 = vadd.f32 %v2887_v30, %v3963_v22 }
 0x152   : > { %v4058_v52 = vadd.f32 %v2820_v13, %v4006_v50  ;;  %v2889_v51 = vpop.f32.mrf.mxu0 }
 0x153   : > { %v2822_v35 = vpop.f32.mrf.mxu1  ;;  %v2890_v36 = vadd.f32 %v2889_v51, %v2888_v29 }
 0x154   : > { %v2823_v0 = vadd.f32 %v2822_v35, %v2821_v14  ;;  %v2891_v59 = vpop.f32.mrf.mxu0 }
 0x155   : > { %v2824_v58 = vpop.f32.mrf.mxu1  ;;  %v4070_v11 = vadd.f32 %v2890_v36, %v3970_v18 }
 0x156   : > { %v4061_v15 = vadd.f32 %v2823_v0, %v4014_v44  ;;  %v2892_v42 = vpop.f32.mrf.mxu0 }
 0x157   : > { %v2825_v27 = vpop.f32.mrf.mxu1  ;;  %v2893_v44 = vadd.f32 %v2892_v42, %v2891_v59 }
 0x158   : > { %v2826_v31 = vadd.f32 %v2825_v27, %v2824_v58  ;;  %v2894_v61 = vpop.f32.mrf.mxu0 }
 0x159   : > { %v2827_v7 = vpop.f32.mrf.mxu1  ;;  %v4076_v62 = vadd.f32 %v2893_v44, %v3977_v38 }
 0x15a   : > { %v4067_v50 = vadd.f32 %v2826_v31, %v4019_v19  ;;  %v2895_v56 = vpop.f32.mrf.mxu0 }
 0x15b   : > { %v2828_v53 = vpop.f32.mrf.mxu1  ;;  %v2896_v19 = vadd.f32 %v2895_v56, %v2894_v61 }
 0x15c   : > { %v2829_v60 = vadd.f32 %v2828_v53, %v2827_v7  ;;  %v2897_v9 = vpop.f32.mrf.mxu0 }
 0x15d   : > { %v2830_v57 = vpop.f32.mrf.mxu1  ;;  %v4082_v16 = vadd.f32 %v2896_v19, %v3984_v21 }
 0x15e   : > { %v4073_v22 = vadd.f32 %v2829_v60, %v4027_v4  ;;  %v2898_v13 = vpop.f32.mrf.mxu0 }
 0x15f   : > { %v2831_v39 = vpop.f32.mrf.mxu1  ;;  %v2899_v4 = vadd.f32 %v2898_v13, %v2897_v9 }
 0x160   : > { %v2832_v34 = vadd.f32 %v2831_v39, %v2830_v57  ;;  %v2900_v35 = vpop.f32.mrf.mxu0 }
 0x161   : > { %v2833_v1 = vpop.f32.mrf.mxu1  ;;  %v4088_v23 = vadd.f32 %v2899_v4, %v3991_v32 }
 0x162   : > { %v4079_v18 = vadd.f32 %v2832_v34, %v4032_v10  ;;  %v2901_v30 = vpop.f32.mrf.mxu0 }
 0x163   : > { %v2834_v55 = vpop.f32.mrf.mxu1  ;;  %v2902_v10 = vadd.f32 %v2901_v30, %v2900_v35 }
 0x164   : > { %v2835_v14 = vadd.f32 %v2834_v55, %v2833_v1  ;;  %v2903_v27 = vpop.f32.mrf.mxu0 }
 0x165   : > { %v2836_v26 = vpop.f32.mrf.mxu1  ;;  %v4094_v51 = vadd.f32 %v2902_v10, %v3997_v47 }
 0x166   : > { %v4085_v38 = vadd.f32 %v2835_v14, %v4040_v63  ;;  %v2904_v36 = vpop.f32.mrf.mxu0 }
 0x167   : > { %v2837_v0 = vpop.f32.mrf.mxu1  ;;  %v2905_v63 = vadd.f32 %v2904_v36, %v2903_v27 }
 0x168   : > { %v2838_v58 = vadd.f32 %v2837_v0, %v2836_v26  ;;  %v2906_v53 = vpop.f32.mrf.mxu0 }
 0x169   : > { %v2839_v29 = vpop.f32.mrf.mxu1  ;;  %v4100_v42 = vadd.f32 %v2905_v63, %v4004_v37 }
 0x16a   : > { %v4091_v21 = vadd.f32 %v2838_v58, %v4045_v41  ;;  %v2907_v44 = vpop.f32.mrf.mxu0 }
 0x16b   : > { %v2840_v31 = vpop.f32.mrf.mxu1  ;;  %v2908_v41 = vadd.f32 %v2907_v44, %v2906_v53 }
 0x16c   : > { %v2841_v7 = vadd.f32 %v2840_v31, %v2839_v29  ;;  %v2909_v39 = vpop.f32.mrf.mxu0 }
 0x16d   : > { %v2842_v59 = vpop.f32.mrf.mxu1  ;;  %v4106_v56 = vadd.f32 %v2908_v41, %v4010_v54 }
 0x16e   : > { %v4097_v32 = vadd.f32 %v2841_v7, %v4050_v5  ;;  %v2910_v19 = vpop.f32.mrf.mxu0 }
 0x16f   : > { %v2843_v60 = vpop.f32.mrf.mxu1  ;;  %v2911_v5 = vadd.f32 %v2910_v19, %v2909_v39 }
 0x170   : > { %v2844_v57 = vadd.f32 %v2843_v60, %v2842_v59  ;;  %v2912_v55 = vpop.f32.mrf.mxu0 }
 0x171   : > { %v2845_v61 = vpop.f32.mrf.mxu1  ;;  %v4112_v13 = vadd.f32 %v2911_v5, %v4017_v3 }
 0x172   : > { %v4103_v47 = vadd.f32 %v2844_v57, %v4055_v49  ;;  %v2913_v4 = vpop.f32.mrf.mxu0 }
 0x173   : > { %v2846_v34 = vpop.f32.mrf.mxu1  ;;  %v2914_v49 = vadd.f32 %v2913_v4, %v2912_v55 }
 0x174   : > { %v2847_v1 = vadd.f32 %v2846_v34, %v2845_v61  ;;  %v2915_v0 = vpop.f32.mrf.mxu0 }
 0x175   : > { %v2848_v9 = vpop.f32.mrf.mxu1  ;;  %v4118_v30 = vadd.f32 %v2914_v49, %v4023_v8 }
 0x176   : > { %v4109_v37 = vadd.f32 %v2847_v1, %v3911_v20  ;;  %v2916_v10 = vpop.f32.mrf.mxu0 }
 0x177   : > { %v2849_v14 = vpop.f32.mrf.mxu1  ;;  %v2917_v20 = vadd.f32 %v2916_v10, %v2915_v0 }
 0x178   : > { %v2850_v26 = vadd.f32 %v2849_v14, %v2848_v9  ;;  %v2918_v31 = vpop.f32.mrf.mxu0 }
 0x179   : > { %v2851_v35 = vpop.f32.mrf.mxu1  ;;  %v4124_v36 = vadd.f32 %v2917_v20, %v4030_v33 }
 0x17a   : > { %v4115_v54 = vadd.f32 %v2850_v26, %v3917_v43  ;;  %v2919_v63 = vpop.f32.mrf.mxu0 }
 0x17b   : > { %v2852_v58 = vpop.f32.mrf.mxu1  ;;  %v2920_v43 = vadd.f32 %v2919_v63, %v2918_v31 }
 0x17c   : > { %v2853_v29 = vadd.f32 %v2852_v58, %v2851_v35  ;;  %v2921_v60 = vpop.f32.mrf.mxu0 }
 0x17d   : > { %v2854_v27 = vpop.f32.mrf.mxu1  ;;  %v4130_v44 = vadd.f32 %v2920_v43, %v4037_v28 }
 0x17e   : > { %v4121_v3 = vadd.f32 %v2853_v29, %v3925_v17  ;;  %v2922_v41 = vpop.f32.mrf.mxu0 }
 0x17f   : > { %v2855_v7 = vpop.f32.mrf.mxu1  ;;  %v2923_v17 = vadd.f32 %v2922_v41, %v2921_v60 }
 0x180   : > { %v2856_v59 = vadd.f32 %v2855_v7, %v2854_v27  ;;  %v2924_v34 = vpop.f32.mrf.mxu0 }
 0x181   : > { %v2857_v53 = vpop.f32.mrf.mxu1  ;;  %v4136_v19 = vadd.f32 %v2923_v17, %v4043_v40 }
 0x182   : > { %v4127_v8 = vadd.f32 %v2856_v59, %v3933_v12  ;;  %v2925_v5 = vpop.f32.mrf.mxu0 }
 0x183   : > { %v2858_v57 = vpop.f32.mrf.mxu1  ;;  %v2926_v12 = vadd.f32 %v2925_v5, %v2924_v34 }
 0x184   : > { %v2859_v61 = vadd.f32 %v2858_v57, %v2857_v53  ;;  %v2927_v14 = vpop.f32.mrf.mxu0 }
 0x185   : > { %v2860_v39 = vpop.f32.mrf.mxu1  ;;  %v4142_v4 = vadd.f32 %v2926_v12, %v4048_v24 }
 0x186   : > { %v4133_v33 = vadd.f32 %v2859_v61, %v3941_v2  ;;  %v2928_v49 = vpop.f32.mrf.mxu0 }
 0x187   : > { %v2861_v1 = vpop.f32.mrf.mxu1  ;;  %v2929_v2 = vadd.f32 %v2928_v49, %v2927_v14 }
 0x188   : > { %v2862_v9 = vadd.f32 %v2861_v1, %v2860_v39  ;;  %v2930_v58 = vpop.f32.mrf.mxu0 }
 0x189   : > { %v2863_v55 = vpop.f32.mrf.mxu1  ;;  %v4148_v10 = vadd.f32 %v2929_v2, %v4053_v6 }
 0x18a   : > { %v4139_v28 = vadd.f32 %v2862_v9, %v3945_v25  ;;  %v2931_v20 = vpop.f32.mrf.mxu0 }
 0x18b   : > { %v2864_v26 = vpop.f32.mrf.mxu1  ;;  %v2932_v25 = vadd.f32 %v2931_v20, %v2930_v58 }
 0x18c   : > { %v2865_v35 = vadd.f32 %v2864_v26, %v2863_v55  ;;  %v2933_v31 = vpop.f32.mrf.mxu0 }
 0x18d   : > { %v2866_v0 = vpop.f32.mrf.mxu1  ;;  %v4156_v63 = vadd.f32 %v2932_v25, %v4058_v52 }
 0x18e   : > { %v4145_v40 = vadd.f32 %v2865_v35, %v3952_v48  ;;  %v2934_v59 = vpop.f32.mrf.mxu0 }
 0x18f   : > { %v2867_v29 = vpop.f32.mrf.mxu1  ;;  %v2935_v48 = vadd.f32 %v2934_v59, %v2933_v31 }
 0x190   : > { %v2868_v27 = vadd.f32 %v2867_v29, %v2866_v0  ;;  %v2936_v53 = vpop.f32.mrf.mxu0 }
 0x191   : > { %v4150_v7 = vpop.f32.mrf.mxu1  ;;  %v4163_v60 = vadd.f32 %v2935_v48, %v4061_v15 }
 0x192   : > { %v4153_v24 = vadd.f32 %v2868_v27, %v3956_v46  ;;  %v2937_v57 = vpop.f32.mrf.mxu0 }
 0x193   : > { %v4158_v43 = vpop.f32.mrf.mxu1  ;;  %v2938_v61 = vadd.f32 %v2937_v57, %v2936_v53 }
 0x194   : > { %v2939_v17 = vpop.f32.mrf.mxu0 }
 0x195   : > { %v4160_v6 = vpop.f32.mrf.mxu1  ;;  %v4170_v52 = vadd.f32 %v2938_v61, %v4067_v50 }
 0x196   : > { %v2940_v39 = vpop.f32.mrf.mxu0 }
 0x197   : > { %v4165_v41 = vpop.f32.mrf.mxu1  ;;  %4425 = vst [vmem:[#allocation3_spill] sm:$0xff] %v4170_v52  ;;  %v2941_v1 = vadd.f32 %v2940_v39, %v2939_v17 }
 0x198   : > { %v2942_v5 = vpop.f32.mrf.mxu0 }
 0x199   : > { %v4167_v46 = vpop.f32.mrf.mxu1  ;;  %v4177_v15 = vadd.f32 %v2941_v1, %v4073_v22 }
 0x19a   : > { %v2943_v12 = vpop.f32.mrf.mxu0 }
 0x19b   : > { %v4172_v34 = vpop.f32.mrf.mxu1  ;;  %v2944_v14 = vadd.f32 %v2943_v12, %v2942_v5 }
 0x19c   : > { %v2945_v26 = vpop.f32.mrf.mxu0 }
 0x19d   : > { %v4174_v9 = vpop.f32.mrf.mxu1  ;;  %v4184_v50 = vadd.f32 %v2944_v14, %v4079_v18 }
 0x19e   : > { %v2946_v35 = vpop.f32.mrf.mxu0 }
 0x19f   : > { %v4179_v55 = vpop.f32.mrf.mxu1  ;;  %v2947_v0 = vadd.f32 %v2946_v35, %v2945_v26 }
 0x1a0   : > { %v2948_v58 = vpop.f32.mrf.mxu0 }
 0x1a1   : > { %v4181_v49 = vpop.f32.mrf.mxu1  ;;  %v4191_v22 = vadd.f32 %v2947_v0, %v4085_v38 }
 0x1a2   : > { %v2949_v20 = vpop.f32.mrf.mxu0 }
 0x1a3   : > { %v4186_v2 = vpop.f32.mrf.mxu1  ;;  %4426 = vst [vmem:[#allocation4_spill] sm:$0xff] %v4191_v22  ;;  %v2950_v25 = vadd.f32 %v2949_v20, %v2948_v58 }
 0x1a4   : > { %v2951_v31 = vpop.f32.mrf.mxu0 }
 0x1a5   : > { %v4188_v29 = vpop.f32.mrf.mxu1  ;;  %v4198_v18 = vadd.f32 %v2950_v25, %v4091_v21 }
 0x1a6   : > { %v2952_v48 = vpop.f32.mrf.mxu0 }
 0x1a7   : > { %v4193_v27 = vpop.f32.mrf.mxu1  ;;  %4427 = vst [vmem:[#allocation5_spill] sm:$0xff] %v4198_v18  ;;  %v2953_v57 = vadd.f32 %v2952_v48, %v2951_v31 }
 0x1a8   : > { %v2954_v61 = vpop.f32.mrf.mxu0 }
 0x1a9   : > { %v4195_v59 = vpop.f32.mrf.mxu1  ;;  %v4205_v38 = vadd.f32 %v2953_v57, %v4097_v32 }
 0x1aa   : > { %v2955_v39 = vpop.f32.mrf.mxu0 }
 0x1ab   : > { %v4200_v53 = vpop.f32.mrf.mxu1  ;;  %4428 = vst [vmem:[#allocation6_spill] sm:$0xff] %v4205_v38  ;;  %v2956_v5 = vadd.f32 %v2955_v39, %v2954_v61 }
 0x1ac   : > { %v2957_v12 = vpop.f32.mrf.mxu0 }
 0x1ad   : > { %v4202_v17 = vpop.f32.mrf.mxu1  ;;  %v4212_v21 = vadd.f32 %v2956_v5, %v4103_v47 }
 0x1ae   : > { %v2958_v26 = vpop.f32.mrf.mxu0 }
 0x1af   : > { %v4207_v1 = vpop.f32.mrf.mxu1  ;;  %4429 = vst [vmem:[#allocation7_spill] sm:$0xff] %v4212_v21  ;;  %v2959_v0 = vadd.f32 %v2958_v26, %v2957_v12 }
 0x1b0   : > { %v2960_v58 = vpop.f32.mrf.mxu0 }
 0x1b1   : > { %v4209_v14 = vpop.f32.mrf.mxu1  ;;  %v4219_v32 = vadd.f32 %v2959_v0, %v4109_v37 }
 0x1b2   : > { %v2961_v25 = vpop.f32.mrf.mxu0 }
 0x1b3   : > { %v4214_v35 = vpop.f32.mrf.mxu1  ;;  %4430 = vst [vmem:[#allocation8_spill] sm:$0xff] %v4219_v32  ;;  %v2962_v48 = vadd.f32 %v2961_v25, %v2960_v58 }
 0x1b4   : > { %v2963_v57 = vpop.f32.mrf.mxu0 }
 0x1b5   : > { %v4216_v20 = vpop.f32.mrf.mxu1  ;;  %v4226_v47 = vadd.f32 %v2962_v48, %v4115_v54 }
 0x1b6   : > { %v2964_v39 = vpop.f32.mrf.mxu0 }
 0x1b7   : > { %v4221_v31 = vpop.f32.mrf.mxu1  ;;  %4431 = vst [vmem:[#allocation9_spill] sm:$0xff] %v4226_v47  ;;  %v2965_v12 = vadd.f32 %v2964_v39, %v2963_v57 }
 0x1b8   : > { %v2966_v26 = vpop.f32.mrf.mxu0 }
 0x1b9   : > { %v4223_v61 = vpop.f32.mrf.mxu1  ;;  %v4233_v37 = vadd.f32 %v2965_v12, %v4121_v3 }
 0x1ba   : > { %v2967_v0 = vpop.f32.mrf.mxu0 }
 0x1bb   : > { %v4228_v5 = vpop.f32.mrf.mxu1  ;;  %4432 = vst [vmem:[#allocation10_spill] sm:$0xff] %v4233_v37  ;;  %v2968_v58 = vadd.f32 %v2967_v0, %v2966_v26 }
 0x1bc   : > { %v2969_v25 = vpop.f32.mrf.mxu0 }
 0x1bd   : > { %v4230_v18 = vpop.f32.mrf.mxu1  ;;  %v4240_v54 = vadd.f32 %v2968_v58, %v4127_v8 }
 0x1be   : > { %v2970_v48 = vpop.f32.mrf.mxu0 }
 0x1bf   : > { %v4235_v32 = vpop.f32.mrf.mxu1  ;;  %4433 = vst [vmem:[#allocation11_spill] sm:$0xff] %v4240_v54  ;;  %v2971_v57 = vadd.f32 %v2970_v48, %v2969_v25  ;;  %v3005_v25 = vadd.f32 %v4172_v34, %v4167_v46 }
 0x1c0   : > { %v2972_v39 = vpop.f32.mrf.mxu0 }
 0x1c1   : > { %v4237_v21 = vpop.f32.mrf.mxu1  ;;  %v4247_v3 = vadd.f32 %v2971_v57, %v4133_v33 }
 0x1c2   : > { %v2973_v12 = vpop.f32.mrf.mxu0 }
 0x1c3   : > { %v4242_v47 = vpop.f32.mrf.mxu1  ;;  %4434 = vst [vmem:[#allocation12_spill] sm:$0xff] %v4247_v3  ;;  %v2974_v26 = vadd.f32 %v2973_v12, %v2972_v39  ;;  %v2999_v39 = vadd.f32 %v4158_v43, %v4150_v7  ;;  %v3002_v7 = vadd.f32 %v4165_v41, %v4160_v6 }
 0x1c4   : > { %v2975_v0 = vpop.f32.mrf.mxu0 }
 0x1c5   : > { %v4244_v22 = vpop.f32.mrf.mxu1  ;;  %v4254_v8 = vadd.f32 %v2974_v26, %v4139_v28  ;;  %v3008_v28 = vadd.f32 %v4179_v55, %v4174_v9  ;;  %v2029_v41 = vadd.f32 %v3002_v7, %v4070_v11 }
 0x1c6   : > { %v2976_v58 = vpop.f32.mrf.mxu0 }
 0x1c7   : > { %v4249_v37 = vpop.f32.mrf.mxu1  ;;  %4435 = vst [vmem:[#allocation13_spill] sm:$0xff] %v4254_v8  ;;  %v2977_v48 = vadd.f32 %v2976_v58, %v2975_v0  ;;  %v2034_v8 = vadd.f32 %v3005_v25, %v4076_v62  ;;  %v2026_v62 = vadd.f32 %v2999_v39, %v4064_v45  ;;  %v2037_v58 = vadd.f32 %v3008_v28, %v4082_v16 }
 0x1c8   : > { %v2978_v33 = vpop.f32.mrf.mxu0  ;;  %v3011_v45 = vadd.f32 %v4186_v2, %v4181_v49  ;;  %v3014_v49 = vadd.f32 %v4193_v27, %v4188_v29  ;;  %v3029_v2 = vadd.f32 %v4228_v5, %v4223_v61 }
 0x1c9   : > { %v4251_v38 = vpop.f32.mrf.mxu1  ;;  %v4265_v12 = vadd.f32 %v2977_v48, %v4145_v40 }
 0x1ca   : > { %v2979_v3 = vpop.f32.mrf.mxu0 }
 0x1cb   : > { %v4256_v54 = vpop.f32.mrf.mxu1  ;;  %v2980_v26 = vadd.f32 %v2979_v3, %v2978_v33  ;;  %v3017_v3 = vadd.f32 %v4200_v53, %v4195_v59  ;;  %v3020_v59 = vadd.f32 %v4207_v1, %v4202_v17 }
 0x1cc   : > { %v3135_v40 = vpop.f32.mrf.mxu0 }
 0x1cd   : > { %v4260_v57 = vpop.f32.mrf.mxu1  ;;  %v4284_v43 = vadd.f32 %v2980_v26, %v4153_v24  ;;  %v2195_v34 = vadd.f32 %v3135_v40, %v2034_v8  ;;  %v2050_v16 = vadd.f32 %v3017_v3, %v4100_v42  ;;  %v2042_v42 = vadd.f32 %v3011_v45, %v4088_v23 }
 0x1ce   : > { %v2186_v55 = vpop.f32.mrf.mxu0  ;;  %v2053_v3 = vadd.f32 %v3020_v59, %v4106_v56  ;;  %v2066_v56 = vadd.f32 %v3029_v2, %v4124_v36 }
 0x1cf   : > { %v4267_v52 = vpop.f32.mrf.mxu1  ;;  %2315 = vst [vmem:[%s4279_s10 + $0x10] sm:$0xff] %v2195_v34  ;;  %v2187_v0 = vadd.f32 %v2186_v55, %v2026_v62  ;;  %v2385_v7 = vmul.f32 %v2195_v34, %v2195_v34 }
 0x1d0   : > { %v3136_v6 = vpop.f32.mrf.mxu0 }
 0x1d1   : > { %v4272_v46 = vpop.f32.mrf.mxu1  ;;  %2313 = vst [vmem:[%s4279_s10] sm:$0xff] %v2187_v0  ;;  %v2198_v24 = vadd.f32 %v3136_v6, %v2037_v58  ;;  %v2383_v28 = vmul.f32 %v2187_v0, %v2187_v0 }
 0x1d2   : > { %v2189_v48 = vpop.f32.mrf.mxu0 }
 0x1d3   : > { %v4287_v9 = vpop.f32.mrf.mxu1  ;;  %2316 = vst [vmem:[%s4279_s10 + $0x18] sm:$0xff] %v2198_v24  ;;  %v2190_v53 = vadd.f32 %v2189_v48, %v2029_v41  ;;  %v2386_v61 = vmul.f32 %v2198_v24, %v2198_v24 }
 0x1d4   : > { %v3139_v39 = vpop.f32.mrf.mxu0 }
 0x1d5   : > { %v4293_v25 = vpop.f32.mrf.mxu1  ;;  %2314 = vst [vmem:[%s4279_s10 + $0x8] sm:$0xff] %v2190_v53  ;;  %v2345_v11 = vadd.f32 %v2190_v53, %v2187_v0  ;;  %v2384_v26 = vmul.f32 %v2190_v53, %v2190_v53  ;;  %v2211_v40 = vadd.f32 %v3139_v39, %v2050_v16  ;;  %v3023_v0 = vadd.f32 %v4214_v35, %v4209_v14 }
 0x1d6   : > { %v2202_v1 = vpop.f32.mrf.mxu0  ;;  %v3032_v14 = vadd.f32 %v4235_v32, %v4230_v18  ;;  %v3026_v39 = vadd.f32 %v4221_v31, %v4216_v20 }
 0x1d7   : > { %v4299_v8 = vpop.f32.mrf.mxu1  ;;  %v2346_v62 = vadd.f32 %v2345_v11, %v2195_v34  ;;  %v2415_v55 = vadd.f32 %v2384_v26, %v2383_v28  ;;  %2319 = vst [vmem:[%s4279_s10 + $0x30] sm:$0xff] %v2211_v40  ;;  %v2203_v58 = vadd.f32 %v2202_v1, %v2042_v42  ;;  %v2045_v34 = vadd.f32 %v3014_v49, %v4094_v51 }
 0x1d8   : > { %v3140_v27 = vpop.f32.mrf.mxu0  ;;  %v2058_v11 = vadd.f32 %v3023_v0, %v4112_v13  ;;  %v3041_v49 = vadd.f32 %v4256_v54, %v4251_v38  ;;  %v2069_v42 = vadd.f32 %v3032_v14, %v4130_v44  ;;  %v2389_v20 = vmul.f32 %v2211_v40, %v2211_v40 }
 0x1d9   : > { %v4305_v33 = vpop.f32.mrf.mxu1  ;;  %v2416_v5 = vadd.f32 %v2415_v55, %v2385_v7  ;;  %v2347_v6 = vadd.f32 %v2346_v62, %v2198_v24  ;;  %v2214_v41 = vadd.f32 %v3140_v27, %v2053_v3  ;;  %2317 = vst [vmem:[%s4279_s10 + $0x20] sm:$0xff] %v2203_v58  ;;  %v2387_v48 = vmul.f32 %v2203_v58, %v2203_v58 }
 0x1da   : > { %v2205_v45 = vpop.f32.mrf.mxu0  ;;  %v3035_v62 = vadd.f32 %v4242_v47, %v4237_v21  ;;  %v2061_v3 = vadd.f32 %v3026_v39, %v4118_v30 }
 0x1db   : > { %v4312_v17 = vpop.f32.mrf.mxu1  ;;  %v2348_v35 = vadd.f32 %v2347_v6, %v2203_v58  ;;  %v2417_v59 = vadd.f32 %v2416_v5, %v2386_v61  ;;  %2320 = vst [vmem:[%s4279_s10 + $0x38] sm:$0xff] %v2214_v41  ;;  %v2206_v53 = vadd.f32 %v2205_v45, %v2045_v34  ;;  %v2390_v38 = vmul.f32 %v2214_v41, %v2214_v41 }
 0x1dc   : > { %v3143_v16 = vpop.f32.mrf.mxu0  ;;  %v2082_v61 = vadd.f32 %v3041_v49, %v4148_v10  ;;  %v3038_v34 = vadd.f32 %v4249_v37, %v4244_v22  ;;  %v3053_v10 = vadd.f32 %v4312_v17, %v4305_v33 }
 0x1dd   : > { %v4319_v29 = vpop.f32.mrf.mxu1  ;;  %v2418_v28 = vadd.f32 %v2417_v59, %v2387_v48  ;;  %v2227_v51 = vadd.f32 %v3143_v16, %v2066_v56  ;;  %2318 = vst [vmem:[%s4279_s10 + $0x28] sm:$0xff] %v2206_v53  ;;  %v2349_v36 = vadd.f32 %v2348_v35, %v2206_v53  ;;  %v2388_v18 = vmul.f32 %v2206_v53, %v2206_v53 }
 0x1de   : > { %v2218_v26 = vpop.f32.mrf.mxu0  ;;  %v2074_v56 = vadd.f32 %v3035_v62, %v4136_v19  ;;  %v3047_v19 = vadd.f32 %v4287_v9, %v4272_v46  ;;  %v2098_v49 = vadd.f32 %v3053_v10, %v4177_v15 }
 0x1df   : > { %v4322_v23 = vpop.f32.mrf.mxu1  ;;  %2323 = vst [vmem:[%s4279_s10 + $0x50] sm:$0xff] %v2227_v51  ;;  %v2219_v2 = vadd.f32 %v2218_v26, %v2058_v11  ;;  %v2350_v31 = vadd.f32 %v2349_v36, %v2211_v40  ;;  %v2419_v1 = vadd.f32 %v2418_v28, %v2388_v18  ;;  %v3044_v40 = vadd.f32 %v4267_v52, %v4260_v57 }
 0x1e0   : > { %v3144_v13 = vpop.f32.mrf.mxu0  ;;  %v2393_v53 = vmul.f32 %v2227_v51, %v2227_v51  ;;  %v2077_v11 = vadd.f32 %v3038_v34, %v4142_v4  ;;  %v3050_v4 = vadd.f32 %v4299_v8, %v4293_v25 }
 0x1e1   : > { %v4329_v24 = vpop.f32.mrf.mxu1  ;;  %2321 = vst [vmem:[%s4279_s10 + $0x40] sm:$0xff] %v2219_v2  ;;  %v2230_v55 = vadd.f32 %v3144_v13, %v2069_v42  ;;  %v2420_v54 = vadd.f32 %v2419_v1, %v2389_v20  ;;  %v2351_v0 = vadd.f32 %v2350_v31, %v2214_v41  ;;  %v2391_v47 = vmul.f32 %v2219_v2, %v2219_v2 }
 0x1e2   : > { %v2221_v44 = vpop.f32.mrf.mxu0  ;;  %v2085_v59 = vadd.f32 %v3044_v40, %v4156_v63  ;;  %v3056_v63 = vadd.f32 %v4322_v23, %v4319_v29  ;;  %v2090_v13 = vadd.f32 %v3047_v19, %v4163_v60 }
 0x1e3   : > { %v4335_v32 = vpop.f32.mrf.mxu1  ;;  %2324 = vst [vmem:[%s4279_s10 + $0x58] sm:$0xff] %v2230_v55  ;;  %v2222_v27 = vadd.f32 %v2221_v44, %v2061_v3  ;;  %v2352_v21 = vadd.f32 %v2351_v0, %v2219_v2  ;;  %v2421_v5 = vadd.f32 %v2420_v54, %v2390_v38  ;;  %v2394_v36 = vmul.f32 %v2230_v55, %v2230_v55 }
 0x1e4   : > { %v3147_v30 = vpop.f32.mrf.mxu0  ;;  %v2101_v38 = vadd.f32 %v3056_v63, %v4184_v50  ;;  %v3059_v40 = vadd.f32 %v4335_v32, %v4329_v24  ;;  %v4440_v63 = vld [vmem:[#allocation5_spill] sm:$0xff] }
 0x1e5   : > { %v4341_v7 = vpop.f32.mrf.mxu1  ;;  %2322 = vst [vmem:[%s4279_s10 + $0x48] sm:$0xff] %v2222_v27  ;;  %v2392_v41 = vmul.f32 %v2222_v27, %v2222_v27  ;;  %v2243_v45 = vadd.f32 %v3147_v30, %v2082_v61  ;;  %v2422_v52 = vadd.f32 %v2421_v5, %v2391_v47  ;;  %v2353_v57 = vadd.f32 %v2352_v21, %v2222_v27  ;;  %v4436_v27 = vld [vmem:[#allocation3_spill] sm:$0xff] }
 0x1e6   : > { %v2234_v35 = vpop.f32.mrf.mxu0  ;;  %v2093_v61 = vadd.f32 %v3050_v4, %v4436_v27 }
 0x1e7   : > { %v4347_v58 = vpop.f32.mrf.mxu1  ;;  %2327 = vst [vmem:[%s4279_s10 + $0x70] sm:$0xff] %v2243_v45  ;;  %v2235_v48 = vadd.f32 %v2234_v35, %v2074_v56  ;;  %v2354_v22 = vadd.f32 %v2353_v57, %v2227_v51  ;;  %v2423_v37 = vadd.f32 %v2422_v52, %v2392_v41  ;;  %v2397_v54 = vmul.f32 %v2243_v45, %v2243_v45  ;;  %v4437_v41 = vld [vmem:[#allocation6_spill] sm:$0xff] }
 0x1e8   : > { %v3148_v39 = vpop.f32.mrf.mxu0 }
 0x1e9   : > { %v3063_v6 = vpop.f32.mrf.mxu1  ;;  %2325 = vst [vmem:[%s4279_s10 + $0x60] sm:$0xff] %v2235_v48  ;;  %v2246_v28 = vadd.f32 %v3148_v39, %v2085_v59  ;;  %v2424_v33 = vadd.f32 %v2423_v37, %v2393_v53  ;;  %v2355_v17 = vadd.f32 %v2354_v22, %v2230_v55  ;;  %v2395_v46 = vmul.f32 %v2235_v48, %v2235_v48 }
 0x1ea   : > { %v2237_v26 = vpop.f32.mrf.mxu0 }
 0x1eb   : > { %v3064_v14 = vpop.f32.mrf.mxu1  ;;  %2328 = vst [vmem:[%s4279_s10 + $0x78] sm:$0xff] %v2246_v28  ;;  %v2238_v51 = vadd.f32 %v2237_v26, %v2077_v11  ;;  %v2356_v2 = vadd.f32 %v2355_v17, %v2235_v48  ;;  %v2425_v9 = vadd.f32 %v2424_v33, %v2394_v36  ;;  %v2398_v21 = vmul.f32 %v2246_v28, %v2246_v28  ;;  %v4438_v48 = vld [vmem:[#allocation4_spill] sm:$0xff] }
 0x1ec   : > { %v3151_v20 = vpop.f32.mrf.mxu0  ;;  %v3065_v15 = vadd.f32 %v3064_v14, %v3063_v6  ;;  %v3062_v14 = vadd.f32 %v4347_v58, %v4341_v7  ;;  %v2106_v59 = vadd.f32 %v3059_v40, %v4438_v48 }
 0x1ed   : > { %v3066_v16 = vpop.f32.mrf.mxu1  ;;  %2326 = vst [vmem:[%s4279_s10 + $0x68] sm:$0xff] %v2238_v51  ;;  %v2396_v31 = vmul.f32 %v2238_v51, %v2238_v51  ;;  %v2259_v1 = vadd.f32 %v3151_v20, %v2098_v49  ;;  %v2426_v29 = vadd.f32 %v2425_v9, %v2395_v46  ;;  %v2357_v23 = vadd.f32 %v2356_v2, %v2238_v51 }
 0x1ee   : > { %v2250_v55 = vpop.f32.mrf.mxu0  ;;  %v2109_v51 = vadd.f32 %v3062_v14, %v4440_v63 }
 0x1ef   : > { %v3067_v18 = vpop.f32.mrf.mxu1  ;;  %2331 = vst [vmem:[%s4279_s10 + $0x90] sm:$0xff] %v2259_v1  ;;  %v2251_v3 = vadd.f32 %v2250_v55, %v2090_v13  ;;  %v2358_v0 = vadd.f32 %v2357_v23, %v2243_v45  ;;  %v2427_v44 = vadd.f32 %v2426_v29, %v2396_v31  ;;  %v2114_v45 = vadd.f32 %v3065_v15, %v4437_v41  ;;  %v4441_v13 = vld [vmem:[#allocation10_spill] sm:$0xff]  ;;  %v4444_v41 = vld [vmem:[#allocation9_spill] sm:$0xff] }
 0x1f0   : > { %v3152_v8 = vpop.f32.mrf.mxu0  ;;  %v3068_v50 = vadd.f32 %v3067_v18, %v3066_v16  ;;  %v2401_v36 = vmul.f32 %v2259_v1, %v2259_v1 }
 0x1f1   : > { %v3069_v42 = vpop.f32.mrf.mxu1  ;;  %2329 = vst [vmem:[%s4279_s10 + $0x80] sm:$0xff] %v2251_v3  ;;  %v2262_v60 = vadd.f32 %v3152_v8, %v2101_v38  ;;  %v2428_v47 = vadd.f32 %v2427_v44, %v2397_v54  ;;  %v2359_v5 = vadd.f32 %v2358_v0, %v2246_v28  ;;  %v2399_v52 = vmul.f32 %v2251_v3, %v2251_v3  ;;  %v4439_v28 = vld [vmem:[#allocation7_spill] sm:$0xff]  ;;  %v4442_v54 = vld [vmem:[#allocation8_spill] sm:$0xff] }
 0x1f2   : > { %v2253_v30 = vpop.f32.mrf.mxu0  ;;  %v2117_v11 = vadd.f32 %v3068_v50, %v4439_v28 }
 0x1f3   : > { %v3070_v62 = vpop.f32.mrf.mxu1  ;;  %2332 = vst [vmem:[%s4279_s10 + $0x98] sm:$0xff] %v2262_v60  ;;  %v2254_v34 = vadd.f32 %v2253_v30, %v2093_v61  ;;  %v2360_v56 = vadd.f32 %v2359_v5, %v2251_v3  ;;  %v2429_v57 = vadd.f32 %v2428_v47, %v2398_v21  ;;  %v2402_v49 = vmul.f32 %v2262_v60, %v2262_v60  ;;  %v4443_v61 = vld [vmem:[#allocation11_spill] sm:$0xff] }
 0x1f4   : > { %v3155_v32 = vpop.f32.mrf.mxu0  ;;  %v3071_v18 = vadd.f32 %v3070_v62, %v3069_v42 }
 0x1f5   : > { %v3072_v25 = vpop.f32.mrf.mxu1  ;;  %2330 = vst [vmem:[%s4279_s10 + $0x88] sm:$0xff] %v2254_v34  ;;  %v2400_v35 = vmul.f32 %v2254_v34, %v2254_v34  ;;  %v2275_v10 = vadd.f32 %v3155_v32, %v2114_v45  ;;  %v2430_v53 = vadd.f32 %v2429_v57, %v2399_v52  ;;  %v2361_v22 = vadd.f32 %v2360_v56, %v2254_v34 }
 0x1f6   : > { %v2266_v16 = vpop.f32.mrf.mxu0  ;;  %v2122_v0 = vadd.f32 %v3071_v18, %v4442_v54 }
 0x1f7   : > { %v3073_v6 = vpop.f32.mrf.mxu1  ;;  %2335 = vst [vmem:[%s4279_s10 + $0xb0] sm:$0xff] %v2275_v10  ;;  %v2267_v19 = vadd.f32 %v2266_v16, %v2106_v59  ;;  %v2362_v33 = vadd.f32 %v2361_v22, %v2259_v1  ;;  %v2431_v17 = vadd.f32 %v2430_v53, %v2400_v35  ;;  %v2405_v47 = vmul.f32 %v2275_v10, %v2275_v10  ;;  %v4445_v16 = vld [vmem:[#allocation12_spill] sm:$0xff] }
 0x1f8   : > { %v3156_v58 = vpop.f32.mrf.mxu0  ;;  %v3074_v15 = vadd.f32 %v3073_v6, %v3072_v25 }
 0x1f9   : > { %v3075_v24 = vpop.f32.mrf.mxu1  ;;  %2333 = vst [vmem:[%s4279_s10 + $0xa0] sm:$0xff] %v2267_v19  ;;  %v2278_v26 = vadd.f32 %v3156_v58, %v2117_v11  ;;  %v2432_v2 = vadd.f32 %v2431_v17, %v2401_v36  ;;  %v2363_v46 = vadd.f32 %v2362_v33, %v2262_v60  ;;  %v2403_v23 = vmul.f32 %v2267_v19, %v2267_v19 }
 0x1fa   : > { %v2269_v20 = vpop.f32.mrf.mxu0  ;;  %v2125_v45 = vadd.f32 %v3074_v15, %v4444_v41 }
 0x1fb   : > { %v3076_v37 = vpop.f32.mrf.mxu1  ;;  %2336 = vst [vmem:[%s4279_s10 + $0xb8] sm:$0xff] %v2278_v26  ;;  %v2270_v31 = vadd.f32 %v2269_v20, %v2109_v51  ;;  %v2364_v29 = vadd.f32 %v2363_v46, %v2267_v19  ;;  %v2433_v55 = vadd.f32 %v2432_v2, %v2402_v49  ;;  %v2406_v56 = vmul.f32 %v2278_v26, %v2278_v26  ;;  %v4446_v49 = vld [vmem:[#allocation13_spill] sm:$0xff] }
 0x1fc   : > { %v3077_v39 = vadd.f32 %v3076_v37, %v3075_v24  ;;  %v3159_v62 = vpop.f32.mrf.mxu0 }
 0x1fd   : > { %v3078_v7 = vpop.f32.mrf.mxu1  ;;  %2334 = vst [vmem:[%s4279_s10 + $0xa8] sm:$0xff] %v2270_v31  ;;  %v2404_v3 = vmul.f32 %v2270_v31, %v2270_v31  ;;  %v2434_v44 = vadd.f32 %v2433_v55, %v2403_v23  ;;  %v2365_v8 = vadd.f32 %v2364_v29, %v2270_v31 }
 0x1fe   : > { %v2130_v1 = vadd.f32 %v3077_v39, %v4441_v13  ;;  %v2282_v60 = vpop.f32.mrf.mxu0 }
 0x1ff   : > { %v3079_v9 = vpop.f32.mrf.mxu1  ;;  %v2283_v27 = vadd.f32 %v2282_v60, %v2122_v0  ;;  %v2366_v5 = vadd.f32 %v2365_v8, %v2275_v10  ;;  %v2435_v30 = vadd.f32 %v2434_v44, %v2404_v3 }
 0x200   : > { %v3080_v4 = vadd.f32 %v3079_v9, %v3078_v7  ;;  %v2291_v38 = vadd.f32 %v3159_v62, %v2130_v1  ;;  %v3160_v25 = vpop.f32.mrf.mxu0 }
 0x201   : > { %v3081_v42 = vpop.f32.mrf.mxu1  ;;  %2337 = vst [vmem:[%s4279_s10 + $0xc0] sm:$0xff] %v2283_v27  ;;  %v2436_v52 = vadd.f32 %v2435_v30, %v2405_v47  ;;  %v2367_v57 = vadd.f32 %v2366_v5, %v2278_v26  ;;  %v2407_v48 = vmul.f32 %v2283_v27, %v2283_v27 }
 0x202   : > { %2339 = vst [vmem:[%s4279_s10 + $0xd0] sm:$0xff] %v2291_v38  ;;  %v2133_v21 = vadd.f32 %v3080_v4, %v4443_v61  ;;  %v2285_v32 = vpop.f32.mrf.mxu0  ;;  %v2409_v7 = vmul.f32 %v2291_v38, %v2291_v38 }
 0x203   : > { %v3082_v40 = vpop.f32.mrf.mxu1  ;;  %v2286_v14 = vadd.f32 %v2285_v32, %v2125_v45  ;;  %v2368_v35 = vadd.f32 %v2367_v57, %v2283_v27  ;;  %v2437_v59 = vadd.f32 %v2436_v52, %v2406_v56 }
 0x204   : > { %v3083_v6 = vadd.f32 %v3082_v40, %v3081_v42  ;;  %v2294_v34 = vadd.f32 %v3160_v25, %v2133_v21  ;;  %v3163_v53 = vpop.f32.mrf.mxu0 }
 0x205   : > { %v3084_v50 = vpop.f32.mrf.mxu1  ;;  %2338 = vst [vmem:[%s4279_s10 + $0xc8] sm:$0xff] %v2286_v14  ;;  %v2408_v37 = vmul.f32 %v2286_v14, %v2286_v14  ;;  %v2438_v19 = vadd.f32 %v2437_v59, %v2407_v48  ;;  %v2369_v28 = vadd.f32 %v2368_v35, %v2286_v14 }
 0x206   : > { %2340 = vst [vmem:[%s4279_s10 + $0xd8] sm:$0xff] %v2294_v34  ;;  %v2138_v39 = vadd.f32 %v3083_v6, %v4445_v16  ;;  %v2298_v36 = vpop.f32.mrf.mxu0  ;;  %v2410_v46 = vmul.f32 %v2294_v34, %v2294_v34 }
 0x207   : > { %v3085_v24 = vpop.f32.mrf.mxu1  ;;  %v2370_v58 = vadd.f32 %v2369_v28, %v2291_v38  ;;  %v2439_v18 = vadd.f32 %v2438_v19, %v2408_v37 }
 0x208   : > { %v3086_v22 = vadd.f32 %v3085_v24, %v3084_v50  ;;  %v2299_v17 = vadd.f32 %v2298_v36, %v2138_v39  ;;  %v3164_v63 = vpop.f32.mrf.mxu0 }
 0x209   : > { %v3087_v10 = vpop.f32.mrf.mxu1  ;;  %v2440_v9 = vadd.f32 %v2439_v18, %v2409_v7  ;;  %v2371_v20 = vadd.f32 %v2370_v58, %v2294_v34 }
 0x20a   : > { %2341 = vst [vmem:[%s4279_s10 + $0xe0] sm:$0xff] %v2299_v17  ;;  %v2141_v2 = vadd.f32 %v3086_v22, %v4446_v49  ;;  %v2301_v31 = vpop.f32.mrf.mxu0  ;;  %v2411_v55 = vmul.f32 %v2299_v17, %v2299_v17 }
 0x20b   : > { %v3088_v11 = vpop.f32.mrf.mxu1  ;;  %v2372_v23 = vadd.f32 %v2371_v20, %v2299_v17  ;;  %v2441_v42 = vadd.f32 %v2440_v9, %v2410_v46 }
 0x20c   : > { %v3089_v33 = vadd.f32 %v3088_v11, %v3087_v10  ;;  %v2302_v29 = vadd.f32 %v2301_v31, %v2141_v2 }
 0x20d   : > { %v3090_v26 = vpop.f32.mrf.mxu1  ;;  %v2442_v15 = vadd.f32 %v2441_v42, %v2411_v55 }
 0x20e   : > { %v2146_v51 = vadd.f32 %v3089_v33, %v4265_v12  ;;  %2342 = vst [vmem:[%s4279_s10 + $0xe8] sm:$0xff] %v2302_v29  ;;  %v2412_v12 = vmul.f32 %v2302_v29, %v2302_v29  ;;  %v2373_v3 = vadd.f32 %v2372_v23, %v2302_v29 }
 0x20f   : > { %v3091_v4 = vpop.f32.mrf.mxu1 }
 0x210   : > { %v2307_v13 = vadd.f32 %v3163_v53, %v2146_v51  ;;  %v3092_v1 = vadd.f32 %v3091_v4, %v3090_v26  ;;  %v2443_v44 = vadd.f32 %v2442_v15, %v2412_v12 }
 0x212   : > { %2343 = vst [vmem:[%s4279_s10 + $0xf0] sm:$0xff] %v2307_v13  ;;  %v2149_v62 = vadd.f32 %v3092_v1, %v4284_v43  ;;  %v2413_v54 = vmul.f32 %v2307_v13, %v2307_v13  ;;  %v2374_v0 = vadd.f32 %v2373_v3, %v2307_v13 }
 0x214   : > { %v2310_v38 = vadd.f32 %v3164_v63, %v2149_v62  ;;  %v2444_v60 = vadd.f32 %v2443_v44, %v2413_v54 }
 0x216   : > { %2344 = vst [vmem:[%s4279_s10 + $0xf8] sm:$0xff] %v2310_v38  ;;  %v2414_v8 = vmul.f32 %v2310_v38, %v2310_v38  ;;  %v2375_v40 = vadd.f32 %v2374_v0, %v2310_v38 }
 0x218   : > { %v2376_v27 = vrot.slane %v2375_v40, 4  ;;  %v2445_v61 = vadd.f32 %v2444_v60, %v2414_v8 }
 0x21a   : > { %v2377_v21 = vadd.f32 %v2376_v27, %v2375_v40  ;;  %v2446_v47 = vrot.slane %v2445_v61, 4 }
 0x21c   : > { %v2378_v5 = vrot.slane %v2377_v21, 2  ;;  %v2447_v43 = vadd.f32 %v2446_v47, %v2445_v61 }
 0x21e   : > { %v2379_v30 = vadd.f32 %v2378_v5, %v2377_v21  ;;  %v2448_v50 = vrot.slane %v2447_v43, 2 }
 0x220   : > { %v2380_v25 = vrot.slane %v2379_v30, 1  ;;  %v2449_v6 = vadd.f32 %v2448_v50, %v2447_v43 }
 0x222   : > { %v2381_v34 = vadd.f32 %v2380_v25, %v2379_v30  ;;  %v2450_v41 = vrot.slane %v2449_v6, 1 }
 0x224   : > { %2382 = vst [vmem:[%s265_s12] sm:$0x1] %v2381_v34  ;;  %v2451_v45 = vadd.f32 %v2450_v41, %v2449_v6 }
 0x226   : > { %2452 = vst [vmem:[%s268_s20] sm:$0x1] %v2451_v45 }
 0x227 PF: > { %s17_s21 = sadd.s32 1, %s3269_s21  }
 0x228   : > { %p14_p4 = scmp.ge.s32.totalorder %s17_s21, 4  }
 0x22a   :  { %16 = sbr.rel (!%p14_p4) target bundleno = 1 (0x1), region = 92 }

</bundles_post_ra>
